<compile_context>
chip_gen: v5e
topology: v5e:2x2
jax: 0.10.0
libtpu: 0.0.40
codegen_flags: <defaults>
</compile_context>

<pallas_src>
import math
from functools import partial

import jax
import jax.numpy as jnp
from jax import lax
from jax.experimental import pallas as pl
from jax.experimental.pallas import tpu as pltpu


def _lka_kernel(x_ref, w0_ref, b0_ref, w1_ref, b1_ref,
                wf_ref, bf_ref, wg_ref, bg_ref, m0_ref, m1_ref,
                o_ref, xpf_ref, apf_ref,
                *, H, W, Cp, dk, d_p, ddk, dil, dd_p, PV0, PV1):
    # x_ref   : (Cp, H*W)        packed input, channel-major, flat spatial
    # w0_ref  : (Cp, dk*dk)      depthwise conv0 weights (channels on sublanes)
    # w1_ref  : (Cp, ddk*ddk)    depthwise dilated conv weights
    # wf/wg   : (Cp, Cp)         1x1 conv weights (block-diag when batch-packed)
    # b*_ref  : (Cp, 1)          biases as columns
    # m0/m1   : (dk, HW)/(ddk, HW) horizontal boundary masks (per column offset)
    # o_ref   : (Cp, H*W)
    # xpf_ref : (Cp, LEN0)       scratch: vertically zero-padded input (flat)
    # apf_ref : (Cp, LEN1)       scratch: vertically zero-padded conv0 output
    f32 = jnp.float32
    HW = H * W
    LEN0 = xpf_ref.shape[1]
    LEN1 = apf_ref.shape[1]

    # ---- stage x into the vertically zero-padded flat scratch -----------------
    # Only the pad rows are zeroed (re-zeroed every step -> no cross-iteration
    # scratch state, safe with a "parallel" batch axis).
    if PV0 > 0:
        xpf_ref[:, :PV0 * W] = jnp.zeros((Cp, PV0 * W), f32)
    if LEN0 > (PV0 + H) * W:
        xpf_ref[:, (PV0 + H) * W:] = jnp.zeros((Cp, LEN0 - (PV0 + H) * W), f32)
    xpf_ref[:, PV0 * W:(PV0 + H) * W] = x_ref[...].astype(f32)

    # Load the whole padded image + weights + masks ONCE (aligned); every tap
    # below is a static slice of an in-vreg value (XLU rotate), not a
    # misaligned VMEM load.
    xp = xpf_ref[...]                      # (Cp, LEN0)
    w0 = w0_ref[...]                       # (Cp, dk*dk)
    m0 = m0_ref[...]                       # (dk, HW)

    # ---- depthwise conv0 (dk x dk, stride 1, "same" padding) ------------------
    # Flat-index trick: tap (i, j) is a contiguous slice; reads that cross a
    # row boundary are killed by the per-column-offset mask (applied once per
    # kernel column to the partial sum, not per tap).
    # Note: the masked positions read "wrapped" finite data and rely on
    # multiply-by-zero; NaN/Inf inputs would poison those outputs.
    acc0 = jnp.zeros((Cp, HW), f32)
    for j in range(dk):
        dj = j - d_p
        part = jnp.zeros((Cp, HW), f32)
        for i in range(dk):
            s = (PV0 + i - d_p) * W + dj
            t = i * dk + j
            part = part + xp[:, s:s + HW] * w0[:, t:t + 1]
        acc0 = acc0 + (part if dj == 0 else part * m0[j:j + 1, :])
    acc0 = acc0 + b0_ref[...]              # (Cp, 1) broadcast over lanes

    # ---- stage conv0 result for the dilated depthwise conv --------------------
    if PV1 > 0:
        apf_ref[:, :PV1 * W] = jnp.zeros((Cp, PV1 * W), f32)
    if LEN1 > (PV1 + H) * W:
        apf_ref[:, (PV1 + H) * W:] = jnp.zeros((Cp, LEN1 - (PV1 + H) * W), f32)
    apf_ref[:, PV1 * W:(PV1 + H) * W] = acc0

    ap = apf_ref[...]
    w1 = w1_ref[...]
    m1 = m1_ref[...]

    # ---- depthwise dilated conv_spatial (ddk x ddk, dilation dil) -------------
    acc1 = jnp.zeros((Cp, HW), f32)
    for j in range(ddk):
        dj = dil * j - dd_p
        part = jnp.zeros((Cp, HW), f32)
        for i in range(ddk):
            s = (PV1 + dil * i - dd_p) * W + dj
            t = i * ddk + j
            part = part + ap[:, s:s + HW] * w1[:, t:t + 1]
        acc1 = acc1 + (part if dj == 0 else part * m1[j:j + 1, :])
    acc1 = acc1 + b1_ref[...]

    # ---- 1x1 conv split into two (Cp,Cp) MXU matmuls, gate fused --------------
    f_x = jnp.dot(wf_ref[...], acc1, preferred_element_type=jnp.float32) + bf_ref[...]
    g_x = jnp.dot(wg_ref[...], acc1, preferred_element_type=jnp.float32) + bg_ref[...]
    o_ref[...] = (jax.nn.sigmoid(g_x) * f_x).astype(o_ref.dtype)


def spatio_attention_pallas(x_nchw, params, *, kernel_size=21, dilation=3):
    """x_nchw: (N, C, H, W) float32.  Returns (N, C, H, W)."""
    N, C, H, W = x_nchw.shape
    d_k = 2 * dilation - 1
    d_p = (d_k - 1) // 2
    dd_k = kernel_size // dilation + (kernel_size // dilation % 2 - 1)
    dd_p = dilation * (dd_k - 1) // 2
    w0, b0, w1, b1, w2, b2 = params
    HW = H * W
    f32 = jnp.float32

    # ---- batch packing for small C (fill >= 8 sublanes per grid step) ---------
    Nb = 1
    if C < 8:
        cands = [nb for nb in range(1, N + 1) if N % nb == 0 and nb * C >= 8]
        Nb = cands[0] if cands else N
    G = N // Nb
    Cp = Nb * C

    # ---- vertical pad rows for the flat scratches ------------------------------
    # Top pad is rounded up so the interior staging store lands 128-lane aligned
    # when W divides 128 (best-effort for awkward W).
    lane_align = 128 // math.gcd(W, 128)
    if lane_align > 32:
        lane_align = 1

    def _pad_rows(p):
        if p == 0:
            return 0, 0
        margin = -(-p // W)                                   # ceil(p / W)
        top = -(-(p + margin) // lane_align) * lane_align     # aligned top pad
        tail = p + margin
        return top, tail

    PV0, TR0 = _pad_rows(d_p)
    PV1, TR1 = _pad_rows(dd_p)
    LEN0 = (PV0 + H + TR0) * W
    LEN1 = (PV1 + H + TR1) * W

    # ---- host-side (one-off) parameter prep: kernel-friendly layouts ----------
    # Depthwise weights: (Cp, taps) -> channels on sublanes, taps on lanes.
    w0_k = jnp.tile(jnp.transpose(w0, (2, 0, 1)).reshape(C, d_k * d_k),
                    (Nb, 1)).astype(f32)
    w1_k = jnp.tile(jnp.transpose(w1, (2, 0, 1)).reshape(C, dd_k * dd_k),
                    (Nb, 1)).astype(f32)
    b0_k = jnp.tile(b0.reshape(C, 1), (Nb, 1)).astype(f32)
    b1_k = jnp.tile(b1.reshape(C, 1), (Nb, 1)).astype(f32)

    # 1x1 conv split into f/g halves; block-diagonal when batch-packed.
    eye = jnp.eye(Nb, dtype=f32)
    wf_k = jnp.kron(eye, jnp.transpose(w2[:, :C]).astype(f32))       # (Cp, Cp)
    wg_k = jnp.kron(eye, jnp.transpose(w2[:, C:]).astype(f32))       # (Cp, Cp)
    b2_col = b2.reshape(2 * C, 1).astype(f32)
    bf_k = jnp.tile(b2_col[:C], (Nb, 1))
    bg_k = jnp.tile(b2_col[C:], (Nb, 1))

    # Horizontal "same"-padding masks, one per kernel-column offset, (taps, HW).
    col_flat = jnp.tile(jnp.arange(W, dtype=jnp.int32), H)           # (HW,)

    def _make_masks(offsets):
        rows = [((col_flat + dj >= 0) & (col_flat + dj < W)).astype(f32)
                for dj in offsets]
        return jnp.stack(rows)                                       # (n, HW)

    m0 = _make_masks([j - d_p for j in range(d_k)])
    m1 = _make_masks([dilation * j - dd_p for j in range(dd_k)])

    # NCHW -> (G, Nb*C, H*W) is a free contiguous reshape (batch packing).
    x_packed = x_nchw.reshape(G, Cp, HW)

    kernel = partial(_lka_kernel, H=H, W=W, Cp=Cp, dk=d_k, d_p=d_p,
                     ddk=dd_k, dil=dilation, dd_p=dd_p, PV0=PV0, PV1=PV1)

    out_packed = pl.pallas_call(
        kernel,
        out_shape=jax.ShapeDtypeStruct((G, Cp, HW), x_nchw.dtype),
        grid_spec=pltpu.PrefetchScalarGridSpec(
            num_scalar_prefetch=0,
            grid=(G,),
            in_specs=[
                pl.BlockSpec((None, Cp, HW), lambda g: (g, 0, 0)),          # x
                pl.BlockSpec((Cp, d_k * d_k), lambda g: (0, 0)),            # w0
                pl.BlockSpec((Cp, 1), lambda g: (0, 0)),                    # b0
                pl.BlockSpec((Cp, dd_k * dd_k), lambda g: (0, 0)),          # w1
                pl.BlockSpec((Cp, 1), lambda g: (0, 0)),                    # b1
                pl.BlockSpec((Cp, Cp), lambda g: (0, 0)),                   # w_f
                pl.BlockSpec((Cp, 1), lambda g: (0, 0)),                    # b_f
                pl.BlockSpec((Cp, Cp), lambda g: (0, 0)),                   # w_g
                pl.BlockSpec((Cp, 1), lambda g: (0, 0)),                    # b_g
                pl.BlockSpec((d_k, HW), lambda g: (0, 0)),                  # m0
                pl.BlockSpec((dd_k, HW), lambda g: (0, 0)),                 # m1
            ],
            out_specs=pl.BlockSpec((None, Cp, HW), lambda g: (g, 0, 0)),
            scratch_shapes=[
                pltpu.VMEM((Cp, LEN0), jnp.float32),   # padded input (flat)
                pltpu.VMEM((Cp, LEN1), jnp.float32),   # padded conv0 output
            ],
        ),
        # No cross-iteration scratch dependency -> batch axis can be parallel;
        # explicit vmem limit (raises v5e's 16 MiB scoped default).
        compiler_params=pltpu.CompilerParams(
            dimension_semantics=("parallel",),
            vmem_limit_bytes=32 * 1024 * 1024,
        ),
    )(x_packed, w0_k, b0_k, w1_k, b1_k, wf_k, bf_k, wg_k, bg_k, m0, m1)

    return out_packed.reshape(N, C, H, W)                # free reshape to NCHW


def spatio_attention_reference(x, params, *, kernel_size=21, dilation=3):
    """Pure-JAX reference (NCHW), mirrors the PyTorch module exactly."""
    N, C, H, W = x.shape
    d_k = 2 * dilation - 1
    d_p = (d_k - 1) // 2
    dd_k = kernel_size // dilation + (kernel_size // dilation % 2 - 1)
    dd_p = dilation * (dd_k - 1) // 2
    w0, b0, w1, b1, w2, b2 = params

    w0_oihw = jnp.transpose(w0, (2, 0, 1))[:, None, :, :]              # (C,1,dk,dk)
    y = lax.conv_general_dilated(x, w0_oihw, (1, 1), [(d_p, d_p), (d_p, d_p)],
                                 dimension_numbers=('NCHW', 'OIHW', 'NCHW'),
                                 feature_group_count=C) + b0.reshape(1, C, 1, 1)
    w1_oihw = jnp.transpose(w1, (2, 0, 1))[:, None, :, :]
    y = lax.conv_general_dilated(y, w1_oihw, (1, 1), [(dd_p, dd_p), (dd_p, dd_p)],
                                 rhs_dilation=(dilation, dilation),
                                 dimension_numbers=('NCHW', 'OIHW', 'NCHW'),
                                 feature_group_count=C) + b1.reshape(1, C, 1, 1)
    z = jnp.einsum('nchw,cd->ndhw', y, w2) + b2.reshape(1, 2 * C, 1, 1)
    f, g = z[:, :C], z[:, C:]
    return jax.nn.sigmoid(g) * f


def init_params(key, dim, kernel_size=21, dilation=3):
    d_k = 2 * dilation - 1
    dd_k = kernel_size // dilation + (kernel_size // dilation % 2 - 1)
    ks = jax.random.split(key, 6)
    w0 = jax.random.normal(ks[0], (d_k, d_k, dim), jnp.float32) * 0.1
    b0 = jax.random.normal(ks[1], (1, dim), jnp.float32) * 0.1
    w1 = jax.random.normal(ks[2], (dd_k, dd_k, dim), jnp.float32) * 0.1
    b1 = jax.random.normal(ks[3], (1, dim), jnp.float32) * 0.1
    w2 = jax.random.normal(ks[4], (dim, 2 * dim), jnp.float32) * 0.1
    b2 = jax.random.normal(ks[5], (1, 2 * dim), jnp.float32) * 0.1
    return (w0, b0, w1, b1, w2, b2)


if __name__ == "__main__":
    N, C, H, W = 2, 4, 16, 16
    kernel_size, dilation = 21, 3

    key = jax.random.PRNGKey(0)
    kx, kp = jax.random.split(key)
    x = jax.random.normal(kx, (N, C, H, W), jnp.float32)
    params = init_params(kp, C, kernel_size, dilation)

    out = spatio_attention_pallas(x, params, kernel_size=kernel_size, dilation=dilation)
    out = jax.block_until_ready(out)

    ref = spatio_attention_reference(x, params, kernel_size=kernel_size, dilation=dilation)
    ref = jax.block_until_ready(ref)

    assert out.shape == (N, C, H, W)
    err = jnp.max(jnp.abs(out - ref))
    assert jnp.allclose(out, ref, atol=1e-4, rtol=1e-4), f"max abs err {err}"
    print("KERNEL_OK")
</pallas_src>

<mosaic_0001>
module attributes {stable_mosaic.version = 11 : i64} {
  func.func @_lka_kernel(%arg0: i32, %arg1: memref<1x8x256xf32, #tpu.memory_space<vmem>>, %arg2: memref<8x25xf32, #tpu.memory_space<vmem>>, %arg3: memref<8x1xf32, #tpu.memory_space<vmem>>, %arg4: memref<8x49xf32, #tpu.memory_space<vmem>>, %arg5: memref<8x1xf32, #tpu.memory_space<vmem>>, %arg6: memref<8x8xf32, #tpu.memory_space<vmem>>, %arg7: memref<8x1xf32, #tpu.memory_space<vmem>>, %arg8: memref<8x8xf32, #tpu.memory_space<vmem>>, %arg9: memref<8x1xf32, #tpu.memory_space<vmem>>, %arg10: memref<5x256xf32, #tpu.memory_space<vmem>>, %arg11: memref<7x256xf32, #tpu.memory_space<vmem>>, %arg12: memref<1x8x256xf32, #tpu.memory_space<vmem>>, %arg13: memref<8x432xf32, #tpu.memory_space<vmem>>, %arg14: memref<8x672xf32, #tpu.memory_space<vmem>>) attributes {dimension_semantics = [#tpu.dimension_semantics<parallel>], iteration_bounds = array<i64: 1>, scalar_prefetch = 0 : i64, scratch_operands = 2 : i64, tpu.core_type = #tpu.core_type<tc>, window_params = [{transform_indices = @transform_0, window_bounds = array<i64: 1, 8, 256>}, {pipeline_mode = #tpu.pipeline_mode<synchronous>, transform_indices = @transform_1, window_bounds = array<i64: 8, 25>}, {pipeline_mode = #tpu.pipeline_mode<synchronous>, transform_indices = @transform_2, window_bounds = array<i64: 8, 1>}, {pipeline_mode = #tpu.pipeline_mode<synchronous>, transform_indices = @transform_3, window_bounds = array<i64: 8, 49>}, {pipeline_mode = #tpu.pipeline_mode<synchronous>, transform_indices = @transform_4, window_bounds = array<i64: 8, 1>}, {pipeline_mode = #tpu.pipeline_mode<synchronous>, transform_indices = @transform_5, window_bounds = array<i64: 8, 8>}, {pipeline_mode = #tpu.pipeline_mode<synchronous>, transform_indices = @transform_6, window_bounds = array<i64: 8, 1>}, {pipeline_mode = #tpu.pipeline_mode<synchronous>, transform_indices = @transform_7, window_bounds = array<i64: 8, 8>}, {pipeline_mode = #tpu.pipeline_mode<synchronous>, transform_indices = @transform_8, window_bounds = array<i64: 8, 1>}, {pipeline_mode = #tpu.pipeline_mode<synchronous>, transform_indices = @transform_9, window_bounds = array<i64: 5, 256>}, {pipeline_mode = #tpu.pipeline_mode<synchronous>, transform_indices = @transform_10, window_bounds = array<i64: 7, 256>}, {transform_indices = @transform_11, window_bounds = array<i64: 1, 8, 256>}]} {
    %cst = arith.constant 0.000000e+00 : f32
    %0 = vector.broadcast %cst : f32 to vector<8x128xf32>
    %c0 = arith.constant 0 : index
    %c0_0 = arith.constant 0 : index
    %1 = vector.load %arg13[%c0, %c0_0] : memref<8x432xf32, #tpu.memory_space<vmem>>, vector<8x128xf32>
    tpu.vector_store %arg13[%c0, %c0_0], %0 {strides = array<i32>} : memref<8x432xf32, #tpu.memory_space<vmem>>, vector<8x128xf32>,
    %cst_1 = arith.constant 0.000000e+00 : f32
    %2 = vector.broadcast %cst_1 : f32 to vector<8x48xf32>
    %c0_2 = arith.constant 0 : index
    %c384 = arith.constant 384 : index
    %3 = vector.load %arg13[%c0_2, %c384] : memref<8x432xf32, #tpu.memory_space<vmem>>, vector<8x48xf32>
    tpu.vector_store %arg13[%c0_2, %c384], %2 {strides = array<i32>} : memref<8x432xf32, #tpu.memory_space<vmem>>, vector<8x48xf32>,
    %c0_3 = arith.constant 0 : index
    %c0_4 = arith.constant 0 : index
    %c0_5 = arith.constant 0 : index
    %4 = vector.load %arg1[%c0_3, %c0_4, %c0_5] : memref<1x8x256xf32, #tpu.memory_space<vmem>>, vector<1x8x256xf32>
    %5 = vector.shape_cast %4 : vector<1x8x256xf32> to vector<8x256xf32>
    %c0_6 = arith.constant 0 : index
    %c128 = arith.constant 128 : index
    %6 = vector.load %arg13[%c0_6, %c128] : memref<8x432xf32, #tpu.memory_space<vmem>>, vector<8x256xf32>
    tpu.vector_store %arg13[%c0_6, %c128], %5 {strides = array<i32>} : memref<8x432xf32, #tpu.memory_space<vmem>>, vector<8x256xf32>,
    %c0_7 = arith.constant 0 : index
    %c0_8 = arith.constant 0 : index
    %7 = vector.load %arg13[%c0_7, %c0_8] : memref<8x432xf32, #tpu.memory_space<vmem>>, vector<8x432xf32>
    %c0_9 = arith.constant 0 : index
    %c0_10 = arith.constant 0 : index
    %8 = vector.load %arg2[%c0_9, %c0_10] : memref<8x25xf32, #tpu.memory_space<vmem>>, vector<8x25xf32>
    %c0_11 = arith.constant 0 : index
    %c0_12 = arith.constant 0 : index
    %9 = vector.load %arg10[%c0_11, %c0_12] : memref<5x256xf32, #tpu.memory_space<vmem>>, vector<5x256xf32>
    %cst_13 = arith.constant 0.000000e+00 : f32
    %10 = vector.broadcast %cst_13 : f32 to vector<8x256xf32>
    %cst_14 = arith.constant 0.000000e+00 : f32
    %11 = vector.broadcast %cst_14 : f32 to vector<8x256xf32>
    %12 = vector.extract_strided_slice %7 {offsets = [0, 94], sizes = [8, 256], strides = [1, 1]} : vector<8x432xf32> to vector<8x256xf32>
    %13 = vector.extract_strided_slice %8 {offsets = [0, 0], sizes = [8, 1], strides = [1, 1]} : vector<8x25xf32> to vector<8x1xf32>
    %14 = vector.broadcast %13 : vector<8x1xf32> to vector<8x256xf32>
    %15 = arith.mulf %12, %14 : vector<8x256xf32>
    %16 = arith.addf %11, %15 : vector<8x256xf32>
    %17 = vector.extract_strided_slice %7 {offsets = [0, 110], sizes = [8, 256], strides = [1, 1]} : vector<8x432xf32> to vector<8x256xf32>
    %18 = vector.extract_strided_slice %8 {offsets = [0, 5], sizes = [8, 1], strides = [1, 1]} : vector<8x25xf32> to vector<8x1xf32>
    %19 = vector.broadcast %18 : vector<8x1xf32> to vector<8x256xf32>
    %20 = arith.mulf %17, %19 : vector<8x256xf32>
    %21 = arith.addf %16, %20 : vector<8x256xf32>
    %22 = vector.extract_strided_slice %7 {offsets = [0, 126], sizes = [8, 256], strides = [1, 1]} : vector<8x432xf32> to vector<8x256xf32>
    %23 = vector.extract_strided_slice %8 {offsets = [0, 10], sizes = [8, 1], strides = [1, 1]} : vector<8x25xf32> to vector<8x1xf32>
    %24 = vector.broadcast %23 : vector<8x1xf32> to vector<8x256xf32>
    %25 = arith.mulf %22, %24 : vector<8x256xf32>
    %26 = arith.addf %21, %25 : vector<8x256xf32>
    %27 = vector.extract_strided_slice %7 {offsets = [0, 142], sizes = [8, 256], strides = [1, 1]} : vector<8x432xf32> to vector<8x256xf32>
    %28 = vector.extract_strided_slice %8 {offsets = [0, 15], sizes = [8, 1], strides = [1, 1]} : vector<8x25xf32> to vector<8x1xf32>
    %29 = vector.broadcast %28 : vector<8x1xf32> to vector<8x256xf32>
    %30 = arith.mulf %27, %29 : vector<8x256xf32>
    %31 = arith.addf %26, %30 : vector<8x256xf32>
    %32 = vector.extract_strided_slice %7 {offsets = [0, 158], sizes = [8, 256], strides = [1, 1]} : vector<8x432xf32> to vector<8x256xf32>
    %33 = vector.extract_strided_slice %8 {offsets = [0, 20], sizes = [8, 1], strides = [1, 1]} : vector<8x25xf32> to vector<8x1xf32>
    %34 = vector.broadcast %33 : vector<8x1xf32> to vector<8x256xf32>
    %35 = arith.mulf %32, %34 : vector<8x256xf32>
    %36 = arith.addf %31, %35 : vector<8x256xf32>
    %37 = vector.extract_strided_slice %9 {offsets = [0, 0], sizes = [1, 256], strides = [1, 1]} : vector<5x256xf32> to vector<1x256xf32>
    %38 = vector.broadcast %37 : vector<1x256xf32> to vector<8x256xf32>
    %39 = arith.mulf %36, %38 : vector<8x256xf32>
    %40 = arith.addf %10, %39 : vector<8x256xf32>
    %cst_15 = arith.constant 0.000000e+00 : f32
    %41 = vector.broadcast %cst_15 : f32 to vector<8x256xf32>
    %42 = vector.extract_strided_slice %7 {offsets = [0, 95], sizes = [8, 256], strides = [1, 1]} : vector<8x432xf32> to vector<8x256xf32>
    %43 = vector.extract_strided_slice %8 {offsets = [0, 1], sizes = [8, 1], strides = [1, 1]} : vector<8x25xf32> to vector<8x1xf32>
    %44 = vector.broadcast %43 : vector<8x1xf32> to vector<8x256xf32>
    %45 = arith.mulf %42, %44 : vector<8x256xf32>
    %46 = arith.addf %41, %45 : vector<8x256xf32>
    %47 = vector.extract_strided_slice %7 {offsets = [0, 111], sizes = [8, 256], strides = [1, 1]} : vector<8x432xf32> to vector<8x256xf32>
    %48 = vector.extract_strided_slice %8 {offsets = [0, 6], sizes = [8, 1], strides = [1, 1]} : vector<8x25xf32> to vector<8x1xf32>
    %49 = vector.broadcast %48 : vector<8x1xf32> to vector<8x256xf32>
    %50 = arith.mulf %47, %49 : vector<8x256xf32>
    %51 = arith.addf %46, %50 : vector<8x256xf32>
    %52 = vector.extract_strided_slice %7 {offsets = [0, 127], sizes = [8, 256], strides = [1, 1]} : vector<8x432xf32> to vector<8x256xf32>
    %53 = vector.extract_strided_slice %8 {offsets = [0, 11], sizes = [8, 1], strides = [1, 1]} : vector<8x25xf32> to vector<8x1xf32>
    %54 = vector.broadcast %53 : vector<8x1xf32> to vector<8x256xf32>
    %55 = arith.mulf %52, %54 : vector<8x256xf32>
    %56 = arith.addf %51, %55 : vector<8x256xf32>
    %57 = vector.extract_strided_slice %7 {offsets = [0, 143], sizes = [8, 256], strides = [1, 1]} : vector<8x432xf32> to vector<8x256xf32>
    %58 = vector.extract_strided_slice %8 {offsets = [0, 16], sizes = [8, 1], strides = [1, 1]} : vector<8x25xf32> to vector<8x1xf32>
    %59 = vector.broadcast %58 : vector<8x1xf32> to vector<8x256xf32>
    %60 = arith.mulf %57, %59 : vector<8x256xf32>
    %61 = arith.addf %56, %60 : vector<8x256xf32>
    %62 = vector.extract_strided_slice %7 {offsets = [0, 159], sizes = [8, 256], strides = [1, 1]} : vector<8x432xf32> to vector<8x256xf32>
    %63 = vector.extract_strided_slice %8 {offsets = [0, 21], sizes = [8, 1], strides = [1, 1]} : vector<8x25xf32> to vector<8x1xf32>
    %64 = vector.broadcast %63 : vector<8x1xf32> to vector<8x256xf32>
    %65 = arith.mulf %62, %64 : vector<8x256xf32>
    %66 = arith.addf %61, %65 : vector<8x256xf32>
    %67 = vector.extract_strided_slice %9 {offsets = [1, 0], sizes = [1, 256], strides = [1, 1]} : vector<5x256xf32> to vector<1x256xf32>
    %68 = vector.broadcast %67 : vector<1x256xf32> to vector<8x256xf32>
    %69 = arith.mulf %66, %68 : vector<8x256xf32>
    %70 = arith.addf %40, %69 : vector<8x256xf32>
    %cst_16 = arith.constant 0.000000e+00 : f32
    %71 = vector.broadcast %cst_16 : f32 to vector<8x256xf32>
    %72 = vector.extract_strided_slice %7 {offsets = [0, 96], sizes = [8, 256], strides = [1, 1]} : vector<8x432xf32> to vector<8x256xf32>
    %73 = vector.extract_strided_slice %8 {offsets = [0, 2], sizes = [8, 1], strides = [1, 1]} : vector<8x25xf32> to vector<8x1xf32>
    %74 = vector.broadcast %73 : vector<8x1xf32> to vector<8x256xf32>
    %75 = arith.mulf %72, %74 : vector<8x256xf32>
    %76 = arith.addf %71, %75 : vector<8x256xf32>
    %77 = vector.extract_strided_slice %7 {offsets = [0, 112], sizes = [8, 256], strides = [1, 1]} : vector<8x432xf32> to vector<8x256xf32>
    %78 = vector.extract_strided_slice %8 {offsets = [0, 7], sizes = [8, 1], strides = [1, 1]} : vector<8x25xf32> to vector<8x1xf32>
    %79 = vector.broadcast %78 : vector<8x1xf32> to vector<8x256xf32>
    %80 = arith.mulf %77, %79 : vector<8x256xf32>
    %81 = arith.addf %76, %80 : vector<8x256xf32>
    %82 = vector.extract_strided_slice %7 {offsets = [0, 128], sizes = [8, 256], strides = [1, 1]} : vector<8x432xf32> to vector<8x256xf32>
    %83 = vector.extract_strided_slice %8 {offsets = [0, 12], sizes = [8, 1], strides = [1, 1]} : vector<8x25xf32> to vector<8x1xf32>
    %84 = vector.broadcast %83 : vector<8x1xf32> to vector<8x256xf32>
    %85 = arith.mulf %82, %84 : vector<8x256xf32>
    %86 = arith.addf %81, %85 : vector<8x256xf32>
    %87 = vector.extract_strided_slice %7 {offsets = [0, 144], sizes = [8, 256], strides = [1, 1]} : vector<8x432xf32> to vector<8x256xf32>
    %88 = vector.extract_strided_slice %8 {offsets = [0, 17], sizes = [8, 1], strides = [1, 1]} : vector<8x25xf32> to vector<8x1xf32>
    %89 = vector.broadcast %88 : vector<8x1xf32> to vector<8x256xf32>
    %90 = arith.mulf %87, %89 : vector<8x256xf32>
    %91 = arith.addf %86, %90 : vector<8x256xf32>
    %92 = vector.extract_strided_slice %7 {offsets = [0, 160], sizes = [8, 256], strides = [1, 1]} : vector<8x432xf32> to vector<8x256xf32>
    %93 = vector.extract_strided_slice %8 {offsets = [0, 22], sizes = [8, 1], strides = [1, 1]} : vector<8x25xf32> to vector<8x1xf32>
    %94 = vector.broadcast %93 : vector<8x1xf32> to vector<8x256xf32>
    %95 = arith.mulf %92, %94 : vector<8x256xf32>
    %96 = arith.addf %91, %95 : vector<8x256xf32>
    %97 = arith.addf %70, %96 : vector<8x256xf32>
    %cst_17 = arith.constant 0.000000e+00 : f32
    %98 = vector.broadcast %cst_17 : f32 to vector<8x256xf32>
    %99 = vector.extract_strided_slice %7 {offsets = [0, 97], sizes = [8, 256], strides = [1, 1]} : vector<8x432xf32> to vector<8x256xf32>
    %100 = vector.extract_strided_slice %8 {offsets = [0, 3], sizes = [8, 1], strides = [1, 1]} : vector<8x25xf32> to vector<8x1xf32>
    %101 = vector.broadcast %100 : vector<8x1xf32> to vector<8x256xf32>
    %102 = arith.mulf %99, %101 : vector<8x256xf32>
    %103 = arith.addf %98, %102 : vector<8x256xf32>
    %104 = vector.extract_strided_slice %7 {offsets = [0, 113], sizes = [8, 256], strides = [1, 1]} : vector<8x432xf32> to vector<8x256xf32>
    %105 = vector.extract_strided_slice %8 {offsets = [0, 8], sizes = [8, 1], strides = [1, 1]} : vector<8x25xf32> to vector<8x1xf32>
    %106 = vector.broadcast %105 : vector<8x1xf32> to vector<8x256xf32>
    %107 = arith.mulf %104, %106 : vector<8x256xf32>
    %108 = arith.addf %103, %107 : vector<8x256xf32>
    %109 = vector.extract_strided_slice %7 {offsets = [0, 129], sizes = [8, 256], strides = [1, 1]} : vector<8x432xf32> to vector<8x256xf32>
    %110 = vector.extract_strided_slice %8 {offsets = [0, 13], sizes = [8, 1], strides = [1, 1]} : vector<8x25xf32> to vector<8x1xf32>
    %111 = vector.broadcast %110 : vector<8x1xf32> to vector<8x256xf32>
    %112 = arith.mulf %109, %111 : vector<8x256xf32>
    %113 = arith.addf %108, %112 : vector<8x256xf32>
    %114 = vector.extract_strided_slice %7 {offsets = [0, 145], sizes = [8, 256], strides = [1, 1]} : vector<8x432xf32> to vector<8x256xf32>
    %115 = vector.extract_strided_slice %8 {offsets = [0, 18], sizes = [8, 1], strides = [1, 1]} : vector<8x25xf32> to vector<8x1xf32>
    %116 = vector.broadcast %115 : vector<8x1xf32> to vector<8x256xf32>
    %117 = arith.mulf %114, %116 : vector<8x256xf32>
    %118 = arith.addf %113, %117 : vector<8x256xf32>
    %119 = vector.extract_strided_slice %7 {offsets = [0, 161], sizes = [8, 256], strides = [1, 1]} : vector<8x432xf32> to vector<8x256xf32>
    %120 = vector.extract_strided_slice %8 {offsets = [0, 23], sizes = [8, 1], strides = [1, 1]} : vector<8x25xf32> to vector<8x1xf32>
    %121 = vector.broadcast %120 : vector<8x1xf32> to vector<8x256xf32>
    %122 = arith.mulf %119, %121 : vector<8x256xf32>
    %123 = arith.addf %118, %122 : vector<8x256xf32>
    %124 = vector.extract_strided_slice %9 {offsets = [3, 0], sizes = [1, 256], strides = [1, 1]} : vector<5x256xf32> to vector<1x256xf32>
    %125 = vector.broadcast %124 : vector<1x256xf32> to vector<8x256xf32>
    %126 = arith.mulf %123, %125 : vector<8x256xf32>
    %127 = arith.addf %97, %126 : vector<8x256xf32>
    %cst_18 = arith.constant 0.000000e+00 : f32
    %128 = vector.broadcast %cst_18 : f32 to vector<8x256xf32>
    %129 = vector.extract_strided_slice %7 {offsets = [0, 98], sizes = [8, 256], strides = [1, 1]} : vector<8x432xf32> to vector<8x256xf32>
    %130 = vector.extract_strided_slice %8 {offsets = [0, 4], sizes = [8, 1], strides = [1, 1]} : vector<8x25xf32> to vector<8x1xf32>
    %131 = vector.broadcast %130 : vector<8x1xf32> to vector<8x256xf32>
    %132 = arith.mulf %129, %131 : vector<8x256xf32>
    %133 = arith.addf %128, %132 : vector<8x256xf32>
    %134 = vector.extract_strided_slice %7 {offsets = [0, 114], sizes = [8, 256], strides = [1, 1]} : vector<8x432xf32> to vector<8x256xf32>
    %135 = vector.extract_strided_slice %8 {offsets = [0, 9], sizes = [8, 1], strides = [1, 1]} : vector<8x25xf32> to vector<8x1xf32>
    %136 = vector.broadcast %135 : vector<8x1xf32> to vector<8x256xf32>
    %137 = arith.mulf %134, %136 : vector<8x256xf32>
    %138 = arith.addf %133, %137 : vector<8x256xf32>
    %139 = vector.extract_strided_slice %7 {offsets = [0, 130], sizes = [8, 256], strides = [1, 1]} : vector<8x432xf32> to vector<8x256xf32>
    %140 = vector.extract_strided_slice %8 {offsets = [0, 14], sizes = [8, 1], strides = [1, 1]} : vector<8x25xf32> to vector<8x1xf32>
    %141 = vector.broadcast %140 : vector<8x1xf32> to vector<8x256xf32>
    %142 = arith.mulf %139, %141 : vector<8x256xf32>
    %143 = arith.addf %138, %142 : vector<8x256xf32>
    %144 = vector.extract_strided_slice %7 {offsets = [0, 146], sizes = [8, 256], strides = [1, 1]} : vector<8x432xf32> to vector<8x256xf32>
    %145 = vector.extract_strided_slice %8 {offsets = [0, 19], sizes = [8, 1], strides = [1, 1]} : vector<8x25xf32> to vector<8x1xf32>
    %146 = vector.broadcast %145 : vector<8x1xf32> to vector<8x256xf32>
    %147 = arith.mulf %144, %146 : vector<8x256xf32>
    %148 = arith.addf %143, %147 : vector<8x256xf32>
    %149 = vector.extract_strided_slice %7 {offsets = [0, 162], sizes = [8, 256], strides = [1, 1]} : vector<8x432xf32> to vector<8x256xf32>
    %150 = vector.extract_strided_slice %8 {offsets = [0, 24], sizes = [8, 1], strides = [1, 1]} : vector<8x25xf32> to vector<8x1xf32>
    %151 = vector.broadcast %150 : vector<8x1xf32> to vector<8x256xf32>
    %152 = arith.mulf %149, %151 : vector<8x256xf32>
    %153 = arith.addf %148, %152 : vector<8x256xf32>
    %154 = vector.extract_strided_slice %9 {offsets = [4, 0], sizes = [1, 256], strides = [1, 1]} : vector<5x256xf32> to vector<1x256xf32>
    %155 = vector.broadcast %154 : vector<1x256xf32> to vector<8x256xf32>
    %156 = arith.mulf %153, %155 : vector<8x256xf32>
    %157 = arith.addf %127, %156 : vector<8x256xf32>
    %c0_19 = arith.constant 0 : index
    %c0_20 = arith.constant 0 : index
    %158 = vector.load %arg3[%c0_19, %c0_20] : memref<8x1xf32, #tpu.memory_space<vmem>>, vector<8x1xf32>
    %159 = vector.broadcast %158 : vector<8x1xf32> to vector<8x256xf32>
    %160 = arith.addf %157, %159 : vector<8x256xf32>
    %cst_21 = arith.constant 0.000000e+00 : f32
    %161 = vector.broadcast %cst_21 : f32 to vector<8x256xf32>
    %c0_22 = arith.constant 0 : index
    %c0_23 = arith.constant 0 : index
    %162 = vector.load %arg14[%c0_22, %c0_23] : memref<8x672xf32, #tpu.memory_space<vmem>>, vector<8x256xf32>
    tpu.vector_store %arg14[%c0_22, %c0_23], %161 {strides = array<i32>} : memref<8x672xf32, #tpu.memory_space<vmem>>, vector<8x256xf32>,
    %cst_24 = arith.constant 0.000000e+00 : f32
    %163 = vector.broadcast %cst_24 : f32 to vector<8x160xf32>
    %c0_25 = arith.constant 0 : index
    %c512 = arith.constant 512 : index
    %164 = vector.load %arg14[%c0_25, %c512] : memref<8x672xf32, #tpu.memory_space<vmem>>, vector<8x160xf32>
    tpu.vector_store %arg14[%c0_25, %c512], %163 {strides = array<i32>} : memref<8x672xf32, #tpu.memory_space<vmem>>, vector<8x160xf32>,
    %c0_26 = arith.constant 0 : index
    %c256 = arith.constant 256 : index
    %165 = vector.load %arg14[%c0_26, %c256] : memref<8x672xf32, #tpu.memory_space<vmem>>, vector<8x256xf32>
    tpu.vector_store %arg14[%c0_26, %c256], %160 {strides = array<i32>} : memref<8x672xf32, #tpu.memory_space<vmem>>, vector<8x256xf32>,
    %c0_27 = arith.constant 0 : index
    %c0_28 = arith.constant 0 : index
    %166 = vector.load %arg14[%c0_27, %c0_28] : memref<8x672xf32, #tpu.memory_space<vmem>>, vector<8x672xf32>
    %c0_29 = arith.constant 0 : index
    %c0_30 = arith.constant 0 : index
    %167 = vector.load %arg4[%c0_29, %c0_30] : memref<8x49xf32, #tpu.memory_space<vmem>>, vector<8x49xf32>
    %c0_31 = arith.constant 0 : index
    %c0_32 = arith.constant 0 : index
    %168 = vector.load %arg11[%c0_31, %c0_32] : memref<7x256xf32, #tpu.memory_space<vmem>>, vector<7x256xf32>
    %cst_33 = arith.constant 0.000000e+00 : f32
    %169 = vector.broadcast %cst_33 : f32 to vector<8x256xf32>
    %cst_34 = arith.constant 0.000000e+00 : f32
    %170 = vector.broadcast %cst_34 : f32 to vector<8x256xf32>
    %171 = vector.extract_strided_slice %166 {offsets = [0, 103], sizes = [8, 256], strides = [1, 1]} : vector<8x672xf32> to vector<8x256xf32>
    %172 = vector.extract_strided_slice %167 {offsets = [0, 0], sizes = [8, 1], strides = [1, 1]} : vector<8x49xf32> to vector<8x1xf32>
    %173 = vector.broadcast %172 : vector<8x1xf32> to vector<8x256xf32>
    %174 = arith.mulf %171, %173 : vector<8x256xf32>
    %175 = arith.addf %170, %174 : vector<8x256xf32>
    %176 = vector.extract_strided_slice %166 {offsets = [0, 151], sizes = [8, 256], strides = [1, 1]} : vector<8x672xf32> to vector<8x256xf32>
    %177 = vector.extract_strided_slice %167 {offsets = [0, 7], sizes = [8, 1], strides = [1, 1]} : vector<8x49xf32> to vector<8x1xf32>
    %178 = vector.broadcast %177 : vector<8x1xf32> to vector<8x256xf32>
    %179 = arith.mulf %176, %178 : vector<8x256xf32>
    %180 = arith.addf %175, %179 : vector<8x256xf32>
    %181 = vector.extract_strided_slice %166 {offsets = [0, 199], sizes = [8, 256], strides = [1, 1]} : vector<8x672xf32> to vector<8x256xf32>
    %182 = vector.extract_strided_slice %167 {offsets = [0, 14], sizes = [8, 1], strides = [1, 1]} : vector<8x49xf32> to vector<8x1xf32>
    %183 = vector.broadcast %182 : vector<8x1xf32> to vector<8x256xf32>
    %184 = arith.mulf %181, %183 : vector<8x256xf32>
    %185 = arith.addf %180, %184 : vector<8x256xf32>
    %186 = vector.extract_strided_slice %166 {offsets = [0, 247], sizes = [8, 256], strides = [1, 1]} : vector<8x672xf32> to vector<8x256xf32>
    %187 = vector.extract_strided_slice %167 {offsets = [0, 21], sizes = [8, 1], strides = [1, 1]} : vector<8x49xf32> to vector<8x1xf32>
    %188 = vector.broadcast %187 : vector<8x1xf32> to vector<8x256xf32>
    %189 = arith.mulf %186, %188 : vector<8x256xf32>
    %190 = arith.addf %185, %189 : vector<8x256xf32>
    %191 = vector.extract_strided_slice %166 {offsets = [0, 295], sizes = [8, 256], strides = [1, 1]} : vector<8x672xf32> to vector<8x256xf32>
    %192 = vector.extract_strided_slice %167 {offsets = [0, 28], sizes = [8, 1], strides = [1, 1]} : vector<8x49xf32> to vector<8x1xf32>
    %193 = vector.broadcast %192 : vector<8x1xf32> to vector<8x256xf32>
    %194 = arith.mulf %191, %193 : vector<8x256xf32>
    %195 = arith.addf %190, %194 : vector<8x256xf32>
    %196 = vector.extract_strided_slice %166 {offsets = [0, 343], sizes = [8, 256], strides = [1, 1]} : vector<8x672xf32> to vector<8x256xf32>
    %197 = vector.extract_strided_slice %167 {offsets = [0, 35], sizes = [8, 1], strides = [1, 1]} : vector<8x49xf32> to vector<8x1xf32>
    %198 = vector.broadcast %197 : vector<8x1xf32> to vector<8x256xf32>
    %199 = arith.mulf %196, %198 : vector<8x256xf32>
    %200 = arith.addf %195, %199 : vector<8x256xf32>
    %201 = vector.extract_strided_slice %166 {offsets = [0, 391], sizes = [8, 256], strides = [1, 1]} : vector<8x672xf32> to vector<8x256xf32>
    %202 = vector.extract_strided_slice %167 {offsets = [0, 42], sizes = [8, 1], strides = [1, 1]} : vector<8x49xf32> to vector<8x1xf32>
    %203 = vector.broadcast %202 : vector<8x1xf32> to vector<8x256xf32>
    %204 = arith.mulf %201, %203 : vector<8x256xf32>
    %205 = arith.addf %200, %204 : vector<8x256xf32>
    %206 = vector.extract_strided_slice %168 {offsets = [0, 0], sizes = [1, 256], strides = [1, 1]} : vector<7x256xf32> to vector<1x256xf32>
    %207 = vector.broadcast %206 : vector<1x256xf32> to vector<8x256xf32>
    %208 = arith.mulf %205, %207 : vector<8x256xf32>
    %209 = arith.addf %169, %208 : vector<8x256xf32>
    %cst_35 = arith.constant 0.000000e+00 : f32
    %210 = vector.broadcast %cst_35 : f32 to vector<8x256xf32>
    %211 = vector.extract_strided_slice %166 {offsets = [0, 106], sizes = [8, 256], strides = [1, 1]} : vector<8x672xf32> to vector<8x256xf32>
    %212 = vector.extract_strided_slice %167 {offsets = [0, 1], sizes = [8, 1], strides = [1, 1]} : vector<8x49xf32> to vector<8x1xf32>
    %213 = vector.broadcast %212 : vector<8x1xf32> to vector<8x256xf32>
    %214 = arith.mulf %211, %213 : vector<8x256xf32>
    %215 = arith.addf %210, %214 : vector<8x256xf32>
    %216 = vector.extract_strided_slice %166 {offsets = [0, 154], sizes = [8, 256], strides = [1, 1]} : vector<8x672xf32> to vector<8x256xf32>
    %217 = vector.extract_strided_slice %167 {offsets = [0, 8], sizes = [8, 1], strides = [1, 1]} : vector<8x49xf32> to vector<8x1xf32>
    %218 = vector.broadcast %217 : vector<8x1xf32> to vector<8x256xf32>
    %219 = arith.mulf %216, %218 : vector<8x256xf32>
    %220 = arith.addf %215, %219 : vector<8x256xf32>
    %221 = vector.extract_strided_slice %166 {offsets = [0, 202], sizes = [8, 256], strides = [1, 1]} : vector<8x672xf32> to vector<8x256xf32>
    %222 = vector.extract_strided_slice %167 {offsets = [0, 15], sizes = [8, 1], strides = [1, 1]} : vector<8x49xf32> to vector<8x1xf32>
    %223 = vector.broadcast %222 : vector<8x1xf32> to vector<8x256xf32>
    %224 = arith.mulf %221, %223 : vector<8x256xf32>
    %225 = arith.addf %220, %224 : vector<8x256xf32>
    %226 = vector.extract_strided_slice %166 {offsets = [0, 250], sizes = [8, 256], strides = [1, 1]} : vector<8x672xf32> to vector<8x256xf32>
    %227 = vector.extract_strided_slice %167 {offsets = [0, 22], sizes = [8, 1], strides = [1, 1]} : vector<8x49xf32> to vector<8x1xf32>
    %228 = vector.broadcast %227 : vector<8x1xf32> to vector<8x256xf32>
    %229 = arith.mulf %226, %228 : vector<8x256xf32>
    %230 = arith.addf %225, %229 : vector<8x256xf32>
    %231 = vector.extract_strided_slice %166 {offsets = [0, 298], sizes = [8, 256], strides = [1, 1]} : vector<8x672xf32> to vector<8x256xf32>
    %232 = vector.extract_strided_slice %167 {offsets = [0, 29], sizes = [8, 1], strides = [1, 1]} : vector<8x49xf32> to vector<8x1xf32>
    %233 = vector.broadcast %232 : vector<8x1xf32> to vector<8x256xf32>
    %234 = arith.mulf %231, %233 : vector<8x256xf32>
    %235 = arith.addf %230, %234 : vector<8x256xf32>
    %236 = vector.extract_strided_slice %166 {offsets = [0, 346], sizes = [8, 256], strides = [1, 1]} : vector<8x672xf32> to vector<8x256xf32>
    %237 = vector.extract_strided_slice %167 {offsets = [0, 36], sizes = [8, 1], strides = [1, 1]} : vector<8x49xf32> to vector<8x1xf32>
    %238 = vector.broadcast %237 : vector<8x1xf32> to vector<8x256xf32>
    %239 = arith.mulf %236, %238 : vector<8x256xf32>
    %240 = arith.addf %235, %239 : vector<8x256xf32>
    %241 = vector.extract_strided_slice %166 {offsets = [0, 394], sizes = [8, 256], strides = [1, 1]} : vector<8x672xf32> to vector<8x256xf32>
    %242 = vector.extract_strided_slice %167 {offsets = [0, 43], sizes = [8, 1], strides = [1, 1]} : vector<8x49xf32> to vector<8x1xf32>
    %243 = vector.broadcast %242 : vector<8x1xf32> to vector<8x256xf32>
    %244 = arith.mulf %241, %243 : vector<8x256xf32>
    %245 = arith.addf %240, %244 : vector<8x256xf32>
    %246 = vector.extract_strided_slice %168 {offsets = [1, 0], sizes = [1, 256], strides = [1, 1]} : vector<7x256xf32> to vector<1x256xf32>
    %247 = vector.broadcast %246 : vector<1x256xf32> to vector<8x256xf32>
    %248 = arith.mulf %245, %247 : vector<8x256xf32>
    %249 = arith.addf %209, %248 : vector<8x256xf32>
    %cst_36 = arith.constant 0.000000e+00 : f32
    %250 = vector.broadcast %cst_36 : f32 to vector<8x256xf32>
    %251 = vector.extract_strided_slice %166 {offsets = [0, 109], sizes = [8, 256], strides = [1, 1]} : vector<8x672xf32> to vector<8x256xf32>
    %252 = vector.extract_strided_slice %167 {offsets = [0, 2], sizes = [8, 1], strides = [1, 1]} : vector<8x49xf32> to vector<8x1xf32>
    %253 = vector.broadcast %252 : vector<8x1xf32> to vector<8x256xf32>
    %254 = arith.mulf %251, %253 : vector<8x256xf32>
    %255 = arith.addf %250, %254 : vector<8x256xf32>
    %256 = vector.extract_strided_slice %166 {offsets = [0, 157], sizes = [8, 256], strides = [1, 1]} : vector<8x672xf32> to vector<8x256xf32>
    %257 = vector.extract_strided_slice %167 {offsets = [0, 9], sizes = [8, 1], strides = [1, 1]} : vector<8x49xf32> to vector<8x1xf32>
    %258 = vector.broadcast %257 : vector<8x1xf32> to vector<8x256xf32>
    %259 = arith.mulf %256, %258 : vector<8x256xf32>
    %260 = arith.addf %255, %259 : vector<8x256xf32>
    %261 = vector.extract_strided_slice %166 {offsets = [0, 205], sizes = [8, 256], strides = [1, 1]} : vector<8x672xf32> to vector<8x256xf32>
    %262 = vector.extract_strided_slice %167 {offsets = [0, 16], sizes = [8, 1], strides = [1, 1]} : vector<8x49xf32> to vector<8x1xf32>
    %263 = vector.broadcast %262 : vector<8x1xf32> to vector<8x256xf32>
    %264 = arith.mulf %261, %263 : vector<8x256xf32>
    %265 = arith.addf %260, %264 : vector<8x256xf32>
    %266 = vector.extract_strided_slice %166 {offsets = [0, 253], sizes = [8, 256], strides = [1, 1]} : vector<8x672xf32> to vector<8x256xf32>
    %267 = vector.extract_strided_slice %167 {offsets = [0, 23], sizes = [8, 1], strides = [1, 1]} : vector<8x49xf32> to vector<8x1xf32>
    %268 = vector.broadcast %267 : vector<8x1xf32> to vector<8x256xf32>
    %269 = arith.mulf %266, %268 : vector<8x256xf32>
    %270 = arith.addf %265, %269 : vector<8x256xf32>
    %271 = vector.extract_strided_slice %166 {offsets = [0, 301], sizes = [8, 256], strides = [1, 1]} : vector<8x672xf32> to vector<8x256xf32>
    %272 = vector.extract_strided_slice %167 {offsets = [0, 30], sizes = [8, 1], strides = [1, 1]} : vector<8x49xf32> to vector<8x1xf32>
    %273 = vector.broadcast %272 : vector<8x1xf32> to vector<8x256xf32>
    %274 = arith.mulf %271, %273 : vector<8x256xf32>
    %275 = arith.addf %270, %274 : vector<8x256xf32>
    %276 = vector.extract_strided_slice %166 {offsets = [0, 349], sizes = [8, 256], strides = [1, 1]} : vector<8x672xf32> to vector<8x256xf32>
    %277 = vector.extract_strided_slice %167 {offsets = [0, 37], sizes = [8, 1], strides = [1, 1]} : vector<8x49xf32> to vector<8x1xf32>
    %278 = vector.broadcast %277 : vector<8x1xf32> to vector<8x256xf32>
    %279 = arith.mulf %276, %278 : vector<8x256xf32>
    %280 = arith.addf %275, %279 : vector<8x256xf32>
    %281 = vector.extract_strided_slice %166 {offsets = [0, 397], sizes = [8, 256], strides = [1, 1]} : vector<8x672xf32> to vector<8x256xf32>
    %282 = vector.extract_strided_slice %167 {offsets = [0, 44], sizes = [8, 1], strides = [1, 1]} : vector<8x49xf32> to vector<8x1xf32>
    %283 = vector.broadcast %282 : vector<8x1xf32> to vector<8x256xf32>
    %284 = arith.mulf %281, %283 : vector<8x256xf32>
    %285 = arith.addf %280, %284 : vector<8x256xf32>
    %286 = vector.extract_strided_slice %168 {offsets = [2, 0], sizes = [1, 256], strides = [1, 1]} : vector<7x256xf32> to vector<1x256xf32>
    %287 = vector.broadcast %286 : vector<1x256xf32> to vector<8x256xf32>
    %288 = arith.mulf %285, %287 : vector<8x256xf32>
    %289 = arith.addf %249, %288 : vector<8x256xf32>
    %cst_37 = arith.constant 0.000000e+00 : f32
    %290 = vector.broadcast %cst_37 : f32 to vector<8x256xf32>
    %291 = vector.extract_strided_slice %166 {offsets = [0, 112], sizes = [8, 256], strides = [1, 1]} : vector<8x672xf32> to vector<8x256xf32>
    %292 = vector.extract_strided_slice %167 {offsets = [0, 3], sizes = [8, 1], strides = [1, 1]} : vector<8x49xf32> to vector<8x1xf32>
    %293 = vector.broadcast %292 : vector<8x1xf32> to vector<8x256xf32>
    %294 = arith.mulf %291, %293 : vector<8x256xf32>
    %295 = arith.addf %290, %294 : vector<8x256xf32>
    %296 = vector.extract_strided_slice %166 {offsets = [0, 160], sizes = [8, 256], strides = [1, 1]} : vector<8x672xf32> to vector<8x256xf32>
    %297 = vector.extract_strided_slice %167 {offsets = [0, 10], sizes = [8, 1], strides = [1, 1]} : vector<8x49xf32> to vector<8x1xf32>
    %298 = vector.broadcast %297 : vector<8x1xf32> to vector<8x256xf32>
    %299 = arith.mulf %296, %298 : vector<8x256xf32>
    %300 = arith.addf %295, %299 : vector<8x256xf32>
    %301 = vector.extract_strided_slice %166 {offsets = [0, 208], sizes = [8, 256], strides = [1, 1]} : vector<8x672xf32> to vector<8x256xf32>
    %302 = vector.extract_strided_slice %167 {offsets = [0, 17], sizes = [8, 1], strides = [1, 1]} : vector<8x49xf32> to vector<8x1xf32>
    %303 = vector.broadcast %302 : vector<8x1xf32> to vector<8x256xf32>
    %304 = arith.mulf %301, %303 : vector<8x256xf32>
    %305 = arith.addf %300, %304 : vector<8x256xf32>
    %306 = vector.extract_strided_slice %166 {offsets = [0, 256], sizes = [8, 256], strides = [1, 1]} : vector<8x672xf32> to vector<8x256xf32>
    %307 = vector.extract_strided_slice %167 {offsets = [0, 24], sizes = [8, 1], strides = [1, 1]} : vector<8x49xf32> to vector<8x1xf32>
    %308 = vector.broadcast %307 : vector<8x1xf32> to vector<8x256xf32>
    %309 = arith.mulf %306, %308 : vector<8x256xf32>
    %310 = arith.addf %305, %309 : vector<8x256xf32>
    %311 = vector.extract_strided_slice %166 {offsets = [0, 304], sizes = [8, 256], strides = [1, 1]} : vector<8x672xf32> to vector<8x256xf32>
    %312 = vector.extract_strided_slice %167 {offsets = [0, 31], sizes = [8, 1], strides = [1, 1]} : vector<8x49xf32> to vector<8x1xf32>
    %313 = vector.broadcast %312 : vector<8x1xf32> to vector<8x256xf32>
    %314 = arith.mulf %311, %313 : vector<8x256xf32>
    %315 = arith.addf %310, %314 : vector<8x256xf32>
    %316 = vector.extract_strided_slice %166 {offsets = [0, 352], sizes = [8, 256], strides = [1, 1]} : vector<8x672xf32> to vector<8x256xf32>
    %317 = vector.extract_strided_slice %167 {offsets = [0, 38], sizes = [8, 1], strides = [1, 1]} : vector<8x49xf32> to vector<8x1xf32>
    %318 = vector.broadcast %317 : vector<8x1xf32> to vector<8x256xf32>
    %319 = arith.mulf %316, %318 : vector<8x256xf32>
    %320 = arith.addf %315, %319 : vector<8x256xf32>
    %321 = vector.extract_strided_slice %166 {offsets = [0, 400], sizes = [8, 256], strides = [1, 1]} : vector<8x672xf32> to vector<8x256xf32>
    %322 = vector.extract_strided_slice %167 {offsets = [0, 45], sizes = [8, 1], strides = [1, 1]} : vector<8x49xf32> to vector<8x1xf32>
    %323 = vector.broadcast %322 : vector<8x1xf32> to vector<8x256xf32>
    %324 = arith.mulf %321, %323 : vector<8x256xf32>
    %325 = arith.addf %320, %324 : vector<8x256xf32>
    %326 = arith.addf %289, %325 : vector<8x256xf32>
    %cst_38 = arith.constant 0.000000e+00 : f32
    %327 = vector.broadcast %cst_38 : f32 to vector<8x256xf32>
    %328 = vector.extract_strided_slice %166 {offsets = [0, 115], sizes = [8, 256], strides = [1, 1]} : vector<8x672xf32> to vector<8x256xf32>
    %329 = vector.extract_strided_slice %167 {offsets = [0, 4], sizes = [8, 1], strides = [1, 1]} : vector<8x49xf32> to vector<8x1xf32>
    %330 = vector.broadcast %329 : vector<8x1xf32> to vector<8x256xf32>
    %331 = arith.mulf %328, %330 : vector<8x256xf32>
    %332 = arith.addf %327, %331 : vector<8x256xf32>
    %333 = vector.extract_strided_slice %166 {offsets = [0, 163], sizes = [8, 256], strides = [1, 1]} : vector<8x672xf32> to vector<8x256xf32>
    %334 = vector.extract_strided_slice %167 {offsets = [0, 11], sizes = [8, 1], strides = [1, 1]} : vector<8x49xf32> to vector<8x1xf32>
    %335 = vector.broadcast %334 : vector<8x1xf32> to vector<8x256xf32>
    %336 = arith.mulf %333, %335 : vector<8x256xf32>
    %337 = arith.addf %332, %336 : vector<8x256xf32>
    %338 = vector.extract_strided_slice %166 {offsets = [0, 211], sizes = [8, 256], strides = [1, 1]} : vector<8x672xf32> to vector<8x256xf32>
    %339 = vector.extract_strided_slice %167 {offsets = [0, 18], sizes = [8, 1], strides = [1, 1]} : vector<8x49xf32> to vector<8x1xf32>
    %340 = vector.broadcast %339 : vector<8x1xf32> to vector<8x256xf32>
    %341 = arith.mulf %338, %340 : vector<8x256xf32>
    %342 = arith.addf %337, %341 : vector<8x256xf32>
    %343 = vector.extract_strided_slice %166 {offsets = [0, 259], sizes = [8, 256], strides = [1, 1]} : vector<8x672xf32> to vector<8x256xf32>
    %344 = vector.extract_strided_slice %167 {offsets = [0, 25], sizes = [8, 1], strides = [1, 1]} : vector<8x49xf32> to vector<8x1xf32>
    %345 = vector.broadcast %344 : vector<8x1xf32> to vector<8x256xf32>
    %346 = arith.mulf %343, %345 : vector<8x256xf32>
    %347 = arith.addf %342, %346 : vector<8x256xf32>
    %348 = vector.extract_strided_slice %166 {offsets = [0, 307], sizes = [8, 256], strides = [1, 1]} : vector<8x672xf32> to vector<8x256xf32>
    %349 = vector.extract_strided_slice %167 {offsets = [0, 32], sizes = [8, 1], strides = [1, 1]} : vector<8x49xf32> to vector<8x1xf32>
    %350 = vector.broadcast %349 : vector<8x1xf32> to vector<8x256xf32>
    %351 = arith.mulf %348, %350 : vector<8x256xf32>
    %352 = arith.addf %347, %351 : vector<8x256xf32>
    %353 = vector.extract_strided_slice %166 {offsets = [0, 355], sizes = [8, 256], strides = [1, 1]} : vector<8x672xf32> to vector<8x256xf32>
    %354 = vector.extract_strided_slice %167 {offsets = [0, 39], sizes = [8, 1], strides = [1, 1]} : vector<8x49xf32> to vector<8x1xf32>
    %355 = vector.broadcast %354 : vector<8x1xf32> to vector<8x256xf32>
    %356 = arith.mulf %353, %355 : vector<8x256xf32>
    %357 = arith.addf %352, %356 : vector<8x256xf32>
    %358 = vector.extract_strided_slice %166 {offsets = [0, 403], sizes = [8, 256], strides = [1, 1]} : vector<8x672xf32> to vector<8x256xf32>
    %359 = vector.extract_strided_slice %167 {offsets = [0, 46], sizes = [8, 1], strides = [1, 1]} : vector<8x49xf32> to vector<8x1xf32>
    %360 = vector.broadcast %359 : vector<8x1xf32> to vector<8x256xf32>
    %361 = arith.mulf %358, %360 : vector<8x256xf32>
    %362 = arith.addf %357, %361 : vector<8x256xf32>
    %363 = vector.extract_strided_slice %168 {offsets = [4, 0], sizes = [1, 256], strides = [1, 1]} : vector<7x256xf32> to vector<1x256xf32>
    %364 = vector.broadcast %363 : vector<1x256xf32> to vector<8x256xf32>
    %365 = arith.mulf %362, %364 : vector<8x256xf32>
    %366 = arith.addf %326, %365 : vector<8x256xf32>
    %cst_39 = arith.constant 0.000000e+00 : f32
    %367 = vector.broadcast %cst_39 : f32 to vector<8x256xf32>
    %368 = vector.extract_strided_slice %166 {offsets = [0, 118], sizes = [8, 256], strides = [1, 1]} : vector<8x672xf32> to vector<8x256xf32>
    %369 = vector.extract_strided_slice %167 {offsets = [0, 5], sizes = [8, 1], strides = [1, 1]} : vector<8x49xf32> to vector<8x1xf32>
    %370 = vector.broadcast %369 : vector<8x1xf32> to vector<8x256xf32>
    %371 = arith.mulf %368, %370 : vector<8x256xf32>
    %372 = arith.addf %367, %371 : vector<8x256xf32>
    %373 = vector.extract_strided_slice %166 {offsets = [0, 166], sizes = [8, 256], strides = [1, 1]} : vector<8x672xf32> to vector<8x256xf32>
    %374 = vector.extract_strided_slice %167 {offsets = [0, 12], sizes = [8, 1], strides = [1, 1]} : vector<8x49xf32> to vector<8x1xf32>
    %375 = vector.broadcast %374 : vector<8x1xf32> to vector<8x256xf32>
    %376 = arith.mulf %373, %375 : vector<8x256xf32>
    %377 = arith.addf %372, %376 : vector<8x256xf32>
    %378 = vector.extract_strided_slice %166 {offsets = [0, 214], sizes = [8, 256], strides = [1, 1]} : vector<8x672xf32> to vector<8x256xf32>
    %379 = vector.extract_strided_slice %167 {offsets = [0, 19], sizes = [8, 1], strides = [1, 1]} : vector<8x49xf32> to vector<8x1xf32>
    %380 = vector.broadcast %379 : vector<8x1xf32> to vector<8x256xf32>
    %381 = arith.mulf %378, %380 : vector<8x256xf32>
    %382 = arith.addf %377, %381 : vector<8x256xf32>
    %383 = vector.extract_strided_slice %166 {offsets = [0, 262], sizes = [8, 256], strides = [1, 1]} : vector<8x672xf32> to vector<8x256xf32>
    %384 = vector.extract_strided_slice %167 {offsets = [0, 26], sizes = [8, 1], strides = [1, 1]} : vector<8x49xf32> to vector<8x1xf32>
    %385 = vector.broadcast %384 : vector<8x1xf32> to vector<8x256xf32>
    %386 = arith.mulf %383, %385 : vector<8x256xf32>
    %387 = arith.addf %382, %386 : vector<8x256xf32>
    %388 = vector.extract_strided_slice %166 {offsets = [0, 310], sizes = [8, 256], strides = [1, 1]} : vector<8x672xf32> to vector<8x256xf32>
    %389 = vector.extract_strided_slice %167 {offsets = [0, 33], sizes = [8, 1], strides = [1, 1]} : vector<8x49xf32> to vector<8x1xf32>
    %390 = vector.broadcast %389 : vector<8x1xf32> to vector<8x256xf32>
    %391 = arith.mulf %388, %390 : vector<8x256xf32>
    %392 = arith.addf %387, %391 : vector<8x256xf32>
    %393 = vector.extract_strided_slice %166 {offsets = [0, 358], sizes = [8, 256], strides = [1, 1]} : vector<8x672xf32> to vector<8x256xf32>
    %394 = vector.extract_strided_slice %167 {offsets = [0, 40], sizes = [8, 1], strides = [1, 1]} : vector<8x49xf32> to vector<8x1xf32>
    %395 = vector.broadcast %394 : vector<8x1xf32> to vector<8x256xf32>
    %396 = arith.mulf %393, %395 : vector<8x256xf32>
    %397 = arith.addf %392, %396 : vector<8x256xf32>
    %398 = vector.extract_strided_slice %166 {offsets = [0, 406], sizes = [8, 256], strides = [1, 1]} : vector<8x672xf32> to vector<8x256xf32>
    %399 = vector.extract_strided_slice %167 {offsets = [0, 47], sizes = [8, 1], strides = [1, 1]} : vector<8x49xf32> to vector<8x1xf32>
    %400 = vector.broadcast %399 : vector<8x1xf32> to vector<8x256xf32>
    %401 = arith.mulf %398, %400 : vector<8x256xf32>
    %402 = arith.addf %397, %401 : vector<8x256xf32>
    %403 = vector.extract_strided_slice %168 {offsets = [5, 0], sizes = [1, 256], strides = [1, 1]} : vector<7x256xf32> to vector<1x256xf32>
    %404 = vector.broadcast %403 : vector<1x256xf32> to vector<8x256xf32>
    %405 = arith.mulf %402, %404 : vector<8x256xf32>
    %406 = arith.addf %366, %405 : vector<8x256xf32>
    %cst_40 = arith.constant 0.000000e+00 : f32
    %407 = vector.broadcast %cst_40 : f32 to vector<8x256xf32>
    %408 = vector.extract_strided_slice %166 {offsets = [0, 121], sizes = [8, 256], strides = [1, 1]} : vector<8x672xf32> to vector<8x256xf32>
    %409 = vector.extract_strided_slice %167 {offsets = [0, 6], sizes = [8, 1], strides = [1, 1]} : vector<8x49xf32> to vector<8x1xf32>
    %410 = vector.broadcast %409 : vector<8x1xf32> to vector<8x256xf32>
    %411 = arith.mulf %408, %410 : vector<8x256xf32>
    %412 = arith.addf %407, %411 : vector<8x256xf32>
    %413 = vector.extract_strided_slice %166 {offsets = [0, 169], sizes = [8, 256], strides = [1, 1]} : vector<8x672xf32> to vector<8x256xf32>
    %414 = vector.extract_strided_slice %167 {offsets = [0, 13], sizes = [8, 1], strides = [1, 1]} : vector<8x49xf32> to vector<8x1xf32>
    %415 = vector.broadcast %414 : vector<8x1xf32> to vector<8x256xf32>
    %416 = arith.mulf %413, %415 : vector<8x256xf32>
    %417 = arith.addf %412, %416 : vector<8x256xf32>
    %418 = vector.extract_strided_slice %166 {offsets = [0, 217], sizes = [8, 256], strides = [1, 1]} : vector<8x672xf32> to vector<8x256xf32>
    %419 = vector.extract_strided_slice %167 {offsets = [0, 20], sizes = [8, 1], strides = [1, 1]} : vector<8x49xf32> to vector<8x1xf32>
    %420 = vector.broadcast %419 : vector<8x1xf32> to vector<8x256xf32>
    %421 = arith.mulf %418, %420 : vector<8x256xf32>
    %422 = arith.addf %417, %421 : vector<8x256xf32>
    %423 = vector.extract_strided_slice %166 {offsets = [0, 265], sizes = [8, 256], strides = [1, 1]} : vector<8x672xf32> to vector<8x256xf32>
    %424 = vector.extract_strided_slice %167 {offsets = [0, 27], sizes = [8, 1], strides = [1, 1]} : vector<8x49xf32> to vector<8x1xf32>
    %425 = vector.broadcast %424 : vector<8x1xf32> to vector<8x256xf32>
    %426 = arith.mulf %423, %425 : vector<8x256xf32>
    %427 = arith.addf %422, %426 : vector<8x256xf32>
    %428 = vector.extract_strided_slice %166 {offsets = [0, 313], sizes = [8, 256], strides = [1, 1]} : vector<8x672xf32> to vector<8x256xf32>
    %429 = vector.extract_strided_slice %167 {offsets = [0, 34], sizes = [8, 1], strides = [1, 1]} : vector<8x49xf32> to vector<8x1xf32>
    %430 = vector.broadcast %429 : vector<8x1xf32> to vector<8x256xf32>
    %431 = arith.mulf %428, %430 : vector<8x256xf32>
    %432 = arith.addf %427, %431 : vector<8x256xf32>
    %433 = vector.extract_strided_slice %166 {offsets = [0, 361], sizes = [8, 256], strides = [1, 1]} : vector<8x672xf32> to vector<8x256xf32>
    %434 = vector.extract_strided_slice %167 {offsets = [0, 41], sizes = [8, 1], strides = [1, 1]} : vector<8x49xf32> to vector<8x1xf32>
    %435 = vector.broadcast %434 : vector<8x1xf32> to vector<8x256xf32>
    %436 = arith.mulf %433, %435 : vector<8x256xf32>
    %437 = arith.addf %432, %436 : vector<8x256xf32>
    %438 = vector.extract_strided_slice %166 {offsets = [0, 409], sizes = [8, 256], strides = [1, 1]} : vector<8x672xf32> to vector<8x256xf32>
    %439 = vector.extract_strided_slice %167 {offsets = [0, 48], sizes = [8, 1], strides = [1, 1]} : vector<8x49xf32> to vector<8x1xf32>
    %440 = vector.broadcast %439 : vector<8x1xf32> to vector<8x256xf32>
    %441 = arith.mulf %438, %440 : vector<8x256xf32>
    %442 = arith.addf %437, %441 : vector<8x256xf32>
    %443 = vector.extract_strided_slice %168 {offsets = [6, 0], sizes = [1, 256], strides = [1, 1]} : vector<7x256xf32> to vector<1x256xf32>
    %444 = vector.broadcast %443 : vector<1x256xf32> to vector<8x256xf32>
    %445 = arith.mulf %442, %444 : vector<8x256xf32>
    %446 = arith.addf %406, %445 : vector<8x256xf32>
    %c0_41 = arith.constant 0 : index
    %c0_42 = arith.constant 0 : index
    %447 = vector.load %arg5[%c0_41, %c0_42] : memref<8x1xf32, #tpu.memory_space<vmem>>, vector<8x1xf32>
    %448 = vector.broadcast %447 : vector<8x1xf32> to vector<8x256xf32>
    %449 = arith.addf %446, %448 : vector<8x256xf32>
    %c0_43 = arith.constant 0 : index
    %c0_44 = arith.constant 0 : index
    %450 = vector.load %arg6[%c0_43, %c0_44] : memref<8x8xf32, #tpu.memory_space<vmem>>, vector<8x8xf32>
    %cst_45 = arith.constant dense<0.000000e+00> : vector<8x256xf32>
    %451 = tpu.matmul %450, %449, %cst_45 {dimension_numbers = #tpu.dot_dimension_numbers<[1], [0], [0], [1], [0, 0, 1, 1], [], []>} : vector<8x8xf32>, vector<8x256xf32>, vector<8x256xf32> -> vector<8x256xf32>
    %c0_46 = arith.constant 0 : index
    %c0_47 = arith.constant 0 : index
    %452 = vector.load %arg7[%c0_46, %c0_47] : memref<8x1xf32, #tpu.memory_space<vmem>>, vector<8x1xf32>
    %453 = vector.broadcast %452 : vector<8x1xf32> to vector<8x256xf32>
    %454 = arith.addf %451, %453 : vector<8x256xf32>
    %c0_48 = arith.constant 0 : index
    %c0_49 = arith.constant 0 : index
    %455 = vector.load %arg8[%c0_48, %c0_49] : memref<8x8xf32, #tpu.memory_space<vmem>>, vector<8x8xf32>
    %cst_50 = arith.constant dense<0.000000e+00> : vector<8x256xf32>
    %456 = tpu.matmul %455, %449, %cst_50 {dimension_numbers = #tpu.dot_dimension_numbers<[1], [0], [0], [1], [0, 0, 1, 1], [], []>} : vector<8x8xf32>, vector<8x256xf32>, vector<8x256xf32> -> vector<8x256xf32>
    %c0_51 = arith.constant 0 : index
    %c0_52 = arith.constant 0 : index
    %457 = vector.load %arg9[%c0_51, %c0_52] : memref<8x1xf32, #tpu.memory_space<vmem>>, vector<8x1xf32>
    %458 = vector.broadcast %457 : vector<8x1xf32> to vector<8x256xf32>
    %459 = arith.addf %456, %458 : vector<8x256xf32>
    %460 = arith.negf %459 : vector<8x256xf32>
    %461 = math.exp %460 : vector<8x256xf32>
    %cst_53 = arith.constant 1.000000e+00 : f32
    %462 = vector.broadcast %cst_53 : f32 to vector<8x256xf32>
    %463 = arith.addf %462, %461 : vector<8x256xf32>
    %464 = arith.divf %462, %463 : vector<8x256xf32>
    %465 = arith.mulf %464, %454 : vector<8x256xf32>
    %c0_54 = arith.constant 0 : index
    %c0_55 = arith.constant 0 : index
    %c0_56 = arith.constant 0 : index
    %466 = vector.load %arg12[%c0_54, %c0_55, %c0_56] : memref<1x8x256xf32, #tpu.memory_space<vmem>>, vector<1x8x256xf32>
    %467 = vector.shape_cast %466 : vector<1x8x256xf32> to vector<8x256xf32>
    %468 = vector.shape_cast %465 : vector<8x256xf32> to vector<1x8x256xf32>
    tpu.vector_store %arg12[%c0_54, %c0_55, %c0_56], %468 {strides = array<i32>} : memref<1x8x256xf32, #tpu.memory_space<vmem>>, vector<1x8x256xf32>,
    return
  }
  func.func @transform_0(%arg0: i32) -> (i32, i32, i32) {
    %c0_i32 = arith.constant 0 : i32
    %c0_i32_0 = arith.constant 0 : i32
    %c0_i32_1 = arith.constant 0 : i32
    return %arg0, %c0_i32, %c0_i32_0 : i32, i32, i32
  }
  func.func @transform_1(%arg0: i32) -> (i32, i32) {
    %c0_i32 = arith.constant 0 : i32
    %c0_i32_0 = arith.constant 0 : i32
    %c0_i32_1 = arith.constant 0 : i32
    return %c0_i32, %c0_i32_0 : i32, i32
  }
  func.func @transform_2(%arg0: i32) -> (i32, i32) {
    %c0_i32 = arith.constant 0 : i32
    %c0_i32_0 = arith.constant 0 : i32
    %c0_i32_1 = arith.constant 0 : i32
    return %c0_i32, %c0_i32_0 : i32, i32
  }
  func.func @transform_3(%arg0: i32) -> (i32, i32) {
    %c0_i32 = arith.constant 0 : i32
    %c0_i32_0 = arith.constant 0 : i32
    %c0_i32_1 = arith.constant 0 : i32
    return %c0_i32, %c0_i32_0 : i32, i32
  }
  func.func @transform_4(%arg0: i32) -> (i32, i32) {
    %c0_i32 = arith.constant 0 : i32
    %c0_i32_0 = arith.constant 0 : i32
    %c0_i32_1 = arith.constant 0 : i32
    return %c0_i32, %c0_i32_0 : i32, i32
  }
  func.func @transform_5(%arg0: i32) -> (i32, i32) {
    %c0_i32 = arith.constant 0 : i32
    %c0_i32_0 = arith.constant 0 : i32
    %c0_i32_1 = arith.constant 0 : i32
    return %c0_i32, %c0_i32_0 : i32, i32
  }
  func.func @transform_6(%arg0: i32) -> (i32, i32) {
    %c0_i32 = arith.constant 0 : i32
    %c0_i32_0 = arith.constant 0 : i32
    %c0_i32_1 = arith.constant 0 : i32
    return %c0_i32, %c0_i32_0 : i32, i32
  }
  func.func @transform_7(%arg0: i32) -> (i32, i32) {
    %c0_i32 = arith.constant 0 : i32
    %c0_i32_0 = arith.constant 0 : i32
    %c0_i32_1 = arith.constant 0 : i32
    return %c0_i32, %c0_i32_0 : i32, i32
  }
  func.func @transform_8(%arg0: i32) -> (i32, i32) {
    %c0_i32 = arith.constant 0 : i32
    %c0_i32_0 = arith.constant 0 : i32
    %c0_i32_1 = arith.constant 0 : i32
    return %c0_i32, %c0_i32_0 : i32, i32
  }
  func.func @transform_9(%arg0: i32) -> (i32, i32) {
    %c0_i32 = arith.constant 0 : i32
    %c0_i32_0 = arith.constant 0 : i32
    %c0_i32_1 = arith.constant 0 : i32
    return %c0_i32, %c0_i32_0 : i32, i32
  }
  func.func @transform_10(%arg0: i32) -> (i32, i32) {
    %c0_i32 = arith.constant 0 : i32
    %c0_i32_0 = arith.constant 0 : i32
    %c0_i32_1 = arith.constant 0 : i32
    return %c0_i32, %c0_i32_0 : i32, i32
  }
  func.func @transform_11(%arg0: i32) -> (i32, i32, i32) {
    %c0_i32 = arith.constant 0 : i32
    %c0_i32_0 = arith.constant 0 : i32
    %c0_i32_1 = arith.constant 0 : i32
    return %arg0, %c0_i32, %c0_i32_0 : i32, i32, i32
  }
}

</mosaic_0001>

<bundles_post_ra>
// kernel: tpu_custom_call.1
= control target key start
LH: loop header
LB: loop body
LE: loop exit
PB: predicated region body
PF: predicated region fallthrough
CT: control target
= control target key end

     0   :  { %16 = vsyncpa [#allocation5], 0  ;;  %s4233_s0 = inlined_call_operand.vmem [shape: f32[1,8,256], index: 0, kind: input, shape index: {}]   ;;  %s4234_s1 = inlined_call_operand.hbm [shape: f32[8,25], index: 1, kind: input, shape index: {}]   ;;  %s4235_s2 = inlined_call_operand.vmem [shape: f32[8,1], index: 2, kind: input, shape index: {}]   ;;  %s4236_s3 = inlined_call_operand.hbm [shape: f32[8,49], index: 3, kind: input, shape index: {}]   ;;  %s4237_s4 = inlined_call_operand.vmem [shape: f32[8,1], index: 4, kind: input, shape index: {}]   ;;  %s4238_s5 = inlined_call_operand.hbm [shape: f32[8,8], index: 5, kind: input, shape index: {}]   ;;  %s4239_s6 = inlined_call_operand.vmem [shape: f32[8,1], index: 6, kind: input, shape index: {}]   ;;  %s4240_s7 = inlined_call_operand.hbm [shape: f32[8,8], index: 7, kind: input, shape index: {}]   ;;  %s4241_s8 = inlined_call_operand.vmem [shape: f32[8,1], index: 8, kind: input, shape index: {}]   ;;  %s4242_s9 = inlined_call_operand.vmem [shape: f32[5,256], index: 9, kind: input, shape index: {}]   ;;  %s4243_s10 = inlined_call_operand.hbm [shape: f32[7,256], index: 10, kind: input, shape index: {}]   ;;  %s4244_s11 = inlined_call_operand.hbm [shape: f32[1,8,256], index: 11, kind: output, shape index: {}]  }
   0x1   :  { %17 = vsyncpa [#allocation8], 0 }
   0x2   :  { %18 = vsyncpa [#allocation11], 0  ;;  %s40_s19 = sshll.u32 %s4236_s3, 4  ;;  %s41_s19 = int_to_ptr.hbm [resolvable:$true] %s40_s19 }
   0x3   :  { %19 = vsyncpa [#allocation6], 0  ;;  %s2633_s20 = smov [#allocation7]   ;;  %s66_s24 = sshll.u32 %s4240_s7, 4  ;;  %s67_s24 = int_to_ptr.hbm [resolvable:$true] %s66_s24 }
   0x4   :  { %s42_s21 = sshll.u32 %s2633_s20, 4  ;;  %s2634_s25 = smov [#allocation10]   ;;  %s43_s21 = int_to_ptr.vmem [resolvable:$true] %s42_s21 }
   0x5   :  { %45 = dma.hbm_to_vmem [thread:$0]  %s41_s19, 128, %s43_s21, [#allocation8]  }
   0x6   :  { %s68_s26 = sshll.u32 %s2634_s25, 4  ;;  %s27_s29 = sshll.u32 %s4234_s1, 4  ;;  %s69_s26 = int_to_ptr.vmem [resolvable:$true] %s68_s26  ;;  %s28_s29 = int_to_ptr.hbm [resolvable:$true] %s27_s29 }
   0x7   :  { %71 = dma.hbm_to_vmem [thread:$0]  %s67_s24, 128, %s69_s26, [#allocation11]  }
   0x8   :  { %s53_s12 = sshll.u32 %s4238_s5, 4  ;;  %s2635_s13 = smov [#allocation4]   ;;  %s54_s12 = int_to_ptr.hbm [resolvable:$true] %s53_s12 }
   0x9   :  { %s29_s14 = sshll.u32 %s2635_s13, 4  ;;  %s2636_s7 = smov [#allocation9]   ;;  %s30_s14 = int_to_ptr.vmem [resolvable:$true] %s29_s14 }
   0xa   :  { %32 = dma.hbm_to_vmem [thread:$0]  %s28_s29, 128, %s30_s14, [#allocation5]  }
   0xb   :  { %s55_s15 = sshll.u32 %s2636_s7, 4  ;;  %s81_s18 = sshll.u32 %s4243_s10, 4  ;;  %s56_s15 = int_to_ptr.vmem [resolvable:$true] %s55_s15  ;;  %s82_s18 = int_to_ptr.hbm [resolvable:$true] %s81_s18 }
   0xc   :  { %58 = dma.hbm_to_vmem [thread:$0]  %s54_s12, 128, %s56_s15, [#allocation8]  }
   0xd   :  { %s2637_s1 = smov [#allocation12]  }
   0xe   :  { %s83_s19 = sshll.u32 %s2637_s1, 4  ;;  %s84_s19 = int_to_ptr.vmem [resolvable:$true] %s83_s19 }
   0xf   :  { %86 = dma.hbm_to_vmem [thread:$0]  %s82_s18, 256, %s84_s19, [#allocation11]  }
  0x10   :  { %2625 = dma.done.wait [#allocation5], 128  }
  0x11   :  { %2626 = vsyncadd [#allocation5], 4294967168 }
  0x12   :  { %2627 = dma.done.wait [#allocation8], 256  }
  0x13   :  { %2628 = vsyncadd [#allocation8], 4294967040 }
  0x14   :  { %2629 = dma.done.wait [#allocation11], 384  }
  0x15   :  { %2630 = vsyncadd [#allocation11], 4294966912  ;;  %v4265_v0 = vmov 0   ;;  %v4261_v1 = vmov 15   ;;  %v4253_v2 = vmov 10   ;;  %v2794_v3 = vld [vmem:[#allocation4] sm:$0xff] }
  0x16   :  { %2384 = vset.pattern.permute.xlu0 %v4265_v0  ;;  %2387 = vset.pattern.permute.xlu1 %v4261_v1  ;;  %v2802_v4 = vld [vmem:[%s4242_s9 + $0x8] sm:$0x1f]  ;;  %v4245_v6 = vmov 5   ;;  %s2642_s20 = smov 94   ;;  %v4248_v7 = vmov 20   ;;  %v2644_v9 = vmov 7  }
  0x17   :  { %2386 = vset.pattern.permute.xlu2 %v4253_v2  ;;  %123 = vperm.xlu0 %2384, %v2794_v3   ;;  %4283 = vst [vmem:[#allocation18_spill] sm:$0xff] %v2802_v4  ;;  %v233_v5 = vperm.slane %v2802_v4, 0  ;;  %v2811_v8 = vld [vmem:[%s4242_s9] sm:$0x1f]  ;;  %v358_v10 = vperm.slane %v2802_v4, 1  ;;  %s2645_s23 = smov 95  }
  0x18   :  { %183 = vperm.xlu1 %2387, %v2794_v3   ;;  %158 = vperm.xlu2 %2386, %v2794_v3   ;;  %4284 = vst [vmem:[#allocation19_spill] sm:$0xff] %v2811_v8  ;;  %v232_v11 = vperm.slane %v2811_v8, 0  ;;  %v4247_v12 = vmov 6   ;;  %v4263_v13 = vmov 1   ;;  %v4251_v14 = vmov 11   ;;  %v2831_v18 = vld [vmem:[%s4233_s0 + $0x8] sm:$0xff] }
  0x19   :  { %v4256_v15 = vmov 16   ;;  %v4264_v16 = vmov 21   ;;  %v357_v17 = vperm.slane %v2811_v8, 1  ;;  %v4259_v19 = vmov 2   ;;  %v2839_v21 = vld [vmem:[%s4233_s0] sm:$0xff]  ;;  %s2654_s27 = smov 96  }
  0x1a   :  { %v4260_v20 = vmov 0.0   ;;  %v4250_v22 = vmov 12   ;;  %vm108_vm0 = vcmask 392192   ;;  %s2655_s0 = smov 80   ;;  %s2656_s28 = smov 64   ;;  %v4252_v49 = vmov 17  }
  0x1b   :  { %800 = vst [vmem:[#allocation3 + $0x8] sm:$0xff] %v4260_v20  ;;  %s2657_s29 = smov 112   ;;  %s2666_s3 = smov 97   ;;  %vm148_vm1 = vcmask 916480   ;;  %vm173_vm2 = vcmask 785408   ;;  %vm198_vm3 = vcmask 654336  }
  0x1c   :  { %109 = vst.msk [vmem:[#allocation2 + $0x18] sm:$0xff] %vm108_vm0, %v4260_v20  ;;  %vm223_vm4 = vcmask 523264   ;;  %s2667_s30 = smov 126   ;;  %vm365_vm5 = vcmask 777216   ;;  %s2668_s12 = smov 127   ;;  %vm624_vm6 = vcmask 793600  }
  0x1d   :  { %s2671_s13 = smov 125   ;;  %vm240_vm7 = vcmask 769024   ;;  %vm382_vm8 = vcmask 1039360   ;;  %vm501_vm9 = vcmask 1031168   ;;  %s2674_s14 = smov 98   ;;  %vm764_vm10 = vcmask 801792  }
  0x1e   :  { %s2675_s7 = smov 124   ;;  %vm641_vm11 = vcmask 1022976   ;;  %vm781_vm12 = vcmask 1014784   ;;  %s2680_s17 = smov 103   ;;  %vm802_vm13 = vcmask 261120   ;;  %vm813_vm14 = vcmask 277504  }
  0x1f   :  { %2385 = vset.pattern.permute.xlu0 %v4245_v6  ;;  %s2681_s18 = smov 16   ;;  %s2682_s1 = smov 34   ;;  %vm952_vm15 = vcmask 130048   ;;  %vm1353_vm0 = vcmask 891904  }
  0x20   :  { %238 = vrot.lane.b32.xlu1 %v233_v5, %s2642_s20  ;;  %133 = vperm.xlu0 %2385, %v2794_v3   ;;  %s2686_s19 = smov 106   ;;  %s2690_s5 = smov 109  }
  0x21   :  { %2388 = vset.pattern.permute.xlu2 %v4248_v7  ;;  %2410 = vset.pattern.permute.xlu1 %v2644_v9  ;;  %s2694_s10 = smov 122   ;;  %s2708_s21 = smov 115  }
  0x22   :  { %208 = vperm.xlu2 %2388, %v2794_v3   ;;  %s2709_s22 = smov 118   ;;  %s2711_s9 = smov 116  }
  0x23   :  { %v2867_v41 = vld [vmem:[#allocation2 + $0x18] sm:$0xff]  ;;  %s2712_s24 = smov 113   ;;  %s2713_s25 = smov 110  }
  0x28   :  { %363 = vrot.lane.b32.xlu1 %v358_v10, %s2645_s23  ;;  %236 = vrot.lane.b32.xlu0 %v232_v11, %s2642_s20  ;;  %s2695_s20 = smov 119  }
  0x29   :  { %2390 = vset.pattern.permute.xlu0 %v4247_v12 }
  0x2a   :  { %2389 = vset.pattern.permute.xlu2 %v4263_v13 }
  0x2b   :  { %252 = vperm.xlu2 %2389, %v2794_v3  }
  0x30   :  { %262 = vperm.xlu0 %2390, %v2794_v3  }
  0x33   :  { %2391 = vset.pattern.permute.xlu2 %v4251_v14 }
  0x34   :  { %286 = vperm.xlu2 %2391, %v2794_v3  }
  0x38   :  { %2392 = vset.pattern.permute.xlu0 %v4256_v15  ;;  %v616_v15 = vperm.slane %v2811_v8, 3 }
  0x39   :  { %310 = vperm.xlu0 %2392, %v2794_v3  }
  0x3c   :  { %2393 = vset.pattern.permute.xlu2 %v4264_v16 }
  0x3d   :  { %334 = vperm.xlu2 %2393, %v2794_v3  }
  0x41   :  { %361 = vrot.lane.b32.xlu0 %v357_v17, %s2645_s23  ;;  %s2710_s23 = smov 121  }
  0x42   :  { %2395 = vset.pattern.permute.xlu0 %v2644_v9 }
  0x45   :  { %2394 = vset.pattern.permute.xlu2 %v4259_v19 }
  0x46   :  { %392 = vperm.xlu2 %2394, %v2794_v3  }
  0x49   :  { %402 = vperm.xlu0 %2395, %v2794_v3  }
  0x4e   :  { %2396 = vset.pattern.permute.xlu2 %v4250_v22 }
  0x4f   :  { %426 = vperm.xlu2 %2396, %v2794_v3  }
  0x57   :  { %2397 = vset.pattern.permute.xlu2 %v4252_v49 }
  0x72   :  { %v159_v23 = vpop.permute.xlu2 %158 }
  0x73   :  { %v163_v24 = vmul.f32 %v159_v23, %v2831_v18  ;;  %v162_v35 = vmul.f32 %v159_v23, %v2839_v21  ;;  %v161_v39 = vmul.f32 0.0, %v159_v23 }
  0x75   :  { %171 = vrot.lane.b32.xlu0 %v163_v24, %s2654_s27 }
  0x7c   :  { %v209_v25 = vpop.permute.xlu2 %208 }
  0x7d   :  { %v211_v30 = vmul.f32 %v209_v25, %v2839_v21  ;;  %v213_v43 = vmul.f32 %v209_v25, %v2867_v41  ;;  %v212_v48 = vmul.f32 %v209_v25, %v2831_v18 }
  0x85   :  { %v2850_v29 = vpop.permute.xlu2 %252 }
  0x86   :  { %v256_v20 = vmul.f32 %v2850_v29, %v2839_v21 }
  0x89   :  { %v2846_v26 = vpop.permute.xlu0 %123 }
  0x8a   :  { %v184_v27 = vpop.permute.xlu1 %183 }
  0x8b   :  { %v187_v28 = vmul.f32 %v184_v27, %v2831_v18  ;;  %v186_v38 = vmul.f32 %v184_v27, %v2839_v21  ;;  %v188_v44 = vmul.f32 %v184_v27, %v2867_v41 }
  0x8d   :  { %194 = vrot.lane.b32.xlu0 %v187_v28, %s2655_s0 }
  0x8e   :  { %v287_v34 = vpop.permute.xlu2 %286 }
  0x8f   :  { %v289_v37 = vmul.f32 0.0, %v287_v34  ;;  %v291_v50 = vmul.f32 %v287_v34, %v2831_v18  ;;  %v290_v60 = vmul.f32 %v287_v34, %v2839_v21 }
  0x92   :  { %v134_v31 = vpop.permute.xlu0 %133 }
  0x93   :  { %v138_v32 = vmul.f32 %v134_v31, %v2831_v18  ;;  %v136_v33 = vmul.f32 0.0, %v134_v31  ;;  %v137_v36 = vmul.f32 %v134_v31, %v2839_v21 }
  0x95   :  { %217 = vrot.lane.b32.xlu0 %v211_v30, %s2656_s28  ;;  %146 = vrot.lane.b32.xlu2 %v138_v32, %s2657_s29  ;;  %v4258_v32 = vmov 22  }
  0x96   :  { %142 = vrot.lane.b32.xlu1 %v136_v33, %s2657_s29  ;;  %2398 = vset.pattern.permute.xlu0 %v4258_v32 }
  0x97   :  { %v335_v42 = vpop.permute.xlu2 %334 }
  0x98   :  { %v337_v45 = vmul.f32 %v335_v42, %v2839_v21  ;;  %v339_v59 = vmul.f32 %v335_v42, %v2867_v41  ;;  %v338_v9 = vmul.f32 %v335_v42, %v2831_v18 }
  0x9a   :  { %v2863_v40 = vpop.permute.xlu0 %236 }
  0x9b   :  { %4285 = vst [vmem:[#allocation20_spill] sm:$0xff] %v2863_v40 }
  0x9d   :  { %169 = vrot.lane.b32.xlu2 %v162_v35, %s2654_s27  ;;  %295 = vrot.lane.b32.xlu0 %v289_v37, %s2654_s27 }
  0x9e   :  { %144 = vrot.lane.b32.xlu1 %v137_v36, %s2657_s29 }
  0xa0   :  { %v2883_v53 = vpop.permute.xlu2 %392 }
  0xa2   :  { %v263_v46 = vpop.permute.xlu0 %262 }
  0xa3   :  { %v266_v47 = vmul.f32 %v263_v46, %v2839_v21  ;;  %v265_v52 = vmul.f32 0.0, %v263_v46  ;;  %v267_v55 = vmul.f32 %v263_v46, %v2831_v18  ;;  %v4255_v46 = vmov 3  }
  0xa5   :  { %192 = vrot.lane.b32.xlu2 %v186_v38, %s2655_s0  ;;  %343 = vrot.lane.b32.xlu0 %v337_v45, %s2656_s28 }
  0xa6   :  { %167 = vrot.lane.b32.xlu1 %v161_v39, %s2654_s27  ;;  %v4262_v39 = vmov 8  }
  0xa9   :  { %v427_v57 = vpop.permute.xlu2 %426 }
  0xaa   :  { %v429_v58 = vmul.f32 %v427_v57, %v2839_v21  ;;  %v430_v24 = vmul.f32 %v427_v57, %v2831_v18 }
  0xab   :  { %v311_v51 = vpop.permute.xlu0 %310 }
  0xac   :  { %v314_v54 = vmul.f32 %v311_v51, %v2831_v18  ;;  %v313_v63 = vmul.f32 %v311_v51, %v2839_v21  ;;  %v315_v5 = vmul.f32 %v311_v51, %v2867_v41 }
  0xad   :  { %221 = vrot.lane.b32.xlu2 %v213_v43, %s2656_s28  ;;  %433 = vrot.lane.b32.xlu0 %v429_v58, %s2654_s27 }
  0xae   :  { %196 = vrot.lane.b32.xlu1 %v188_v44, %s2655_s0 }
  0xb3   :  { %v2887_v56 = vpop.permute.xlu0 %361 }
  0xb5   :  { %273 = vrot.lane.b32.xlu2 %v266_v47, %s2657_s29 }
  0xb6   :  { %219 = vrot.lane.b32.xlu1 %v212_v48, %s2656_s28 }
  0xbb   :  { %v403_v61 = vpop.permute.xlu0 %402 }
  0xbc   :  { %v406_v62 = vmul.f32 %v403_v61, %v2839_v21  ;;  %v405_v10 = vmul.f32 0.0, %v403_v61  ;;  %v407_v17 = vmul.f32 %v403_v61, %v2831_v18 }
  0xbd   :  { %299 = vrot.lane.b32.xlu2 %v291_v50, %s2654_s27 }
  0xbe   :  { %271 = vrot.lane.b32.xlu1 %v265_v52, %s2657_s29 }
  0xc5   :  { %321 = vrot.lane.b32.xlu2 %v314_v54, %s2655_s0 }
  0xc6   :  { %275 = vrot.lane.b32.xlu1 %v267_v55, %s2657_s29 }
  0xcd   :  { %347 = vrot.lane.b32.xlu2 %v339_v59, %s2656_s28 }
  0xce   :  { %297 = vrot.lane.b32.xlu1 %v290_v60, %s2654_s27  ;;  %v4246_v60 = vmov 13  }
  0xd5   :  { %413 = vrot.lane.b32.xlu2 %v406_v62, %s2657_s29 }
  0xd6   :  { %319 = vrot.lane.b32.xlu1 %v313_v63, %s2655_s0 }
  0xdd   :  { %445 = vperm.xlu2 %2397, %v2794_v3  }
  0xde   :  { %323 = vrot.lane.b32.xlu1 %v315_v5, %s2655_s0  ;;  %v4249_v5 = vmov 18  }
  0xe5   :  { %2399 = vset.pattern.permute.xlu2 %v4255_v46 }
  0xe6   :  { %345 = vrot.lane.b32.xlu1 %v338_v9, %s2656_s28 }
  0xe7   :  { %v2939_v42 = vpop.permute.xlu0 %171 }
  0xee   :  { %411 = vrot.lane.b32.xlu1 %v405_v10, %s2657_s29 }
  0xef   :  { %v2907_v11 = vpop.permute.xlu2 %146 }
  0xf6   :  { %415 = vrot.lane.b32.xlu1 %v407_v17, %s2657_s29 }
  0xf7   :  { %v2911_v23 = vpop.permute.xlu2 %169 }
  0xfe   :  { %435 = vrot.lane.b32.xlu1 %v430_v24, %s2654_s27 }
  0xff   :  { %v2915_v25 = vpop.permute.xlu2 %192  ;;  %v2941_v43 = vpop.permute.xlu0 %194 }
 0x107   :  { %v2917_v27 = vpop.permute.xlu2 %221  ;;  %v2943_v44 = vpop.permute.xlu0 %217 }
 0x108   :  { %4286 = vst [vmem:[#allocation21_spill] sm:$0xff] %v2917_v27 }
 0x109   :  { %4287 = vst [vmem:[#allocation22_spill] sm:$0xff] %v2943_v44 }
 0x10f   :  { %v2919_v28 = vpop.permute.xlu2 %273  ;;  %v2945_v45 = vpop.permute.xlu0 %295 }
 0x117   :  { %v2921_v30 = vpop.permute.xlu2 %299  ;;  %v2948_v47 = vpop.permute.xlu0 %343 }
 0x11f   :  { %v2923_v31 = vpop.permute.xlu2 %321  ;;  %v2950_v48 = vpop.permute.xlu0 %433 }
 0x127   :  { %v2926_v33 = vpop.permute.xlu2 %347 }
 0x12f   :  { %v2928_v34 = vpop.permute.xlu2 %413 }
 0x137   :  { %v446_v35 = vpop.permute.xlu2 %445 }
 0x138   :  { %v450_v36 = vmul.f32 %v446_v35, %v2867_v41  ;;  %v448_v37 = vmul.f32 %v446_v35, %v2839_v21  ;;  %v449_v38 = vmul.f32 %v446_v35, %v2831_v18 }
 0x13a   :  { %458 = vrot.lane.b32.xlu2 %v450_v36, %s2655_s0  ;;  %454 = vrot.lane.b32.xlu0 %v448_v37, %s2655_s0  ;;  %v2984_v37 = vpop.permute.xlu1 %238 }
 0x13b   :  { %456 = vrot.lane.b32.xlu1 %v449_v38, %s2655_s0  ;;  %4288 = vst [vmem:[#allocation23_spill] sm:$0xff] %v2984_v37 }
 0x142   :  { %469 = vperm.xlu0 %2398, %v2794_v3   ;;  %v2986_v38 = vpop.permute.xlu1 %363 }
 0x14a   :  { %2400 = vset.pattern.permute.xlu0 %v4262_v39 }
 0x14b   :  { %521 = vperm.xlu0 %2400, %v2794_v3  }
 0x153   :  { %2402 = vset.pattern.permute.xlu0 %v4249_v5  ;;  %v4257_v5 = vmov 9  }
 0x194   :  { %v2968_v62 = vpop.permute.xlu2 %458 }
 0x1ac   :  { %v2952_v50 = vpop.permute.xlu0 %454 }
 0x1b4   :  { %v470_v51 = vpop.permute.xlu0 %469 }
 0x1b5   :  { %v473_v52 = vmul.f32 %v470_v51, %v2831_v18  ;;  %v472_v54 = vmul.f32 %v470_v51, %v2839_v21  ;;  %v474_v55 = vmul.f32 %v470_v51, %v2867_v41  ;;  %v4254_v51 = vmov 23  }
 0x1b7   :  { %480 = vrot.lane.b32.xlu2 %v473_v52, %s2656_s28  ;;  %478 = vrot.lane.b32.xlu1 %v472_v54, %s2656_s28  ;;  %v2989_v52 = vpop.permute.xlu1 %142 }
 0x1b8   :  { %4289 = vst [vmem:[#allocation24_spill] sm:$0xff] %v2989_v52 }
 0x1bd   :  { %v522_v57 = vpop.permute.xlu0 %521 }
 0x1be   :  { %v525_v58 = vmul.f32 %v522_v57, %v2839_v21  ;;  %v524_v59 = vmul.f32 0.0, %v522_v57  ;;  %v526_v61 = vmul.f32 %v522_v57, %v2831_v18 }
 0x1bf   :  { %511 = vperm.xlu2 %2399, %v2794_v3   ;;  %482 = vrot.lane.b32.xlu1 %v474_v55, %s2656_s28  ;;  %v2991_v54 = vpop.permute.xlu1 %144 }
 0x1c7   :  { %532 = vrot.lane.b32.xlu2 %v525_v58, %s2657_s29  ;;  %530 = vrot.lane.b32.xlu1 %v524_v59, %s2657_s29  ;;  %v2995_v57 = vpop.permute.xlu1 %167 }
 0x1c8   :  { %2401 = vset.pattern.permute.xlu2 %v4246_v60  ;;  %4290 = vst [vmem:[#allocation25_spill] sm:$0xff] %v2995_v57 }
 0x1cf   :  { %545 = vperm.xlu2 %2401, %v2794_v3   ;;  %534 = vrot.lane.b32.xlu1 %v526_v61, %s2657_s29 }
 0x1d7   :  { %2403 = vset.pattern.permute.xlu2 %v4254_v51 }
 0x211   :  { %v2970_v63 = vpop.permute.xlu2 %480 }
 0x219   :  { %v2973_v9 = vpop.permute.xlu2 %511 }
 0x221   :  { %v2975_v10 = vpop.permute.xlu2 %532 }
 0x229   :  { %v546_v17 = vpop.permute.xlu2 %545 }
 0x22a   :  { %v550_v24 = vmul.f32 %v546_v17, %v2867_v41  ;;  %v548_v35 = vmul.f32 %v546_v17, %v2839_v21  ;;  %v549_v36 = vmul.f32 %v546_v17, %v2831_v18  ;;  %v3001_v17 = vpop.permute.xlu1 %196 }
 0x22b   :  { %4291 = vst [vmem:[#allocation26_spill] sm:$0xff] %v3001_v17 }
 0x22c   :  { %558 = vrot.lane.b32.xlu2 %v550_v24, %s2654_s27  ;;  %554 = vrot.lane.b32.xlu0 %v548_v35, %s2654_s27 }
 0x22d   :  { %556 = vrot.lane.b32.xlu1 %v549_v36, %s2654_s27 }
 0x232   :  { %v3006_v35 = vpop.permute.xlu1 %219 }
 0x234   :  { %569 = vperm.xlu0 %2402, %v2794_v3  }
 0x23a   :  { %v3008_v36 = vpop.permute.xlu1 %271 }
 0x23c   :  { %2405 = vset.pattern.permute.xlu0 %v4257_v5  ;;  %v617_v5 = vperm.slane %v2802_v4, 3 }
 0x242   :  { %v3010_v6 = vpop.permute.xlu1 %275 }
 0x24a   :  { %v3012_v60 = vpop.permute.xlu1 %297 }
 0x252   :  { %v3014_v12 = vpop.permute.xlu1 %319 }
 0x253   :  { %v325_v16 = vsel %vm198_vm3, %v3014_v12, %v2923_v31 }
 0x29e   :  { %v2993_v55 = vpop.permute.xlu0 %554 }
 0x2a6   :  { %v570_v58 = vpop.permute.xlu0 %569 }
 0x2a7   :  { %v573_v59 = vmul.f32 %v570_v58, %v2831_v18  ;;  %v572_v61 = vmul.f32 %v570_v58, %v2839_v21  ;;  %v574_v24 = vmul.f32 %v570_v58, %v2867_v41  ;;  %v3022_v58 = vpop.permute.xlu2 %558 }
 0x2a9   :  { %580 = vrot.lane.b32.xlu2 %v573_v59, %s2655_s0  ;;  %578 = vrot.lane.b32.xlu1 %v572_v61, %s2655_s0  ;;  %v3016_v59 = vpop.permute.xlu1 %323 }
 0x2b1   :  { %593 = vperm.xlu2 %2403, %v2794_v3   ;;  %582 = vrot.lane.b32.xlu1 %v574_v24, %s2655_s0  ;;  %v3018_v61 = vpop.permute.xlu1 %345 }
 0x2b9   :  { %v3020_v7 = vpop.permute.xlu1 %411 }
 0x2c1   :  { %v3027_v22 = vpop.permute.xlu1 %415 }
 0x2c9   :  { %v3032_v46 = vpop.permute.xlu1 %435 }
 0x2d1   :  { %v3039_v32 = vpop.permute.xlu1 %456 }
 0x2d9   :  { %v3049_v19 = vpop.permute.xlu1 %478 }
 0x303   :  { %v3025_v24 = vpop.permute.xlu2 %580 }
 0x30b   :  { %v594_v14 = vpop.permute.xlu2 %593 }
 0x30c   :  { %v598_v49 = vmul.f32 %v594_v14, %v2867_v41  ;;  %v596_v2 = vmul.f32 %v594_v14, %v2839_v21  ;;  %v597_v51 = vmul.f32 %v594_v14, %v2831_v18  ;;  %v418_v14 = vsel %vm148_vm1, %v2928_v34, %v3027_v22 }
 0x30e   :  { %606 = vrot.lane.b32.xlu2 %v598_v49, %s2656_s28  ;;  %602 = vrot.lane.b32.xlu0 %v596_v2, %s2656_s28  ;;  %v396_v49 = vmul.f32 %v2883_v53, %v2839_v21  ;;  %v437_v2 = vsel %vm173_vm2, %v2950_v48, %v3032_v46 }
 0x30f   :  { %604 = vrot.lane.b32.xlu1 %v597_v51, %s2656_s28 }
 0x310   :  { %v423_v51 = vadd.f32 %v418_v14, %v396_v49  ;;  %v302_v14 = vsel %vm173_vm2, %v3012_v60, %v2921_v30  ;;  %v484_v49 = vsel %vm223_vm4, %v3049_v19, %v2970_v63 }
 0x312   :  { %v442_v1 = vadd.f32 %v437_v2, %v423_v51  ;;  %v349_v2 = vsel %vm223_vm4, %v2948_v47, %v3018_v61 }
 0x316   :  { %620 = vrot.lane.b32.xlu0 %v616_v15, %s2666_s3  ;;  %v278_v15 = vsel %vm148_vm1, %v2919_v28, %v3010_v6 }
 0x317   :  { %622 = vrot.lane.b32.xlu1 %v617_v5, %s2666_s3  ;;  %v460_v5 = vsel %vm198_vm3, %v2952_v50, %v3039_v32  ;;  %v283_v39 = vadd.f32 %v278_v15, %v256_v20  ;;  %v366_v20 = vsel %vm365_vm5, %v2887_v56, %v2986_v38  ;;  %v483_v15 = vpop.permute.xlu1 %482  ;;  %vm1166_vm5 = vcmask 867328  }
 0x318   :  { %v466_v13 = vadd.f32 %v460_v5, %v442_v1 }
 0x319   :  { %v307_v0 = vadd.f32 %v302_v14, %v283_v39 }
 0x31a   :  { %v490_v57 = vadd.f32 %v484_v49, %v466_v13 }
 0x31b   :  { %v331_v51 = vadd.f32 %v325_v16, %v307_v0  ;;  %v4267_v0 = vmov 4  }
 0x31c   :  { %2404 = vset.pattern.permute.xlu2 %v4267_v0 }
 0x31d   :  { %v355_v52 = vadd.f32 %v349_v2, %v331_v51  ;;  %651 = vperm.xlu2 %2404, %v2794_v3   ;;  %v515_v2 = vmul.f32 %v2973_v9, %v2839_v21 }
 0x31e   :  { %661 = vperm.xlu0 %2405, %v2794_v3  }
 0x31f   :  { %v371_v1 = vmul.f32 %v366_v20, %v355_v52  ;;  %v3076_v39 = vpop.permute.xlu1 %530  ;;  %v4268_v52 = vmov 14  }
 0x325   :  { %2406 = vset.pattern.permute.xlu2 %v4268_v52 }
 0x326   :  { %497 = vrot.lane.b32.xlu0 %v490_v57, %s2667_s30 }
 0x327   :  { %v3078_v13 = vpop.permute.xlu1 %534 }
 0x328   :  { %v537_v14 = vsel %vm148_vm1, %v2975_v10, %v3078_v13 }
 0x32e   :  { %378 = vrot.lane.b32.xlu0 %v371_v1, %s2668_s12  ;;  %v542_v1 = vadd.f32 %v537_v14, %v515_v2 }
 0x32f   :  { %v3080_v5 = vpop.permute.xlu1 %556 }
 0x330   :  { %v560_v20 = vsel %vm173_vm2, %v2993_v55, %v3080_v5 }
 0x331   :  { %v566_v52 = vadd.f32 %v560_v20, %v542_v1  ;;  %v257_v1 = vmul.f32 %v2850_v29, %v2831_v18 }
 0x337   :  { %v3084_v16 = vpop.permute.xlu1 %578 }
 0x338   :  { %v584_v0 = vsel %vm198_vm3, %v3084_v16, %v3025_v24 }
 0x339   :  { %v590_v17 = vadd.f32 %v584_v0, %v566_v52  ;;  %v417_v0 = vsel %vm148_vm1, %v3020_v7, %v2928_v34  ;;  %v255_v52 = vmul.f32 0.0, %v2850_v29  ;;  %v301_v7 = vsel %vm173_vm2, %v2945_v45, %v3012_v60 }
 0x33a   :  { %v284_v34 = vadd.f32 %v3010_v6, %v257_v1  ;;  %v326_v45 = vsel %vm198_vm3, %v2923_v31, %v3016_v59  ;;  %v561_v31 = vsel %vm173_vm2, %v3080_v5, %v3022_v58 }
 0x33c   :  { %v308_v60 = vadd.f32 %v2921_v30, %v284_v34  ;;  %v514_v30 = vmul.f32 0.0, %v2973_v9  ;;  %v199_v34 = vsel %vm198_vm3, %v2915_v25, %v2941_v43 }
 0x33f   :  { %v3086_v57 = vpop.permute.xlu1 %582 }
 0x380   :  { %v3092_v49 = vpop.permute.xlu0 %602 }
 0x381   :  { %v3096_v51 = vpop.permute.xlu1 %604 }
 0x382   :  { %v608_v27 = vsel %vm223_vm4, %v3092_v49, %v3096_v51 }
 0x383   :  { %v614_v8 = vadd.f32 %v608_v27, %v590_v17  ;;  %v395_v27 = vmul.f32 0.0, %v2883_v53 }
 0x385   :  { %v422_v17 = vadd.f32 %v417_v0, %v395_v27  ;;  %v607_v27 = vpop.permute.xlu2 %606 }
 0x388   :  { %v3107_v4 = vpop.permute.xlu0 %620 }
 0x389   :  { %v623_v40 = vpop.permute.xlu1 %622 }
 0x38a   :  { %v625_v37 = vsel %vm624_vm6, %v3107_v4, %v623_v40  ;;  %vm1537_vm6 = vcmask 973824  }
 0x38b   :  { %v630_v44 = vmul.f32 %v625_v37, %v614_v8  ;;  %v397_v8 = vmul.f32 %v2883_v53, %v2831_v18  ;;  %v277_v37 = vsel %vm148_vm1, %v3008_v36, %v2919_v28  ;;  %v461_v53 = vsel %vm198_vm3, %v3039_v32, %v2968_v62 }
 0x38c   :  { %v282_v28 = vadd.f32 %v277_v37, %v255_v52  ;;  %v441_v36 = vadd.f32 %v2950_v48, %v422_v17  ;;  %v332_v62 = vadd.f32 %v326_v45, %v308_v60  ;;  %v127_v37 = vmul.f32 %v2846_v26, %v2839_v21 }
 0x38d   :  { %637 = vrot.lane.b32.xlu0 %v630_v44, %s2671_s13 }
 0x390   :  { %v662_v14 = vpop.permute.xlu0 %661 }
 0x391   :  { %v665_v2 = vmul.f32 %v662_v14, %v2839_v21  ;;  %v664_v20 = vmul.f32 0.0, %v662_v14  ;;  %v666_v44 = vmul.f32 %v662_v14, %v2831_v18  ;;  %v306_v14 = vadd.f32 %v301_v7, %v282_v28 }
 0x393   :  { %672 = vrot.lane.b32.xlu2 %v665_v2, %s2657_s29  ;;  %670 = vrot.lane.b32.xlu1 %v664_v20, %s2657_s29  ;;  %v424_v2 = vadd.f32 %v3027_v22, %v397_v8  ;;  %v485_v22 = vsel %vm223_vm4, %v2970_v63, %v483_v15  ;;  %v465_v20 = vadd.f32 %v2952_v50, %v441_v36  ;;  %v4293_v36 = vld [vmem:[#allocation22_spill] sm:$0xff] }
 0x394   :  { %v330_v32 = vadd.f32 %v3014_v12, %v306_v14  ;;  %v536_v12 = vsel %vm148_vm1, %v3076_v39, %v2975_v10  ;;  %v585_v10 = vsel %vm198_vm3, %v3025_v24, %v3086_v57  ;;  %v3180_v57 = vpop.permute.xlu2 %651 }
 0x395   :  { %v443_v29 = vadd.f32 %v3032_v46, %v424_v2  ;;  %v489_v6 = vadd.f32 %v3049_v19, %v465_v20  ;;  %v350_v46 = vsel %vm223_vm4, %v3018_v61, %v2926_v33  ;;  %v516_v19 = vmul.f32 %v2973_v9, %v2831_v18  ;;  %v4294_v20 = vld [vmem:[#allocation23_spill] sm:$0xff] }
 0x396   :  { %v354_v50 = vadd.f32 %v2948_v47, %v330_v32  ;;  %v356_v63 = vadd.f32 %v350_v46, %v332_v62  ;;  %v541_v33 = vadd.f32 %v536_v12, %v514_v30  ;;  %v609_v9 = vsel %vm223_vm4, %v3096_v51, %v607_v27 }
 0x397   :  { %v467_v0 = vadd.f32 %v461_v53, %v443_v29  ;;  %v543_v59 = vadd.f32 %v3078_v13, %v516_v19  ;;  %v175_v2 = vsel %vm173_vm2, %v2911_v23, %v2939_v42  ;;  %v224_v29 = vsel %vm223_vm4, %v4293_v36, %v3006_v35 }
 0x398   :  { %v370_v61 = vmul.f32 %v2887_v56, %v354_v50  ;;  %v372_v47 = vmul.f32 %v2986_v38, %v356_v63  ;;  %v565_v15 = vadd.f32 %v2993_v55, %v541_v33  ;;  %v4274_v55 = vmov 19   ;;  %v3202_v53 = vpop.permute.xlu0 %497 }
 0x399   :  { %v491_v48 = vadd.f32 %v485_v22, %v467_v0  ;;  %v567_v39 = vadd.f32 %v561_v31, %v543_v59  ;;  %2407 = vset.pattern.permute.xlu0 %v4274_v55  ;;  %v4295_v0 = vld [vmem:[#allocation20_spill] sm:$0xff]  ;;  %v2673_v63 = vmov 24  }
 0x39a   :  { %v589_v58 = vadd.f32 %v3084_v16, %v565_v15  ;;  %v241_v45 = vsel %vm240_vm7, %v4295_v0, %v4294_v20  ;;  %vm993_vm7 = vcmask 842752  }
 0x39b   :  { %685 = vperm.xlu2 %2406, %v2794_v3   ;;  %674 = vrot.lane.b32.xlu1 %v666_v44, %s2657_s29  ;;  %v591_v56 = vadd.f32 %v585_v10, %v567_v39  ;;  %v150_v44 = vsel %vm148_vm1, %v2991_v54, %v2907_v11 }
 0x39c   :  { %v613_v38 = vadd.f32 %v3092_v49, %v589_v58  ;;  %v155_v1 = vadd.f32 %v150_v44, %v127_v37  ;;  %v656_v44 = vmul.f32 %v3180_v57, %v2831_v18 }
 0x39d   :  { %v615_v13 = vadd.f32 %v609_v9, %v591_v56 }
 0x39e   :  { %v629_v5 = vmul.f32 %v3107_v4, %v613_v38  ;;  %v180_v7 = vadd.f32 %v175_v2, %v155_v1  ;;  %v655_v2 = vmul.f32 %v3180_v57, %v2839_v21 }
 0x39f   :  { %v631_v24 = vmul.f32 %v623_v40, %v615_v13  ;;  %v4292_v40 = vmov 14  }
 0x3a0   :  { %v205_v22 = vadd.f32 %v199_v34, %v180_v7  ;;  %v3214_v32 = vpop.permute.xlu0 %378 }
 0x3a2   :  { %v230_v14 = vadd.f32 %v224_v29, %v205_v22 }
 0x3a3   :  { %495 = vrot.lane.b32.xlu2 %v489_v6, %s2667_s30  ;;  %499 = vrot.lane.b32.xlu1 %v491_v48, %s2667_s30 }
 0x3a4   :  { %v246_v60 = vmul.f32 %v241_v45, %v230_v14  ;;  %2408 = vset.pattern.permute.xlu2 %v2673_v63 }
 0x3ab   :  { %376 = vrot.lane.b32.xlu2 %v370_v61, %s2668_s12  ;;  %380 = vrot.lane.b32.xlu1 %v372_v47, %s2668_s12  ;;  %v4296_v61 = vmov 0  }
 0x3b3   :  { %635 = vrot.lane.b32.xlu2 %v629_v5, %s2671_s13  ;;  %639 = vrot.lane.b32.xlu1 %v631_v24, %s2671_s13  ;;  %v4298_v5 = vld [vmem:[#allocation18_spill] sm:$0xff] }
 0x3b4   :  { %v757_v24 = vperm.slane %v4298_v5, 4  ;;  %v4299_v5 = vmov 21  }
 0x3ed   :  { %v3182_v17 = vpop.permute.xlu2 %672 }
 0x3f5   :  { %v686_v51 = vpop.permute.xlu2 %685 }
 0x3f6   :  { %v690_v16 = vmul.f32 %v686_v51, %v2867_v41  ;;  %v689_v49 = vmul.f32 %v686_v51, %v2831_v18  ;;  %v688_v8 = vmul.f32 %v686_v51, %v2839_v21 }
 0x3f8   :  { %698 = vrot.lane.b32.xlu2 %v690_v16, %s2654_s27  ;;  %696 = vrot.lane.b32.xlu1 %v689_v49, %s2654_s27 }
 0x3f9   :  { %694 = vrot.lane.b32.xlu0 %v688_v8, %s2654_s27 }
 0x3fd   :  { %v3237_v47 = vpop.permute.xlu2 %495 }
 0x3ff   :  { %v3227_v12 = vpop.permute.xlu0 %637 }
 0x401   :  { %709 = vperm.xlu0 %2407, %v2794_v3  }
 0x405   :  { %v671_v4 = vpop.permute.xlu1 %670  ;;  %v3239_v10 = vpop.permute.xlu2 %376 }
 0x406   :  { %v676_v8 = vsel %vm148_vm1, %v671_v4, %v3182_v17 }
 0x409   :  { %2411 = vset.pattern.permute.xlu0 %v4292_v40  ;;  %v654_v40 = vmul.f32 0.0, %v3180_v57 }
 0x40b   :  { %v681_v7 = vadd.f32 %v676_v8, %v654_v40 }
 0x40d   :  { %v3197_v52 = vpop.permute.xlu1 %674  ;;  %v3241_v15 = vpop.permute.xlu2 %635 }
 0x40e   :  { %v677_v37 = vsel %vm148_vm1, %v3182_v17, %v3197_v52  ;;  %v683_v22 = vadd.f32 %v3197_v52, %v656_v44 }
 0x40f   :  { %v682_v14 = vadd.f32 %v677_v37, %v655_v2  ;;  %v2676_v2 = vmov 28  }
 0x415   :  { %v3204_v28 = vpop.permute.xlu1 %499 }
 0x416   :  { %v503_v62 = vsel %vm501_vm9, %v3202_v53, %v3204_v28 }
 0x41d   :  { %v3216_v6 = vpop.permute.xlu1 %380 }
 0x41e   :  { %v384_v48 = vsel %vm382_vm8, %v3214_v32, %v3216_v6 }
 0x41f   :  { %v389_v46 = vadd.f32 %v384_v48, %v246_v60 }
 0x421   :  { %v3224_v50 = vadd.f32 %v503_v62, %v389_v46 }
 0x425   :  { %v3251_v51 = vpop.permute.xlu1 %639 }
 0x452   :  { %v699_v39 = vpop.permute.xlu2 %698 }
 0x46b   :  { %v695_v30 = vpop.permute.xlu0 %694 }
 0x46c   :  { %v705_v45 = vadd.f32 %v695_v30, %v681_v7 }
 0x473   :  { %v710_v19 = vpop.permute.xlu0 %709 }
 0x474   :  { %v713_v31 = vmul.f32 %v710_v19, %v2831_v18  ;;  %v712_v33 = vmul.f32 %v710_v19, %v2839_v21  ;;  %v714_v59 = vmul.f32 %v710_v19, %v2867_v41 }
 0x476   :  { %720 = vrot.lane.b32.xlu2 %v713_v31, %s2655_s0  ;;  %718 = vrot.lane.b32.xlu1 %v712_v33, %s2655_s0 }
 0x47e   :  { %733 = vperm.xlu2 %2408, %v2794_v3   ;;  %722 = vrot.lane.b32.xlu1 %v714_v59, %s2655_s0  ;;  %v4297_v3 = vld [vmem:[#allocation19_spill] sm:$0xff] }
 0x47f   :  { %v756_v13 = vperm.slane %v4297_v3, 4  ;;  %v790_v3 = vld [vmem:[%s4235_s2] sm:$0xff]  ;;  %s2678_s2 = smov 32  }
 0x486   :  { %2409 = vset.pattern.permute.xlu2 %v4296_v61 }
 0x4d0   :  { %v721_v27 = vpop.permute.xlu2 %720 }
 0x4d8   :  { %v734_v9 = vpop.permute.xlu2 %733 }
 0x4d9   :  { %v738_v58 = vmul.f32 %v734_v9, %v2867_v41  ;;  %v736_v56 = vmul.f32 %v734_v9, %v2839_v21  ;;  %v737_v38 = vmul.f32 %v734_v9, %v2831_v18  ;;  %v697_v41 = vpop.permute.xlu1 %696 }
 0x4da   :  { %v701_v34 = vsel %vm173_vm2, %v697_v41, %v699_v39  ;;  %v700_v4 = vsel %vm173_vm2, %v695_v30, %v697_v41  ;;  %v643_v41 = vsel %vm641_vm11, %v3227_v12, %v3251_v51 }
 0x4db   :  { %746 = vrot.lane.b32.xlu2 %v738_v58, %s2656_s28  ;;  %742 = vrot.lane.b32.xlu0 %v736_v56, %s2656_s28  ;;  %v707_v48 = vadd.f32 %v701_v34, %v683_v22  ;;  %v706_v62 = vadd.f32 %v700_v4, %v682_v14  ;;  %v4301_v14 = vmov 8  }
 0x4dc   :  { %744 = vrot.lane.b32.xlu1 %v737_v38, %s2656_s28 }
 0x4e3   :  { %760 = vrot.lane.b32.xlu0 %v756_v13, %s2674_s14  ;;  %v3273_v13 = vld [vmem:[#allocation7] sm:$0xff] }
 0x4e4   :  { %762 = vrot.lane.b32.xlu1 %v757_v24, %s2674_s14  ;;  %v4300_v24 = vmov 1  }
 0x4e8   :  { %v719_v16 = vpop.permute.xlu1 %718 }
 0x4e9   :  { %v724_v46 = vsel %vm198_vm3, %v719_v16, %v721_v27  ;;  %v729_v19 = vadd.f32 %v719_v16, %v705_v45 }
 0x4ea   :  { %v730_v33 = vadd.f32 %v724_v46, %v706_v62  ;;  %v4302_v46 = vmov 15  }
 0x4f0   :  { %v723_v49 = vpop.permute.xlu1 %722 }
 0x4f1   :  { %v725_v60 = vsel %vm198_vm3, %v721_v27, %v723_v49  ;;  %v648_v49 = vadd.f32 %v643_v41, %v3224_v50 }
 0x4f2   :  { %v731_v57 = vadd.f32 %v725_v60, %v707_v48  ;;  %v2679_v48 = vmov 42  }
 0x535   :  { %v747_v17 = vpop.permute.xlu2 %746 }
 0x54d   :  { %v743_v1 = vpop.permute.xlu0 %742 }
 0x54e   :  { %v745_v29 = vpop.permute.xlu1 %744  ;;  %v753_v59 = vadd.f32 %v743_v1, %v729_v19 }
 0x54f   :  { %v749_v21 = vsel %vm223_vm4, %v745_v29, %v747_v17  ;;  %v748_v31 = vsel %vm223_vm4, %v743_v1, %v745_v29  ;;  %v2677_v29 = vmov 35   ;;  %v3316_v17 = vld [vmem:[#allocation12 + $0x8] sm:$0x7f] }
 0x550   :  { %v755_v52 = vadd.f32 %v749_v21, %v731_v57  ;;  %v754_v9 = vadd.f32 %v748_v31, %v730_v33  ;;  %v986_v62 = vperm.slane %v3316_v17, 0  ;;  %v4303_v57 = vmov 0.0  }
 0x551   :  { %803 = vst.msk [vmem:[#allocation3 + $0x28] sm:$0xff] %vm802_vm13, %v4303_v57 }
 0x555   :  { %v761_v39 = vpop.permute.xlu0 %760 }
 0x556   :  { %v769_v30 = vmul.f32 %v761_v39, %v753_v59  ;;  %v763_v58 = vpop.permute.xlu1 %762 }
 0x557   :  { %v765_v56 = vsel %vm764_vm10, %v761_v39, %v763_v58  ;;  %v771_v38 = vmul.f32 %v763_v58, %v755_v52  ;;  %v128_v52 = vmul.f32 %v2846_v26, %v2831_v18  ;;  %v4305_v18 = vld [vmem:[#allocation21_spill] sm:$0xff]  ;;  %vm1896_vm10 = vcmask 965632  }
 0x558   :  { %775 = vrot.lane.b32.xlu2 %v769_v30, %s2675_s7  ;;  %v770_v27 = vmul.f32 %v765_v56, %v754_v9  ;;  %v3333_v39 = vld [vmem:[#allocation3 + $0x28] sm:$0xff] }
 0x559   :  { %779 = vrot.lane.b32.xlu1 %v771_v38, %s2675_s7  ;;  %v156_v9 = vadd.f32 %v2907_v11, %v128_v52  ;;  %v4304_v38 = vld [vmem:[#allocation26_spill] sm:$0xff]  ;;  %v225_v11 = vsel %vm223_vm4, %v3006_v35, %v4305_v18  ;;  %v4306_v35 = vmov 2   ;;  %v1159_v18 = vperm.slane %v3316_v17, 1 }
 0x55a   :  { %777 = vrot.lane.b32.xlu0 %v770_v27, %s2675_s7  ;;  %v200_v27 = vsel %vm198_vm3, %v2941_v43, %v4304_v38  ;;  %v2685_v38 = vmov 43  }
 0x560   :  { %793 = vperm.xlu2 %2409, %v790_v3   ;;  %v181_v3 = vadd.f32 %v2939_v42, %v156_v9  ;;  %v642_v9 = vsel %vm641_vm11, %v3241_v15, %v3227_v12  ;;  %v2683_v12 = vmov 36  }
 0x561   :  { %841 = vperm.xlu1 %2410, %v3273_v13  }
 0x562   :  { %865 = vperm.xlu0 %2411, %v3273_v13  }
 0x568   :  { %2412 = vset.pattern.permute.xlu2 %v4299_v5  ;;  %v3350_v5 = vld [vmem:[#allocation12] sm:$0x7f] }
 0x569   :  { %2416 = vset.pattern.permute.xlu1 %v4300_v24  ;;  %v206_v24 = vadd.f32 %v200_v27, %v181_v3  ;;  %v4314_v27 = vmov 16  }
 0x56a   :  { %2413 = vset.pattern.permute.xlu0 %v2676_v2 }
 0x56b   :  { %v231_v41 = vadd.f32 %v225_v11, %v206_v24 }
 0x5b2   :  { %v3297_v7 = vpop.permute.xlu2 %775 }
 0x5ba   :  { %v3299_v50 = vpop.permute.xlu2 %793 }
 0x5cb   :  { %v3282_v16 = vpop.permute.xlu1 %779 }
 0x5cc   :  { %v3285_v8 = vpop.permute.xlu0 %777 }
 0x5cd   :  { %v783_v40 = vsel %vm781_vm12, %v3285_v8, %v3282_v16 }
 0x5ce   :  { %v3290_v44 = vadd.f32 %v783_v40, %v648_v49  ;;  %v985_v49 = vperm.slane %v3350_v5, 0  ;;  %v247_v40 = vmul.f32 %v4294_v20, %v231_v41  ;;  %v4307_v20 = vmov 22  }
 0x5d0   :  { %v390_v42 = vadd.f32 %v3216_v6, %v247_v40 }
 0x5d2   :  { %v509_v43 = vadd.f32 %v3204_v28, %v390_v42  ;;  %v4309_v28 = vld [vmem:[#allocation24_spill] sm:$0xff] }
 0x5d3   :  { %v3292_v37 = vpop.permute.xlu1 %841 }
 0x5d4   :  { %v844_v1 = vmul.f32 0.0, %v3292_v37  ;;  %v3301_v34 = vpop.permute.xlu0 %865 }
 0x5d5   :  { %v868_v22 = vmul.f32 0.0, %v3301_v34 }
 0x5d6   :  { %850 = vrot.lane.b32.xlu2 %v844_v1, %s2655_s0  ;;  %v649_v1 = vadd.f32 %v3251_v51, %v509_v43  ;;  %v149_v51 = vsel %vm148_vm1, %v4309_v28, %v2991_v54  ;;  %v383_v54 = vsel %vm382_vm8, %v3239_v10, %v3214_v32  ;;  %v782_v32 = vsel %vm781_vm12, %v3297_v7, %v3285_v8 }
 0x5d7   :  { %874 = vrot.lane.b32.xlu1 %v868_v22, %s2678_s2  ;;  %v3370_v22 = vld [vmem:[#allocation3 + $0x8] sm:$0xff]  ;;  %v2684_v7 = vmov 29   ;;  %v1158_v28 = vperm.slane %v3350_v5, 1  ;;  %vm1370_vm8 = vcmask 998400   ;;  %vm2140_vm12 = vcmask 64512  }
 0x5d8   :  { %v789_v2 = vadd.f32 %v3282_v16, %v649_v1  ;;  %v126_v16 = vmul.f32 %v3370_v22, %v2846_v26 }
 0x5de   :  { %889 = vperm.xlu2 %2412, %v3273_v13  }
 0x5e6   :  { %2414 = vset.pattern.permute.xlu2 %v2677_v29  ;;  %v798_v29 = vadd.f32 %v3299_v50, %v789_v2 }
 0x5e7   :  { %937 = vperm.xlu2 %2414, %v3273_v13  }
 0x5ef   :  { %2417 = vset.pattern.permute.xlu2 %v4301_v14  ;;  %v4310_v14 = vld [vmem:[#allocation25_spill] sm:$0xff] }
 0x630   :  { %v3306_v4 = vpop.permute.xlu2 %850 }
 0x638   :  { %v3309_v45 = vpop.permute.xlu2 %889 }
 0x639   :  { %v892_v60 = vmul.f32 0.0, %v3309_v45 }
 0x63b   :  { %898 = vrot.lane.b32.xlu0 %v892_v60, %s2657_s29  ;;  %v174_v60 = vsel %vm173_vm2, %v4310_v14, %v2911_v23  ;;  %v502_v23 = vsel %vm501_vm9, %v3237_v47, %v3202_v53  ;;  %v4317_v14 = vmov 23   ;;  %vm1708_vm9 = vcmask 941056  }
 0x641   :  { %v3319_v19 = vpop.permute.xlu2 %937 }
 0x642   :  { %v942_v21 = vmul.f32 0.0, %v3319_v19 }
 0x643   :  { %913 = vperm.xlu0 %2413, %v3273_v13  }
 0x644   :  { %950 = vrot.lane.b32.xlu2 %v942_v21, %s2681_s18 }
 0x64b   :  { %2415 = vset.pattern.permute.xlu0 %v2679_v48  ;;  %v154_v48 = vadd.f32 %v149_v51, %v126_v16  ;;  %v797_v51 = vadd.f32 %v3299_v50, %v3290_v44  ;;  %v4316_v16 = vmov 3  }
 0x64c   :  { %962 = vperm.xlu0 %2415, %v3273_v13  }
 0x654   :  { %2418 = vset.pattern.permute.xlu0 %v4302_v46  ;;  %v179_v46 = vadd.f32 %v174_v60, %v154_v48  ;;  %v3455_v60 = vpop.permute.xlu1 %874 }
 0x655   :  { %991 = vrot.lane.b32.xlu0 %v986_v62, %s2680_s17 }
 0x656   :  { %v204_v21 = vadd.f32 %v2915_v25, %v179_v46 }
 0x658   :  { %v229_v57 = vadd.f32 %v4293_v36, %v204_v21 }
 0x65a   :  { %v245_v26 = vmul.f32 %v4295_v0, %v229_v57 }
 0x65c   :  { %v388_v52 = vadd.f32 %v383_v54, %v245_v26 }
 0x65e   :  { %v507_v36 = vadd.f32 %v502_v23, %v388_v52 }
 0x660   :  { %v647_v0 = vadd.f32 %v642_v9, %v507_v36 }
 0x662   :  { %v787_v10 = vadd.f32 %v782_v32, %v647_v0  ;;  %v2687_v0 = vmov 30  }
 0x664   :  { %v796_v53 = vadd.f32 %v3299_v50, %v787_v10 }
 0x69e   :  { %v3365_v6 = vpop.permute.xlu2 %950 }
 0x69f   :  { %4308 = vst [vmem:[#allocation22_spill] sm:$0xff] %v3365_v6 }
 0x6ad   :  { %v3325_v31 = vpop.permute.xlu0 %898 }
 0x6b5   :  { %v3327_v33 = vpop.permute.xlu0 %913 }
 0x6b6   :  { %v918_v59 = vmul.f32 0.0, %v3327_v33 }
 0x6b8   :  { %926 = vrot.lane.b32.xlu1 %v918_v59, %s2656_s28 }
 0x6be   :  { %v3336_v30 = vpop.permute.xlu0 %962 }
 0x6bf   :  { %v967_v58 = vmul.f32 %v3336_v30, %v3333_v39  ;;  %v966_v56 = vmul.f32 0.0, %v3336_v30 }
 0x6c1   :  { %975 = vrot.lane.b32.xlu1 %v967_v58, %s2654_s27  ;;  %973 = vrot.lane.b32.xlu2 %v966_v56, %s2654_s27  ;;  %v4313_v56 = vmov 9  }
 0x6c7   :  { %v3416_v3 = vpop.permute.xlu0 %991 }
 0x6c8   :  { %4315 = vst [vmem:[#allocation19_spill] sm:$0xff] %v3416_v3 }
 0x6c9   :  { %989 = vrot.lane.b32.xlu2 %v985_v49, %s2680_s17  ;;  %1005 = vperm.xlu1 %2416, %v3273_v13  }
 0x6d1   :  { %1015 = vperm.xlu2 %2417, %v3273_v13   ;;  %2423 = vset.pattern.permute.xlu1 %v4306_v35 }
 0x6d9   :  { %811 = vrot.lane.b32.xlu2 %v798_v29, %s2682_s1 }
 0x6da   :  { %2419 = vset.pattern.permute.xlu2 %v4307_v20 }
 0x6e1   :  { %1063 = vperm.xlu2 %2419, %v3273_v13  }
 0x6e9   :  { %2421 = vset.pattern.permute.xlu2 %v2683_v12 }
 0x6ea   :  { %1111 = vperm.xlu2 %2421, %v3273_v13  }
 0x6f2   :  { %2424 = vset.pattern.permute.xlu2 %v4313_v56 }
 0x71b   :  { %v3377_v62 = vpop.permute.xlu2 %973 }
 0x71c   :  { %4311 = vst [vmem:[#allocation23_spill] sm:$0xff] %v3377_v62 }
 0x723   :  { %v3381_v59 = vpop.permute.xlu2 %989 }
 0x724   :  { %4312 = vst [vmem:[#allocation20_spill] sm:$0xff] %v3381_v59 }
 0x72a   :  { %v3457_v48 = vpop.permute.xlu1 %926 }
 0x72b   :  { %v3393_v25 = vpop.permute.xlu2 %1015  ;;  %4318 = vst [vmem:[#allocation18_spill] sm:$0xff] %v3457_v48 }
 0x72c   :  { %v1018_v58 = vmul.f32 %v3370_v22, %v3393_v25 }
 0x72e   :  { %1024 = vrot.lane.b32.xlu0 %v1018_v58, %s2655_s0 }
 0x733   :  { %v3403_v47 = vpop.permute.xlu2 %811  ;;  %v3461_v21 = vpop.permute.xlu1 %975 }
 0x734   :  { %4319 = vst [vmem:[#allocation26_spill] sm:$0xff] %v3461_v21 }
 0x736   :  { %807 = vrot.lane.b32.xlu0 %v796_v53, %s2682_s1 }
 0x73b   :  { %v3407_v15 = vpop.permute.xlu2 %1063  ;;  %v3463_v57 = vpop.permute.xlu1 %1005 }
 0x73c   :  { %v1066_v8 = vmul.f32 %v3370_v22, %v3407_v15 }
 0x73e   :  { %1039 = vperm.xlu0 %2418, %v3273_v13  }
 0x744   :  { %v3421_v24 = vpop.permute.xlu2 %1111 }
 0x745   :  { %v1116_v41 = vmul.f32 %v3370_v22, %v3421_v24 }
 0x746   :  { %1072 = vrot.lane.b32.xlu0 %v1066_v8, %s2657_s29 }
 0x747   :  { %2420 = vset.pattern.permute.xlu0 %v2684_v7  ;;  %1124 = vrot.lane.b32.xlu2 %v1116_v41, %s2681_s18 }
 0x74e   :  { %1087 = vperm.xlu0 %2420, %v3273_v13  }
 0x756   :  { %2422 = vset.pattern.permute.xlu0 %v2685_v38 }
 0x757   :  { %1135 = vperm.xlu0 %2422, %v3273_v13  }
 0x75f   :  { %2425 = vset.pattern.permute.xlu0 %v4314_v27 }
 0x760   :  { %1164 = vrot.lane.b32.xlu0 %v1159_v18, %s2686_s19 }
 0x7a0   :  { %v3419_v11 = vpop.permute.xlu0 %1024 }
 0x7a1   :  { %v3459_v46 = vpop.permute.xlu2 %1124 }
 0x7a8   :  { %v808_v49 = vpop.permute.xlu0 %807 }
 0x7b0   :  { %v3426_v40 = vpop.permute.xlu0 %1039 }
 0x7b1   :  { %v1042_v42 = vmul.f32 %v3370_v22, %v3426_v40 }
 0x7b3   :  { %1048 = vrot.lane.b32.xlu1 %v1042_v42, %s2678_s2 }
 0x7b8   :  { %v3431_v43 = vpop.permute.xlu0 %1072 }
 0x7c0   :  { %v3433_v1 = vpop.permute.xlu0 %1087 }
 0x7c1   :  { %v1092_v35 = vmul.f32 %v3370_v22, %v3433_v1 }
 0x7c3   :  { %1100 = vrot.lane.b32.xlu1 %v1092_v35, %s2656_s28 }
 0x7c9   :  { %v3438_v2 = vpop.permute.xlu0 %1135 }
 0x7ca   :  { %v1139_v29 = vmul.f32 %v3370_v22, %v3438_v2  ;;  %v1140_v20 = vmul.f32 %v3438_v2, %v3333_v39 }
 0x7cc   :  { %1148 = vrot.lane.b32.xlu1 %v1140_v20, %s2654_s27  ;;  %1146 = vrot.lane.b32.xlu2 %v1139_v29, %s2654_s27 }
 0x7d2   :  { %v3529_v29 = vpop.permute.xlu0 %1164 }
 0x7d4   :  { %1192 = vperm.xlu1 %2423, %v3273_v13   ;;  %1162 = vrot.lane.b32.xlu2 %v1158_v28, %s2686_s19 }
 0x7dc   :  { %809 = vrot.lane.b32.xlu1 %v797_v51, %s2682_s1  ;;  %1202 = vperm.xlu2 %2424, %v3273_v13  }
 0x7dd   :  { %2430 = vset.pattern.permute.xlu1 %v4316_v16 }
 0x7e4   :  { %2426 = vset.pattern.permute.xlu2 %v4317_v14 }
 0x7e5   :  { %1250 = vperm.xlu2 %2426, %v3273_v13  }
 0x825   :  { %v3467_v50 = vpop.permute.xlu1 %1048 }
 0x826   :  { %v3465_v44 = vpop.permute.xlu2 %1146 }
 0x82e   :  { %v3469_v54 = vpop.permute.xlu2 %1162 }
 0x835   :  { %v3471_v26 = vpop.permute.xlu1 %1100 }
 0x836   :  { %v3473_v52 = vpop.permute.xlu2 %1202 }
 0x837   :  { %v1205_v23 = vmul.f32 %v3370_v22, %v3473_v52 }
 0x839   :  { %1211 = vrot.lane.b32.xlu0 %v1205_v23, %s2655_s0 }
 0x83e   :  { %v3478_v9 = vpop.permute.xlu1 %1148 }
 0x83f   :  { %v3481_v36 = vpop.permute.xlu2 %1250 }
 0x840   :  { %v1253_v58 = vmul.f32 %v3370_v22, %v3481_v36 }
 0x841   :  { %1226 = vperm.xlu0 %2425, %v3273_v13  }
 0x846   :  { %v3485_v32 = vpop.permute.xlu1 %1192 }
 0x849   :  { %1259 = vrot.lane.b32.xlu0 %v1253_v58, %s2657_s29  ;;  %v2688_v58 = vmov 37  }
 0x84a   :  { %2427 = vset.pattern.permute.xlu0 %v2687_v0  ;;  %2428 = vset.pattern.permute.xlu2 %v2688_v58 }
 0x84e   :  { %v810_v10 = vpop.permute.xlu1 %809 }
 0x84f   :  { %v3488_v53 = vsel %vm813_vm14, %v808_v49, %v810_v10  ;;  %v3491_v12 = vsel %vm813_vm14, %v810_v10, %v3403_v47 }
 0x850   :  { %818 = vst [vmem:[#allocation3 + $0x10] sm:$0xff] %v3488_v53  ;;  %v846_v56 = vmul.f32 %v3292_v37, %v3491_v12  ;;  %v940_v8 = vmul.f32 %v3319_v19, %v3488_v53  ;;  %v869_v7 = vmul.f32 %v3301_v34, %v3488_v53  ;;  %v1114_v47 = vmul.f32 %v3421_v24, %v3488_v53 }
 0x851   :  { %819 = vst [vmem:[#allocation3 + $0x18] sm:$0xff] %v3491_v12  ;;  %v894_v38 = vmul.f32 %v3309_v45, %v3491_v12  ;;  %v917_v27 = vmul.f32 %v3327_v33, %v3491_v12  ;;  %v1020_v18 = vmul.f32 %v3393_v25, %v3491_v12  ;;  %v1043_v41 = vmul.f32 %v3426_v40, %v3488_v53 }
 0x852   :  { %854 = vrot.lane.b32.xlu2 %v846_v56, %s2655_s0  ;;  %946 = vrot.lane.b32.xlu0 %v940_v8, %s2681_s18  ;;  %v1068_v49 = vmul.f32 %v3407_v15, %v3491_v12  ;;  %v1091_v42 = vmul.f32 %v3433_v1, %v3491_v12  ;;  %v1207_v35 = vmul.f32 %v3473_v52, %v3491_v12 }
 0x853   :  { %v845_v14 = vmul.f32 %v3292_v37, %v3488_v53  ;;  %v1255_v23 = vmul.f32 %v3481_v36, %v3491_v12  ;;  %v870_v10 = vmul.f32 %v3301_v34, %v3491_v12  ;;  %v893_v37 = vmul.f32 %v3309_v45, %v3488_v53 }
 0x85a   :  { %876 = vrot.lane.b32.xlu2 %v869_v7, %s2678_s2  ;;  %1120 = vrot.lane.b32.xlu0 %v1114_v47, %s2681_s18  ;;  %v916_v47 = vmul.f32 %v3327_v33, %v3488_v53 }
 0x862   :  { %902 = vrot.lane.b32.xlu2 %v894_v38, %s2657_s29  ;;  %1274 = vperm.xlu0 %2427, %v3273_v13  }
 0x86a   :  { %924 = vrot.lane.b32.xlu2 %v917_v27, %s2656_s28 }
 0x872   :  { %1028 = vrot.lane.b32.xlu2 %v1020_v18, %s2655_s0  ;;  %v941_v18 = vmul.f32 %v3319_v19, %v3491_v12  ;;  %v1044_v19 = vmul.f32 %v3426_v40, %v3491_v12  ;;  %v1115_v40 = vmul.f32 %v3421_v24, %v3491_v12  ;;  %v2689_v24 = vmov 44  }
 0x873   :  { %2429 = vset.pattern.permute.xlu0 %v2689_v24 }
 0x87a   :  { %1050 = vrot.lane.b32.xlu2 %v1043_v41, %s2678_s2  ;;  %v965_v41 = vmul.f32 %v3336_v30, %v3491_v12  ;;  %v1067_v30 = vmul.f32 %v3407_v15, %v3488_v53  ;;  %v1138_v15 = vmul.f32 %v3438_v2, %v3491_v12  ;;  %v1254_v2 = vmul.f32 %v3481_v36, %v3488_v53 }
 0x882   :  { %1076 = vrot.lane.b32.xlu2 %v1068_v49, %s2657_s29  ;;  %v1019_v49 = vmul.f32 %v3393_v25, %v3488_v53  ;;  %v1090_v25 = vmul.f32 %v3433_v1, %v3488_v53 }
 0x88a   :  { %1098 = vrot.lane.b32.xlu2 %v1091_v42, %s2656_s28  ;;  %v4323_v42 = vmov 10  }
 0x892   :  { %1215 = vrot.lane.b32.xlu2 %v1207_v35, %s2655_s0 }
 0x8ab   :  { %v3531_v20 = vpop.permute.xlu0 %1211 }
 0x8ac   :  { %v3552_v8 = vpop.permute.xlu2 %854 }
 0x8ad   :  { %4321 = vst [vmem:[#allocation24_spill] sm:$0xff] %v3552_v8 }
 0x8b3   :  { %v1227_v28 = vpop.permute.xlu0 %1226 }
 0x8b4   :  { %v1229_v51 = vmul.f32 %v3370_v22, %v1227_v28  ;;  %v1230_v16 = vmul.f32 %v1227_v28, %v3488_v53  ;;  %v3560_v38 = vpop.permute.xlu2 %876  ;;  %v1231_v58 = vmul.f32 %v1227_v28, %v3491_v12 }
 0x8b6   :  { %1237 = vrot.lane.b32.xlu2 %v1230_v16, %s2678_s2  ;;  %1235 = vrot.lane.b32.xlu1 %v1229_v51, %s2678_s2 }
 0x8bb   :  { %v3543_v0 = vpop.permute.xlu0 %1259 }
 0x8bc   :  { %v3567_v45 = vpop.permute.xlu2 %902 }
 0x8be   :  { %1263 = vrot.lane.b32.xlu2 %v1255_v23, %s2657_s29  ;;  %852 = vrot.lane.b32.xlu1 %v845_v14, %s2655_s0  ;;  %v1206_v23 = vmul.f32 %v3473_v52, %v3488_v53 }
 0x8c4   :  { %v3548_v56 = vpop.permute.xlu0 %946  ;;  %v3573_v33 = vpop.permute.xlu2 %924 }
 0x8c5   :  { %4320 = vst [vmem:[#allocation21_spill] sm:$0xff] %v3548_v56 }
 0x8c6   :  { %878 = vrot.lane.b32.xlu1 %v870_v10, %s2678_s2  ;;  %4322 = vst [vmem:[#allocation25_spill] sm:$0xff] %v3573_v33 }
 0x8cc   :  { %v3555_v7 = vpop.permute.xlu0 %1120  ;;  %v3581_v35 = vpop.permute.xlu2 %1028 }
 0x8ce   :  { %900 = vrot.lane.b32.xlu1 %v893_v37, %s2657_s29 }
 0x8d4   :  { %v1275_v34 = vpop.permute.xlu0 %1274  ;;  %v3587_v51 = vpop.permute.xlu2 %1050 }
 0x8d5   :  { %v1278_v27 = vmul.f32 %v1275_v34, %v3491_v12  ;;  %v1277_v52 = vmul.f32 %v1275_v34, %v3488_v53  ;;  %v1279_v28 = vmul.f32 %v3370_v22, %v1275_v34 }
 0x8d6   :  { %922 = vrot.lane.b32.xlu1 %v916_v47, %s2656_s28 }
 0x8d7   :  { %1285 = vrot.lane.b32.xlu2 %v1278_v27, %s2656_s28 }
 0x8dc   :  { %v3592_v16 = vpop.permute.xlu2 %1076 }
 0x8de   :  { %948 = vrot.lane.b32.xlu1 %v941_v18, %s2681_s18 }
 0x8df   :  { %1298 = vperm.xlu2 %2428, %v3273_v13  }
 0x8e4   :  { %v3597_v14 = vpop.permute.xlu2 %1098 }
 0x8e6   :  { %971 = vrot.lane.b32.xlu1 %v965_v41, %s2654_s27 }
 0x8e7   :  { %2431 = vset.pattern.permute.xlu2 %v4323_v42 }
 0x8ec   :  { %v3604_v1 = vpop.permute.xlu2 %1215 }
 0x8ee   :  { %1026 = vrot.lane.b32.xlu1 %v1019_v49, %s2655_s0  ;;  %v4324_v49 = vmov 17  }
 0x8f6   :  { %1052 = vrot.lane.b32.xlu1 %v1044_v19, %s2678_s2 }
 0x8fe   :  { %1074 = vrot.lane.b32.xlu1 %v1067_v30, %s2657_s29  ;;  %v1346_v30 = vperm.slane %v3316_v17, 2  ;;  %v1345_v17 = vperm.slane %v3350_v5, 2 }
 0x906   :  { %1096 = vrot.lane.b32.xlu1 %v1090_v25, %s2656_s28 }
 0x90e   :  { %1122 = vrot.lane.b32.xlu1 %v1115_v40, %s2681_s18 }
 0x910   :  { %v3608_v10 = vpop.permute.xlu2 %1237 }
 0x916   :  { %1144 = vrot.lane.b32.xlu1 %v1138_v15, %s2654_s27 }
 0x918   :  { %v3614_v37 = vpop.permute.xlu2 %1263 }
 0x91e   :  { %1213 = vrot.lane.b32.xlu1 %v1206_v23, %s2655_s0 }
 0x926   :  { %1239 = vrot.lane.b32.xlu1 %v1231_v58, %s2678_s2 }
 0x928   :  { %v1236_v34 = vpop.permute.xlu1 %1235 }
 0x929   :  { %v1241_v8 = vsel %vm802_vm13, %v1236_v34, %v3608_v10 }
 0x92e   :  { %1261 = vrot.lane.b32.xlu1 %v1254_v2, %s2657_s29 }
 0x930   :  { %v3630_v42 = vpop.permute.xlu1 %852 }
 0x931   :  { %v3618_v47 = vpop.permute.xlu2 %1285 }
 0x936   :  { %1283 = vrot.lane.b32.xlu1 %v1277_v52, %s2656_s28 }
 0x938   :  { %v3632_v19 = vpop.permute.xlu1 %878 }
 0x939   :  { %v1299_v27 = vpop.permute.xlu2 %1298  ;;  %4325 = vst [vmem:[#allocation27_spill] sm:$0xff] %v3632_v19 }
 0x93a   :  { %v1301_v18 = vmul.f32 %v1299_v27, %v3488_v53  ;;  %v1303_v41 = vmul.f32 %v3370_v22, %v1299_v27  ;;  %v1302_v36 = vmul.f32 %v1299_v27, %v3491_v12 }
 0x93c   :  { %1311 = vrot.lane.b32.xlu2 %v1303_v41, %s2681_s18  ;;  %1307 = vrot.lane.b32.xlu0 %v1301_v18, %s2681_s18 }
 0x93e   :  { %1287 = vrot.lane.b32.xlu1 %v1279_v28, %s2656_s28 }
 0x940   :  { %v3635_v25 = vpop.permute.xlu1 %900 }
 0x944   :  { %1322 = vperm.xlu0 %2429, %v3273_v13  }
 0x946   :  { %1309 = vrot.lane.b32.xlu1 %v1302_v36, %s2681_s18  ;;  %v4329_v36 = vmov 11  }
 0x948   :  { %v3637_v40 = vpop.permute.xlu1 %922 }
 0x949   :  { %4326 = vst [vmem:[#allocation28_spill] sm:$0xff] %v3637_v40 }
 0x94c   :  { %2432 = vset.pattern.permute.xlu0 %v4324_v49 }
 0x94d   :  { %1351 = vrot.lane.b32.xlu0 %v1346_v30, %s2690_s5 }
 0x950   :  { %v3639_v15 = vpop.permute.xlu1 %948 }
 0x951   :  { %4327 = vst [vmem:[#allocation29_spill] sm:$0xff] %v3639_v15 }
 0x958   :  { %v3641_v23 = vpop.permute.xlu1 %971 }
 0x959   :  { %4328 = vst [vmem:[#allocation30_spill] sm:$0xff] %v3641_v23 }
 0x960   :  { %v3643_v24 = vpop.permute.xlu1 %1026 }
 0x968   :  { %v3650_v27 = vpop.permute.xlu1 %1052 }
 0x970   :  { %v3654_v41 = vpop.permute.xlu1 %1074 }
 0x978   :  { %v3660_v49 = vpop.permute.xlu1 %1096 }
 0x980   :  { %v3662_v5 = vpop.permute.xlu1 %1122 }
 0x988   :  { %v3664_v30 = vpop.permute.xlu1 %1144 }
 0x9ae   :  { %v1308_v58 = vpop.permute.xlu0 %1307 }
 0x9b6   :  { %v1323_v2 = vpop.permute.xlu0 %1322 }
 0x9b7   :  { %v1325_v52 = vmul.f32 %v1323_v2, %v3491_v12  ;;  %v1326_v28 = vmul.f32 %v3370_v22, %v1323_v2  ;;  %v1327_v18 = vmul.f32 %v1323_v2, %v3333_v39  ;;  %v1214_v2 = vpop.permute.xlu1 %1213 }
 0x9b8   :  { %v1217_v48 = vsel %vm198_vm3, %v3531_v20, %v1214_v2 }
 0x9b9   :  { %1333 = vrot.lane.b32.xlu2 %v1326_v28, %s2654_s27  ;;  %1331 = vrot.lane.b32.xlu1 %v1325_v52, %s2654_s27 }
 0x9bf   :  { %v1240_v52 = vpop.permute.xlu1 %1239 }
 0x9c1   :  { %1349 = vrot.lane.b32.xlu2 %v1345_v17, %s2690_s5  ;;  %1335 = vrot.lane.b32.xlu1 %v1327_v18, %s2654_s27  ;;  %v1312_v17 = vpop.permute.xlu2 %1311 }
 0x9c7   :  { %v1262_v28 = vpop.permute.xlu1 %1261 }
 0x9c8   :  { %v1265_v3 = vsel %vm148_vm1, %v3543_v0, %v1262_v28  ;;  %v1266_v56 = vsel %vm148_vm1, %v1262_v28, %v3614_v37  ;;  %v1197_v0 = vmul.f32 %v3485_v32, %v3488_v53 }
 0x9c9   :  { %1390 = vperm.xlu2 %2431, %v3273_v13   ;;  %1380 = vperm.xlu1 %2430, %v3273_v13  }
 0x9cf   :  { %v1284_v18 = vpop.permute.xlu1 %1283 }
 0x9d1   :  { %2433 = vset.pattern.permute.xlu2 %v2673_v63  ;;  %2438 = vset.pattern.permute.xlu1 %v4329_v36  ;;  %v1196_v63 = vmul.f32 %v3370_v22, %v3485_v32 }
 0x9d3   :  { %v1222_v36 = vadd.f32 %v3531_v20, %v1196_v63  ;;  %v1223_v19 = vadd.f32 %v1217_v48, %v1196_v63  ;;  %v1218_v48 = vsel %vm198_vm3, %v1214_v2, %v3604_v1 }
 0x9d5   :  { %v1246_v59 = vadd.f32 %v1236_v34, %v1222_v36  ;;  %v1247_v20 = vadd.f32 %v1241_v8, %v1223_v19  ;;  %v1289_v34 = vsel %vm223_vm4, %v1284_v18, %v3618_v47 }
 0x9d7   :  { %v1288_v21 = vpop.permute.xlu1 %1287  ;;  %v1270_v63 = vadd.f32 %v1265_v3, %v1246_v59  ;;  %v1271_v28 = vadd.f32 %v1266_v56, %v1247_v20  ;;  %v1224_v3 = vadd.f32 %v1218_v48, %v1197_v0 }
 0x9d9   :  { %v1294_v8 = vadd.f32 %v1284_v18, %v1270_v63  ;;  %v1295_v1 = vadd.f32 %v1289_v34, %v1271_v28 }
 0x9db   :  { %v1318_v19 = vadd.f32 %v1308_v58, %v1294_v8 }
 0x9df   :  { %v1310_v23 = vpop.permute.xlu1 %1309 }
 0x9e0   :  { %v1313_v59 = vsel %vm952_vm15, %v1308_v58, %v1310_v23  ;;  %v1314_v48 = vsel %vm952_vm15, %v1310_v23, %v1312_v17  ;;  %v2691_v17 = vmov 31  }
 0xa13   :  { %v1334_v55 = vpop.permute.xlu2 %1333 }
 0xa1b   :  { %v1350_v6 = vpop.permute.xlu2 %1349 }
 0xa23   :  { %v1391_v62 = vpop.permute.xlu2 %1390 }
 0xa24   :  { %v1393_v15 = vmul.f32 %v3370_v22, %v1391_v62  ;;  %v1394_v40 = vmul.f32 %v1391_v62, %v3488_v53  ;;  %v1395_v33 = vmul.f32 %v1391_v62, %v3491_v12  ;;  %v1242_v62 = vsel %vm802_vm13, %v3608_v10, %v1240_v52 }
 0xa25   :  { %v1248_v2 = vadd.f32 %v1242_v62, %v1224_v3 }
 0xa26   :  { %1403 = vrot.lane.b32.xlu2 %v1395_v33, %s2655_s0  ;;  %1399 = vrot.lane.b32.xlu0 %v1393_v15, %s2655_s0  ;;  %v1319_v33 = vadd.f32 %v1313_v59, %v1295_v1  ;;  %v3692_v15 = vpop.permute.xlu0 %1351 }
 0xa27   :  { %1401 = vrot.lane.b32.xlu1 %v1394_v40, %s2655_s0  ;;  %v1290_v40 = vsel %vm223_vm4, %v3618_v47, %v1288_v21  ;;  %v1354_v10 = vsel %vm1353_vm0, %v1350_v6, %v3692_v15  ;;  %v1272_v58 = vadd.f32 %v3614_v37, %v1248_v2 }
 0xa29   :  { %v1296_v63 = vadd.f32 %v1290_v40, %v1272_v58 }
 0xa2b   :  { %v1332_v36 = vpop.permute.xlu1 %1331  ;;  %v1320_v34 = vadd.f32 %v1314_v48, %v1296_v63 }
 0xa2c   :  { %v1337_v32 = vsel %vm173_vm2, %v1332_v36, %v1334_v55  ;;  %v1342_v56 = vadd.f32 %v1332_v36, %v1318_v19 }
 0xa2d   :  { %v1343_v20 = vadd.f32 %v1337_v32, %v1319_v33  ;;  %v2692_v33 = vmov 38  }
 0xa2e   :  { %v3698_v52 = vmul.f32 %v1350_v6, %v1342_v56  ;;  %1414 = vperm.xlu0 %2432, %v3273_v13  }
 0xa2f   :  { %v3702_v18 = vmul.f32 %v1354_v10, %v1343_v20 }
 0xa33   :  { %v1336_v0 = vpop.permute.xlu1 %1335 }
 0xa34   :  { %v1338_v28 = vsel %vm173_vm2, %v1334_v55, %v1336_v0 }
 0xa35   :  { %v3706_v62 = vadd.f32 %v1338_v28, %v1320_v34 }
 0xa36   :  { %2435 = vset.pattern.permute.xlu0 %v2692_v33 }
 0xa3b   :  { %v1381_v21 = vpop.permute.xlu1 %1380 }
 0xa3c   :  { %v1383_v47 = vmul.f32 %v3370_v22, %v1381_v21 }
 0xa80   :  { %v1404_v2 = vpop.permute.xlu2 %1403 }
 0xa98   :  { %v1400_v6 = vpop.permute.xlu0 %1399 }
 0xa99   :  { %v1410_v8 = vadd.f32 %v1400_v6, %v1383_v47  ;;  %v1402_v59 = vpop.permute.xlu1 %1401 }
 0xa9a   :  { %v1405_v3 = vsel %vm198_vm3, %v1400_v6, %v1402_v59  ;;  %v1406_v28 = vsel %vm198_vm3, %v1402_v59, %v1404_v2 }
 0xa9b   :  { %v1411_v37 = vadd.f32 %v1405_v3, %v1383_v47  ;;  %v1385_v47 = vmul.f32 %v1381_v21, %v3488_v53 }
 0xa9d   :  { %v1412_v6 = vadd.f32 %v1406_v28, %v1385_v47 }
 0xaa0   :  { %v1415_v1 = vpop.permute.xlu0 %1414 }
 0xaa1   :  { %v1417_v19 = vmul.f32 %v3370_v22, %v1415_v1  ;;  %v1418_v23 = vmul.f32 %v1415_v1, %v3488_v53  ;;  %v1419_v55 = vmul.f32 %v1415_v1, %v3491_v12 }
 0xaa3   :  { %1425 = vrot.lane.b32.xlu2 %v1418_v23, %s2678_s2  ;;  %1423 = vrot.lane.b32.xlu1 %v1417_v19, %s2678_s2  ;;  %v4330_v23 = vmov 4  }
 0xaab   :  { %1438 = vperm.xlu2 %2433, %v3273_v13   ;;  %1427 = vrot.lane.b32.xlu1 %v1419_v55, %s2678_s2  ;;  %v2693_v55 = vmov 45  }
 0xab3   :  { %2434 = vset.pattern.permute.xlu2 %v2691_v17 }
 0xab4   :  { %1457 = vperm.xlu2 %2434, %v3273_v13  }
 0xabc   :  { %2436 = vset.pattern.permute.xlu2 %v2693_v55 }
 0xafd   :  { %v1426_v36 = vpop.permute.xlu2 %1425 }
 0xb05   :  { %v1439_v32 = vpop.permute.xlu2 %1438 }
 0xb06   :  { %v1441_v56 = vmul.f32 %v1439_v32, %v3488_v53  ;;  %v1442_v20 = vmul.f32 %v1439_v32, %v3491_v12 }
 0xb08   :  { %1445 = vrot.lane.b32.xlu0 %v1441_v56, %s2657_s29  ;;  %1447 = vrot.lane.b32.xlu1 %v1442_v20, %s2657_s29 }
 0xb0e   :  { %v1458_v40 = vpop.permute.xlu2 %1457 }
 0xb0f   :  { %v1460_v10 = vmul.f32 %v1458_v40, %v3488_v53  ;;  %v1461_v58 = vmul.f32 %v1458_v40, %v3491_v12  ;;  %v1462_v48 = vmul.f32 %v3370_v22, %v1458_v40 }
 0xb11   :  { %1470 = vrot.lane.b32.xlu2 %v1462_v48, %s2656_s28  ;;  %1466 = vrot.lane.b32.xlu0 %v1460_v10, %s2656_s28  ;;  %v1009_v10 = vmul.f32 %v3370_v22, %v3463_v57 }
 0xb12   :  { %1468 = vrot.lane.b32.xlu1 %v1461_v58, %s2656_s28 }
 0xb13   :  { %v1035_v48 = vadd.f32 %v3419_v11, %v1009_v10 }
 0xb15   :  { %v1424_v63 = vpop.permute.xlu1 %1423 }
 0xb16   :  { %v1429_v34 = vsel %vm802_vm13, %v1424_v63, %v1426_v36  ;;  %v1434_v17 = vadd.f32 %v1424_v63, %v1410_v8 }
 0xb17   :  { %v1435_v0 = vadd.f32 %v1429_v34, %v1411_v37  ;;  %v1078_v34 = vsel %vm148_vm1, %v3431_v43, %v3654_v41 }
 0xb19   :  { %1481 = vperm.xlu0 %2435, %v3273_v13  }
 0xb1d   :  { %v1428_v3 = vpop.permute.xlu1 %1427 }
 0xb1e   :  { %v1430_v1 = vsel %vm802_vm13, %v1426_v36, %v1428_v3 }
 0xb1f   :  { %v3733_v19 = vadd.f32 %v1430_v1, %v1412_v6 }
 0xb21   :  { %2437 = vset.pattern.permute.xlu0 %v4330_v23  ;;  %v4331_v23 = vmov 12  }
 0xb6b   :  { %v1471_v55 = vpop.permute.xlu2 %1470 }
 0xb7a   :  { %v1446_v33 = vpop.permute.xlu0 %1445  ;;  %v1448_v32 = vpop.permute.xlu1 %1447 }
 0xb7b   :  { %v1453_v37 = vadd.f32 %v1446_v33, %v1434_v17  ;;  %v1449_v56 = vsel %vm148_vm1, %v1446_v33, %v1448_v32  ;;  %v1030_v17 = vsel %vm198_vm3, %v3419_v11, %v3643_v24  ;;  %v1126_v11 = vsel %vm952_vm15, %v3555_v7, %v3662_v5 }
 0xb7c   :  { %v1454_v20 = vadd.f32 %v1449_v56, %v1435_v0  ;;  %v1059_v0 = vadd.f32 %v3467_v50, %v1035_v48  ;;  %v1054_v56 = vsel %vm802_vm13, %v3467_v50, %v3587_v51 }
 0xb7e   :  { %v1083_v28 = vadd.f32 %v1078_v34, %v1059_v0 }
 0xb80   :  { %v1107_v47 = vadd.f32 %v3660_v49, %v1083_v28 }
 0xb82   :  { %v1131_v3 = vadd.f32 %v3555_v7, %v1107_v47  ;;  %v1455_v47 = vadd.f32 %v1448_v32, %v3733_v19 }
 0xb83   :  { %v1467_v59 = vpop.permute.xlu0 %1466 }
 0xb84   :  { %v3737_v2 = vadd.f32 %v1467_v59, %v1453_v37  ;;  %v1469_v21 = vpop.permute.xlu1 %1468  ;;  %v1155_v1 = vadd.f32 %v3664_v30, %v1131_v3  ;;  %v1036_v37 = vadd.f32 %v1030_v17, %v1009_v10  ;;  %v1103_v17 = vsel %vm223_vm4, %v3597_v14, %v3471_v26 }
 0xb85   :  { %v1472_v40 = vsel %vm223_vm4, %v1467_v59, %v1469_v21 }
 0xb86   :  { %v1478_v36 = vadd.f32 %v1472_v40, %v1454_v20  ;;  %v1171_v43 = vmul.f32 %v3469_v54, %v1155_v1  ;;  %v1079_v20 = vsel %vm148_vm1, %v3654_v41, %v3592_v16  ;;  %v1060_v59 = vadd.f32 %v1054_v56, %v1036_v37 }
 0xb87   :  { %v1150_v41 = vsel %vm173_vm2, %v3664_v30, %v3465_v44  ;;  %v1473_v30 = vsel %vm223_vm4, %v1469_v21, %v1471_v55 }
 0xb88   :  { %v1084_v40 = vadd.f32 %v1079_v20, %v1060_v59 }
 0xb8b   :  { %v1482_v58 = vpop.permute.xlu0 %1481 }
 0xb8c   :  { %v1484_v8 = vmul.f32 %v1482_v58, %v3488_v53  ;;  %v1485_v63 = vmul.f32 %v1482_v58, %v3491_v12  ;;  %v1486_v6 = vmul.f32 %v3370_v22, %v1482_v58 }
 0xb8e   :  { %1492 = vrot.lane.b32.xlu2 %v1485_v63, %s2681_s18  ;;  %1490 = vrot.lane.b32.xlu1 %v1484_v8, %s2681_s18 }
 0xb96   :  { %1505 = vperm.xlu2 %2436, %v3273_v13   ;;  %1494 = vrot.lane.b32.xlu1 %v1486_v6, %s2681_s18  ;;  %v1479_v6 = vadd.f32 %v1473_v30, %v1455_v47  ;;  %v4336_v30 = vmov 13   ;;  %v2703_v47 = vmov 26  }
 0xb9e   :  { %1177 = vrot.lane.b32.xlu1 %v1171_v43, %s2671_s13  ;;  %2440 = vset.pattern.permute.xlu2 %v4331_v23  ;;  %v1031_v23 = vsel %vm198_vm3, %v3643_v24, %v3581_v35  ;;  %v1127_v35 = vsel %vm952_vm15, %v3662_v5, %v3459_v46  ;;  %v1151_v46 = vsel %vm173_vm2, %v3465_v44, %v3478_v9  ;;  %v4333_v44 = vmov 19  }
 0xb9f   :  { %v1360_v5 = vmul.f32 %v3692_v15, %v3706_v62  ;;  %v2696_v9 = vmov 25   ;;  %v4334_v15 = vmov 20   ;;  %v2699_v62 = vmov 40  }
 0xba6   :  { %1364 = vrot.lane.b32.xlu1 %v3698_v52, %s2694_s10  ;;  %v1102_v52 = vsel %vm223_vm4, %v3660_v49, %v3597_v14  ;;  %v1167_v49 = vsel %vm1166_vm5, %v3469_v54, %v3529_v29 }
 0xba7   :  { %v1108_v10 = vadd.f32 %v1102_v52, %v1084_v40  ;;  %v3828_v40 = vld [vmem:[#allocation7] sm:$0xff] }
 0xba9   :  { %v1132_v63 = vadd.f32 %v1126_v11, %v1108_v10  ;;  %v2700_v11 = vmov 27   ;;  %v2701_v10 = vmov 34  }
 0xbab   :  { %v1156_v7 = vadd.f32 %v1150_v41, %v1132_v63 }
 0xbad   :  { %v1172_v34 = vmul.f32 %v1167_v49, %v1156_v7 }
 0xbe8   :  { %v1493_v33 = vpop.permute.xlu2 %1492 }
 0xbf0   :  { %v1506_v58 = vpop.permute.xlu2 %1505 }
 0xbf1   :  { %v1508_v48 = vmul.f32 %v1506_v58, %v3491_v12  ;;  %v1509_v50 = vmul.f32 %v3370_v22, %v1506_v58  ;;  %v1510_v8 = vmul.f32 %v1506_v58, %v3333_v39  ;;  %v4335_v58 = vmov 6  }
 0xbf3   :  { %1518 = vrot.lane.b32.xlu2 %v1510_v8, %s2654_s27  ;;  %1514 = vrot.lane.b32.xlu0 %v1508_v48, %s2654_s27  ;;  %v2702_v48 = vmov 41  }
 0xbf4   :  { %1516 = vrot.lane.b32.xlu1 %v1509_v50, %s2654_s27 }
 0xbfb   :  { %1179 = vrot.lane.b32.xlu2 %v1172_v34, %s2671_s13 }
 0xc00   :  { %v1491_v39 = vpop.permute.xlu1 %1490 }
 0xc01   :  { %v1496_v0 = vsel %vm952_vm15, %v1491_v39, %v1493_v33 }
 0xc02   :  { %v1502_v28 = vadd.f32 %v1496_v0, %v1478_v36  ;;  %v1010_v36 = vmul.f32 %v3463_v57, %v3488_v53  ;;  %v1501_v57 = vadd.f32 %v1491_v39, %v3737_v2  ;;  %v4332_v2 = vmov 18  }
 0xc03   :  { %1366 = vrot.lane.b32.xlu2 %v3702_v18, %s2694_s10  ;;  %v1055_v18 = vsel %vm802_vm13, %v3587_v51, %v3650_v27 }
 0xc04   :  { %v1037_v21 = vadd.f32 %v1031_v23, %v1010_v36  ;;  %v2707_v36 = vmov 48  }
 0xc06   :  { %v1061_v19 = vadd.f32 %v1055_v18, %v1037_v21 }
 0xc08   :  { %v1495_v3 = vpop.permute.xlu1 %1494  ;;  %v1085_v55 = vadd.f32 %v3592_v16, %v1061_v19 }
 0xc09   :  { %v1497_v1 = vsel %vm952_vm15, %v1493_v33, %v1495_v3  ;;  %v2705_v3 = vmov 46  }
 0xc0a   :  { %v1503_v43 = vadd.f32 %v1497_v1, %v1479_v6  ;;  %v1109_v24 = vadd.f32 %v1103_v17, %v1085_v55  ;;  %v2704_v6 = vmov 33   ;;  %v2706_v1 = vmov 47  }
 0xc0b   :  { %v4337_v55 = vmov 5  }
 0xc0c   :  { %v1133_v37 = vadd.f32 %v1127_v35, %v1109_v24 }
 0xc0e   :  { %v1157_v26 = vadd.f32 %v1151_v46, %v1133_v37 }
 0xc10   :  { %v3795_v54 = vpop.permute.xlu1 %1177  ;;  %v1173_v14 = vmul.f32 %v3529_v29, %v1157_v26  ;;  %v2697_v29 = vmov 32  }
 0xc18   :  { %v3805_v32 = vpop.permute.xlu1 %1364 }
 0xc4d   :  { %v1519_v51 = vpop.permute.xlu2 %1518 }
 0xc55   :  { %v3869_v18 = vpop.permute.xlu2 %1179 }
 0xc5d   :  { %v3877_v17 = vpop.permute.xlu2 %1366 }
 0xc65   :  { %v1515_v33 = vpop.permute.xlu0 %1514 }
 0xc66   :  { %v1525_v27 = vadd.f32 %v1515_v33, %v1501_v57  ;;  %v1517_v56 = vpop.permute.xlu1 %1516 }
 0xc67   :  { %v1520_v20 = vsel %vm173_vm2, %v1515_v33, %v1517_v56  ;;  %v1521_v16 = vsel %vm173_vm2, %v1517_v56, %v1519_v51 }
 0xc68   :  { %v1526_v59 = vadd.f32 %v1520_v20, %v1502_v28  ;;  %v1527_v52 = vadd.f32 %v1521_v16, %v1503_v43  ;;  %1531 = vrot.lane.b32.xlu0 %v1525_v27, %s2695_s20 }
 0xc6a   :  { %1535 = vrot.lane.b32.xlu2 %v1527_v52, %s2695_s20  ;;  %1533 = vrot.lane.b32.xlu1 %v1526_v59, %s2695_s20 }
 0xc70   :  { %1181 = vrot.lane.b32.xlu0 %v1173_v14, %s2671_s13  ;;  %s2283_s13 = sshll.u32 %s4244_s11, 4  ;;  %s2284_s13 = int_to_ptr.hbm [resolvable:$true] %s2283_s13 }
 0xc72   :  { %1557 = vperm.xlu1 %2438, %v3273_v13  }
 0xc78   :  { %1368 = vrot.lane.b32.xlu0 %v1360_v5, %s2694_s10 }
 0xc7a   :  { %2439 = vset.pattern.permute.xlu1 %v4332_v2 }
 0xc7b   :  { %1581 = vperm.xlu1 %2439, %v3273_v13   ;;  %v2698_v13 = vmov 39  }
 0xc80   :  { %1547 = vperm.xlu0 %2437, %v3828_v40  }
 0xc83   :  { %2442 = vset.pattern.permute.xlu1 %v4333_v44 }
 0xc84   :  { %1769 = vperm.xlu1 %2442, %v3828_v40  }
 0xc88   :  { %2441 = vset.pattern.permute.xlu0 %v2696_v9 }
 0xc89   :  { %1605 = vperm.xlu0 %2441, %v3828_v40  }
 0xc8c   :  { %2444 = vset.pattern.permute.xlu1 %v2697_v29 }
 0xc8d   :  { %1629 = vperm.xlu1 %2444, %v3828_v40  }
 0xc91   :  { %2446 = vset.pattern.permute.xlu0 %v4334_v15  ;;  %v3909_v15 = vld [vmem:[#allocation3 + $0x8] sm:$0xff] }
 0xc92   :  { %1957 = vperm.xlu0 %2446, %v3828_v40  }
 0xc95   :  { %2447 = vset.pattern.permute.xlu1 %v2698_v13 }
 0xc96   :  { %1653 = vperm.xlu1 %2447, %v3828_v40  }
 0xc9a   :  { %2451 = vset.pattern.permute.xlu0 %v2699_v62 }
 0xc9b   :  { %1841 = vperm.xlu0 %2451, %v3828_v40  }
 0xc9e   :  { %2449 = vset.pattern.permute.xlu1 %v2700_v11 }
 0xc9f   :  { %1981 = vperm.xlu1 %2449, %v3828_v40  }
 0xca3   :  { %2457 = vset.pattern.permute.xlu0 %v4335_v58 }
 0xca7   :  { %2452 = vset.pattern.permute.xlu1 %v2701_v10 }
 0xca8   :  { %2005 = vperm.xlu1 %2452, %v3828_v40  }
 0xcb0   :  { %2454 = vset.pattern.permute.xlu1 %v2702_v48 }
 0xcb1   :  { %2029 = vperm.xlu1 %2454, %v3828_v40  }
 0xcc4   :  { %v3884_v33 = vpop.permute.xlu2 %1535 }
 0xcda   :  { %v1532_v50 = vpop.permute.xlu0 %1531 }
 0xcdc   :  { %v3843_v8 = vpop.permute.xlu1 %1533 }
 0xcdd   :  { %v3847_v41 = vsel %vm1537_vm6, %v1532_v50, %v3843_v8 }
 0xce2   :  { %v3866_v43 = vpop.permute.xlu0 %1181 }
 0xce4   :  { %v1558_v63 = vpop.permute.xlu1 %1557 }
 0xce5   :  { %v1560_v7 = vmul.f32 %v3370_v22, %v1558_v63  ;;  %v1561_v49 = vmul.f32 %v1558_v63, %v3488_v53  ;;  %v1562_v34 = vmul.f32 %v1558_v63, %v3491_v12 }
 0xce7   :  { %1570 = vrot.lane.b32.xlu1 %v1562_v34, %s2655_s0  ;;  %1568 = vrot.lane.b32.xlu0 %v1561_v49, %s2655_s0 }
 0xce8   :  { %1566 = vrot.lane.b32.xlu2 %v1560_v7, %s2655_s0 }
 0xcea   :  { %v3871_v21 = vpop.permute.xlu0 %1368 }
 0xced   :  { %v1582_v39 = vpop.permute.xlu1 %1581 }
 0xcee   :  { %v1584_v0 = vmul.f32 %v3370_v22, %v1582_v39  ;;  %v1585_v28 = vmul.f32 %v1582_v39, %v3488_v53  ;;  %v1586_v57 = vmul.f32 %v1582_v39, %v3491_v12 }
 0xcf0   :  { %1745 = vperm.xlu2 %2440, %v3828_v40   ;;  %1592 = vrot.lane.b32.xlu1 %v1585_v28, %s2678_s2 }
 0xcf1   :  { %1590 = vrot.lane.b32.xlu0 %v1584_v0, %s2678_s2 }
 0xcf2   :  { %v1548_v35 = vpop.permute.xlu0 %1547 }
 0xcf3   :  { %v1550_v27 = vmul.f32 %v3370_v22, %v1548_v35 }
 0xcf6   :  { %v1770_v23 = vpop.permute.xlu1 %1769 }
 0xcf7   :  { %v1772_v13 = vmul.f32 %v3909_v15, %v1770_v23  ;;  %v1774_v34 = vmul.f32 %v1770_v23, %v3491_v12  ;;  %v1773_v39 = vmul.f32 %v1770_v23, %v3488_v53 }
 0xcf8   :  { %2443 = vset.pattern.permute.xlu2 %v4336_v30 }
 0xcf9   :  { %1933 = vperm.xlu2 %2443, %v3828_v40  }
 0xcfb   :  { %v1606_v37 = vpop.permute.xlu0 %1605 }
 0xcfc   :  { %v1608_v44 = vmul.f32 %v1606_v37, %v3488_v53  ;;  %v1609_v9 = vmul.f32 %v1606_v37, %v3491_v12  ;;  %v1610_v48 = vmul.f32 %v3909_v15, %v1606_v37 }
 0xcff   :  { %v3873_v19 = vpop.permute.xlu1 %1629 }
 0xd00   :  { %v1632_v28 = vmul.f32 %v3873_v19, %v3488_v53 }
 0xd01   :  { %2445 = vset.pattern.permute.xlu2 %v2703_v47  ;;  %v1634_v47 = vmul.f32 %v3909_v15, %v3873_v19 }
 0xd02   :  { %1793 = vperm.xlu2 %2445, %v3828_v40  }
 0xd04   :  { %v1958_v16 = vpop.permute.xlu0 %1957 }
 0xd05   :  { %v1960_v23 = vmul.f32 %v3909_v15, %v1958_v16  ;;  %v1961_v37 = vmul.f32 %v1958_v16, %v3488_v53 }
 0xd08   :  { %v3879_v24 = vpop.permute.xlu1 %1653 }
 0xd0a   :  { %2448 = vset.pattern.permute.xlu2 %v2704_v6 }
 0xd0b   :  { %1817 = vperm.xlu2 %2448, %v3828_v40  }
 0xd0d   :  { %v3899_v5 = vpop.permute.xlu0 %1841 }
 0xd11   :  { %v3886_v51 = vpop.permute.xlu1 %1981 }
 0xd13   :  { %2450 = vset.pattern.permute.xlu2 %v2705_v3  ;;  %v1633_v3 = vmul.f32 %v3873_v19, %v3491_v12 }
 0xd14   :  { %1677 = vperm.xlu2 %2450, %v3828_v40  }
 0xd1a   :  { %v3891_v59 = vpop.permute.xlu1 %2005 }
 0xd1c   :  { %2453 = vset.pattern.permute.xlu2 %v2706_v1 }
 0xd1d   :  { %1865 = vperm.xlu2 %2453, %v3828_v40  }
 0xd23   :  { %v3901_v2 = vpop.permute.xlu1 %2029 }
 0xd25   :  { %2455 = vset.pattern.permute.xlu2 %v2707_v36 }
 0xd26   :  { %2053 = vperm.xlu2 %2455, %v3828_v40  }
 0xd2e   :  { %2456 = vset.pattern.permute.xlu2 %v4337_v55 }
 0xd2f   :  { %1735 = vperm.xlu2 %2456, %v3828_v40  }
 0xd37   :  { %1594 = vrot.lane.b32.xlu2 %v1586_v57, %s2678_s2  ;;  %v1656_v57 = vmul.f32 %v3879_v24, %v3488_v53 }
 0xd38   :  { %2459 = vset.pattern.permute.xlu2 %v4296_v61 }
 0xd42   :  { %v1567_v56 = vpop.permute.xlu2 %1566 }
 0xd43   :  { %v3889_v20 = vadd.f32 %v1567_v56, %v1550_v27 }
 0xd4a   :  { %v1746_v52 = vpop.permute.xlu2 %1745 }
 0xd4b   :  { %v1748_v46 = vmul.f32 %v3370_v22, %v1746_v52  ;;  %v1749_v26 = vmul.f32 %v1746_v52, %v3488_v53  ;;  %v1750_v14 = vmul.f32 %v1746_v52, %v3491_v12  ;;  %v1552_v22 = vmul.f32 %v1548_v35, %v3488_v53 }
 0xd4c   :  { %v1962_v35 = vmul.f32 %v1958_v16, %v3491_v12 }
 0xd4d   :  { %1758 = vrot.lane.b32.xlu2 %v1750_v14, %s2655_s0  ;;  %1756 = vrot.lane.b32.xlu1 %v1749_v26, %s2655_s0 }
 0xd4e   :  { %1754 = vrot.lane.b32.xlu0 %v1748_v46, %s2655_s0  ;;  %v1657_v46 = vmul.f32 %v3879_v24, %v3491_v12 }
 0xd53   :  { %v1934_v29 = vpop.permute.xlu2 %1933 }
 0xd54   :  { %v1936_v49 = vmul.f32 %v3909_v15, %v1934_v29 }
 0xd55   :  { %1616 = vrot.lane.b32.xlu2 %v1609_v9, %s2657_s29  ;;  %1614 = vrot.lane.b32.xlu1 %v1608_v44, %s2657_s29  ;;  %v1984_v9 = vmul.f32 %v3886_v51, %v3488_v53 }
 0xd56   :  { %1923 = vperm.xlu0 %2457, %v3828_v40  }
 0xd59   :  { %v1569_v62 = vpop.permute.xlu0 %1568  ;;  %v1571_v11 = vpop.permute.xlu1 %1570 }
 0xd5a   :  { %v1572_v58 = vsel %vm198_vm3, %v1567_v56, %v1569_v62  ;;  %v1573_v10 = vsel %vm198_vm3, %v1569_v62, %v1571_v11  ;;  %v1985_v62 = vmul.f32 %v3886_v51, %v3491_v12  ;;  %v1844_v11 = vmul.f32 %v3899_v5, %v3488_v53 }
 0xd5b   :  { %v3915_v50 = vadd.f32 %v1572_v58, %v1550_v27  ;;  %v1579_v63 = vadd.f32 %v1573_v10, %v1552_v22  ;;  %v1658_v27 = vmul.f32 %v3909_v15, %v3879_v24  ;;  %v1986_v22 = vmul.f32 %v3909_v15, %v3886_v51  ;;  %v3990_v58 = vld [vmem:[#allocation3 + $0x28] sm:$0xff] }
 0xd5c   :  { %v1794_v7 = vpop.permute.xlu2 %1793 }
 0xd5d   :  { %1618 = vrot.lane.b32.xlu1 %v1610_v48, %s2657_s29  ;;  %1778 = vrot.lane.b32.xlu2 %v1772_v13, %s2678_s2  ;;  %v1796_v6 = vmul.f32 %v1794_v7, %v3488_v53  ;;  %v1798_v36 = vmul.f32 %v3909_v15, %v1794_v7  ;;  %v1797_v55 = vmul.f32 %v1794_v7, %v3491_v12  ;;  %v3999_v7 = vld [vmem:[#allocation3 + $0x10] sm:$0xff] }
 0xd5e   :  { %2458 = vset.pattern.permute.xlu0 %v4296_v61  ;;  %v1938_v61 = vmul.f32 %v1934_v29, %v3491_v12 }
 0xd5f   :  { %831 = vperm.xlu0 %2458, %v3828_v40   ;;  %v1937_v40 = vmul.f32 %v1934_v29, %v3488_v53 }
 0xd62   :  { %v3967_v16 = vpop.permute.xlu1 %1592 }
 0xd65   :  { %v1818_v0 = vpop.permute.xlu2 %1817  ;;  %1782 = vrot.lane.b32.xlu1 %v1774_v34, %s2678_s2  ;;  %1942 = vrot.lane.b32.xlu2 %v1936_v49, %s2655_s0  ;;  %v1845_v49 = vmul.f32 %v3899_v5, %v3491_v12 }
 0xd66   :  { %v1820_v52 = vmul.f32 %v1818_v0, %v3488_v53  ;;  %v1822_v26 = vmul.f32 %v3909_v15, %v1818_v0  ;;  %v1821_v24 = vmul.f32 %v1818_v0, %v3491_v12  ;;  %v2008_v53 = vmul.f32 %v3999_v7, %v3891_v59 }
 0xd67   :  { %1780 = vrot.lane.b32.xlu0 %v1773_v39, %s2678_s2  ;;  %v4008_v39 = vld [vmem:[#allocation12] sm:$0x7f] }
 0xd68   :  { %v1700_v0 = vperm.slane %v4008_v39, 4 }
 0xd6d   :  { %1946 = vrot.lane.b32.xlu1 %v1938_v61, %s2655_s0  ;;  %1638 = vrot.lane.b32.xlu2 %v1632_v28, %s2656_s28  ;;  %v2010_v28 = vmul.f32 %v3909_v15, %v3891_v59  ;;  %v4013_v61 = vld [vmem:[#allocation3 + $0x18] sm:$0xff] }
 0xd6e   :  { %v1678_v30 = vpop.permute.xlu2 %1677 }
 0xd6f   :  { %1944 = vrot.lane.b32.xlu0 %v1937_v40, %s2655_s0  ;;  %v1680_v13 = vmul.f32 %v1678_v30, %v3491_v12  ;;  %v1682_v10 = vmul.f32 %v3990_v58, %v1678_v30  ;;  %v1681_v48 = vmul.f32 %v3909_v15, %v1678_v30  ;;  %v2009_v40 = vmul.f32 %v4013_v61, %v3891_v59 }
 0xd75   :  { %1642 = vrot.lane.b32.xlu1 %v1634_v47, %s2656_s28  ;;  %1802 = vrot.lane.b32.xlu2 %v1796_v6, %s2657_s29  ;;  %v4025_v6 = vld [vmem:[#allocation12 + $0x8] sm:$0x7f] }
 0xd77   :  { %1640 = vrot.lane.b32.xlu0 %v1633_v3, %s2656_s28  ;;  %v3942_v1 = vpop.permute.xlu2 %1865  ;;  %v1701_v3 = vperm.slane %v4025_v6, 4 }
 0xd78   :  { %v1868_v30 = vmul.f32 %v4013_v61, %v3942_v1  ;;  %v1869_v47 = vmul.f32 %v3909_v15, %v3942_v1 }
 0xd7d   :  { %1806 = vrot.lane.b32.xlu1 %v1798_v36, %s2657_s29  ;;  %1966 = vrot.lane.b32.xlu2 %v1960_v23, %s2678_s2 }
 0xd7f   :  { %1804 = vrot.lane.b32.xlu0 %v1797_v55, %s2657_s29 }
 0xd80   :  { %v3950_v19 = vpop.permute.xlu2 %2053 }
 0xd85   :  { %1970 = vrot.lane.b32.xlu1 %v1962_v35, %s2678_s2  ;;  %1662 = vrot.lane.b32.xlu2 %v1656_v57, %s2681_s18 }
 0xd87   :  { %1968 = vrot.lane.b32.xlu0 %v1961_v37, %s2678_s2 }
 0xd89   :  { %v1736_v56 = vpop.permute.xlu2 %1735 }
 0xd8a   :  { %v1738_v59 = vmul.f32 %v3909_v15, %v1736_v56  ;;  %v1740_v23 = vmul.f32 %v3999_v7, %v1736_v56 }
 0xd8d   :  { %1666 = vrot.lane.b32.xlu1 %v1658_v27, %s2681_s18  ;;  %1826 = vrot.lane.b32.xlu2 %v1820_v52, %s2656_s28 }
 0xd8f   :  { %1664 = vrot.lane.b32.xlu0 %v1657_v46, %s2681_s18 }
 0xd91   :  { %v1595_v14 = vpop.permute.xlu2 %1594 }
 0xd92   :  { %v1597_v44 = vsel %vm802_vm13, %v3967_v16, %v1595_v14  ;;  %v2033_v14 = vmul.f32 %v4013_v61, %v3901_v2 }
 0xd93   :  { %v3974_v29 = vadd.f32 %v1597_v44, %v1579_v63  ;;  %v1846_v63 = vmul.f32 %v3909_v15, %v3899_v5  ;;  %v1591_v5 = vpop.permute.xlu0 %1590 }
 0xd94   :  { %v1596_v44 = vsel %vm802_vm13, %v1591_v5, %v3967_v16 }
 0xd95   :  { %1830 = vrot.lane.b32.xlu1 %v1822_v26, %s2656_s28  ;;  %1990 = vrot.lane.b32.xlu2 %v1984_v9, %s2657_s29  ;;  %v2032_v26 = vmul.f32 %v3999_v7, %v3901_v2  ;;  %v1870_v9 = vmul.f32 %v3990_v58, %v3942_v1 }
 0xd97   :  { %1828 = vrot.lane.b32.xlu0 %v1821_v24, %s2656_s28  ;;  %v1601_v24 = vadd.f32 %v1591_v5, %v3889_v20  ;;  %v1889_v20 = vperm.slane %v4025_v6, 5 }
 0xd9d   :  { %1994 = vrot.lane.b32.xlu1 %v1986_v22, %s2657_s29  ;;  %1686 = vrot.lane.b32.xlu2 %v1680_v13, %s2654_s27  ;;  %v1602_v22 = vadd.f32 %v1596_v44, %v3915_v50  ;;  %v1888_v50 = vperm.slane %v4008_v39, 5 }
 0xd9f   :  { %1992 = vrot.lane.b32.xlu0 %v1985_v62, %s2657_s29 }
 0xda5   :  { %1690 = vrot.lane.b32.xlu1 %v1682_v10, %s2654_s27  ;;  %1850 = vrot.lane.b32.xlu2 %v1844_v11, %s2681_s18 }
 0xda7   :  { %1688 = vrot.lane.b32.xlu0 %v1681_v48, %s2654_s27  ;;  %v1759_v51 = vpop.permute.xlu2 %1758 }
 0xdad   :  { %1854 = vrot.lane.b32.xlu1 %v1846_v63, %s2681_s18  ;;  %2014 = vrot.lane.b32.xlu2 %v2008_v53, %s2656_s28  ;;  %v2034_v53 = vmul.f32 %v3909_v15, %v3901_v2 }
 0xdaf   :  { %1852 = vrot.lane.b32.xlu0 %v1845_v49, %s2681_s18  ;;  %v1617_v34 = vpop.permute.xlu2 %1616 }
 0xdb5   :  { %2018 = vrot.lane.b32.xlu1 %v2010_v28, %s2656_s28  ;;  %1704 = vrot.lane.b32.xlu2 %v1700_v0, %s2708_s21 }
 0xdb7   :  { %2016 = vrot.lane.b32.xlu0 %v2009_v40, %s2656_s28  ;;  %v4019_v12 = vpop.permute.xlu2 %1778 }
 0xdbd   :  { %1874 = vrot.lane.b32.xlu1 %v1868_v30, %s2654_s27  ;;  %1876 = vrot.lane.b32.xlu2 %v1869_v47, %s2654_s27  ;;  %v856_v47 = vsel %vm198_vm3, %v3306_v4, %v3630_v42 }
 0xdbf   :  { %1706 = vrot.lane.b32.xlu0 %v1701_v3, %s2708_s21  ;;  %v4032_v36 = vpop.permute.xlu2 %1942  ;;  %v1757_v55 = vpop.permute.xlu1 %1756  ;;  %v2057_v3 = vmul.f32 %v3909_v15, %v3950_v19 }
 0xdc0   :  { %v1755_v35 = vpop.permute.xlu0 %1754  ;;  %v1761_v57 = vsel %vm198_vm3, %v1757_v55, %v1759_v51 }
 0xdc1   :  { %v1765_v37 = vadd.f32 %v1755_v35, %v1738_v59  ;;  %v1760_v27 = vsel %vm198_vm3, %v1755_v35, %v1757_v55  ;;  %v4036_v52 = vadd.f32 %v1761_v57, %v1740_v23  ;;  %v2056_v55 = vmul.f32 %v4013_v61, %v3950_v19 }
 0xdc2   :  { %v1766_v46 = vadd.f32 %v1760_v27, %v1738_v59  ;;  %v2058_v59 = vmul.f32 %v3990_v58, %v3950_v19  ;;  %v904_v58 = vsel %vm148_vm1, %v3325_v31, %v3635_v25  ;;  %v2077_v31 = vperm.slane %v4025_v6, 6 }
 0xdc3   :  { %v1789_v56 = vadd.f32 %v4019_v12, %v1765_v37 }
 0xdc5   :  { %2040 = vrot.lane.b32.xlu2 %v2033_v14, %s2681_s18  ;;  %2038 = vrot.lane.b32.xlu1 %v2032_v26, %s2681_s18  ;;  %v4338_v26 = vld [vmem:[#allocation25_spill] sm:$0xff] }
 0xdc7   :  { %1878 = vrot.lane.b32.xlu0 %v1870_v9, %s2654_s27  ;;  %v4052_v13 = vpop.permute.xlu2 %1638  ;;  %v1615_v62 = vpop.permute.xlu1 %1614 }
 0xdc8   :  { %v4054_v11 = vpop.permute.xlu0 %1923  ;;  %v1620_v16 = vsel %vm148_vm1, %v1615_v62, %v1617_v34  ;;  %v1625_v10 = vadd.f32 %v1615_v62, %v1601_v24  ;;  %v4340_v24 = vld [vmem:[#allocation29_spill] sm:$0xff] }
 0xdc9   :  { %v4059_v1 = vmul.f32 %v3909_v15, %v4054_v11  ;;  %v4061_v48 = vadd.f32 %v1620_v16, %v1602_v22  ;;  %v4341_v22 = vld [vmem:[#allocation21_spill] sm:$0xff] }
 0xdca   :  { %v4066_v51 = vadd.f32 %v4052_v13, %v1625_v10  ;;  %v953_v62 = vsel %vm952_vm15, %v4341_v22, %v4340_v24 }
 0xdcb   :  { %v1953_v63 = vadd.f32 %v4032_v36, %v4059_v1 }
 0xdcd   :  { %1894 = vrot.lane.b32.xlu2 %v1889_v20, %s2709_s22  ;;  %1892 = vrot.lane.b32.xlu1 %v1888_v50, %s2709_s22  ;;  %v2076_v20 = vperm.slane %v4008_v39, 6 }
 0xdcf   :  { %2042 = vrot.lane.b32.xlu0 %v2034_v53, %s2681_s18  ;;  %v4073_v49 = vpop.permute.xlu2 %1802  ;;  %v1619_v0 = vpop.permute.xlu1 %1618  ;;  %v4342_v53 = vld [vmem:[#allocation23_spill] sm:$0xff] }
 0xdd0   :  { %v4076_v28 = vadd.f32 %v4073_v49, %v1789_v56  ;;  %v1621_v40 = vsel %vm148_vm1, %v1617_v34, %v1619_v0  ;;  %v4343_v0 = vld [vmem:[#allocation30_spill] sm:$0xff] }
 0xdd1   :  { %v4080_v5 = vadd.f32 %v1621_v40, %v3974_v29  ;;  %v4082_v30 = vpop.permute.xlu0 %831  ;;  %v880_v29 = vsel %vm802_vm13, %v3455_v60, %v3560_v38  ;;  %v977_v40 = vsel %vm173_vm2, %v4343_v0, %v4342_v53 }
 0xdd2   :  { %v834_v2 = vmul.f32 %v3909_v15, %v4082_v30 }
 0xdd4   :  { %v861_v34 = vadd.f32 %v3306_v4, %v834_v2  ;;  %v862_v23 = vadd.f32 %v856_v47, %v834_v2  ;;  %v905_v4 = vsel %vm148_vm1, %v3635_v25, %v3567_v45  ;;  %v4344_v47 = vld [vmem:[#allocation19_spill] sm:$0xff] }
 0xdd5   :  { %2066 = vrot.lane.b32.xlu2 %v2058_v59, %s2654_s27  ;;  %2064 = vrot.lane.b32.xlu1 %v2057_v3, %s2654_s27  ;;  %v4345_v3 = vld [vmem:[#allocation20_spill] sm:$0xff] }
 0xdd6   :  { %v885_v35 = vadd.f32 %v3455_v60, %v861_v34  ;;  %v886_v15 = vadd.f32 %v880_v29, %v862_v23  ;;  %v4339_v60 = vld [vmem:[#allocation28_spill] sm:$0xff]  ;;  %v1928_v29 = vmul.f32 %v3999_v7, %v4054_v11  ;;  %v1372_v11 = vsel %vm1370_vm8, %v3877_v17, %v3871_v21 }
 0xdd7   :  { %2062 = vrot.lane.b32.xlu0 %v2056_v55, %s2654_s27  ;;  %v4109_v57 = vpop.permute.xlu2 %1966  ;;  %v1783_v19 = vpop.permute.xlu1 %1782  ;;  %v928_v14 = vsel %vm223_vm4, %v4339_v60, %v4338_v26 }
 0xdd8   :  { %v909_v61 = vadd.f32 %v904_v58, %v885_v35  ;;  %v910_v37 = vadd.f32 %v905_v4, %v886_v15  ;;  %v1977_v27 = vadd.f32 %v4109_v57, %v1953_v63  ;;  %v1184_v35 = vsel %vm641_vm11, %v3869_v18, %v3866_v43 }
 0xdd9   :  { %v1781_v56 = vpop.permute.xlu0 %1780 }
 0xdda   :  { %v933_v44 = vadd.f32 %v4339_v60, %v909_v61  ;;  %v934_v9 = vadd.f32 %v928_v14, %v910_v37  ;;  %v1784_v25 = vsel %vm802_vm13, %v4019_v12, %v1781_v56  ;;  %v1785_v16 = vsel %vm802_vm13, %v1781_v56, %v1783_v19 }
 0xddb   :  { %v1790_v10 = vadd.f32 %v1784_v25, %v1766_v46  ;;  %v1791_v6 = vadd.f32 %v1785_v16, %v4036_v52  ;;  %v994_v46 = vsel %vm993_vm7, %v4345_v3, %v4344_v47  ;;  %v1183_v52 = vsel %vm641_vm11, %v3795_v54, %v3869_v18 }
 0xddc   :  { %v958_v50 = vadd.f32 %v4341_v22, %v933_v44  ;;  %v959_v63 = vadd.f32 %v953_v62, %v934_v9  ;;  %v1371_v19 = vsel %vm1370_vm8, %v3805_v32, %v3877_v17  ;;  %v1539_v18 = vsel %vm1537_vm6, %v3843_v8, %v3884_v33 }
 0xddd   :  { %2082 = vrot.lane.b32.xlu1 %v2077_v31, %s2710_s23  ;;  %vm2135_vm11 = vcmask 203776  }
 0xdde   :  { %v982_v12 = vadd.f32 %v4343_v0, %v958_v50  ;;  %v983_v2 = vadd.f32 %v977_v40, %v959_v63 }
 0xddf   :  { %2080 = vrot.lane.b32.xlu0 %v2076_v20, %s2710_s23  ;;  %v1663_v39 = vpop.permute.xlu2 %1662  ;;  %v1947_v59 = vpop.permute.xlu1 %1946 }
 0xde0   :  { %v998_v34 = vmul.f32 %v4345_v3, %v982_v12  ;;  %v999_v23 = vmul.f32 %v994_v46, %v983_v2 }
 0xde1   :  { %v1945_v55 = vpop.permute.xlu0 %1944 }
 0xde2   :  { %v1948_v15 = vsel %vm198_vm3, %v4032_v36, %v1945_v55  ;;  %v1949_v58 = vsel %vm198_vm3, %v1945_v55, %v1947_v59  ;;  %v1188_v4 = vadd.f32 %v1183_v52, %v998_v34  ;;  %v1189_v37 = vadd.f32 %v1184_v35, %v999_v23 }
 0xde3   :  { %v1954_v61 = vadd.f32 %v1948_v15, %v4059_v1  ;;  %v1955_v54 = vadd.f32 %v1949_v58, %v1928_v29 }
 0xde4   :  { %v1376_v60 = vadd.f32 %v1371_v19, %v1188_v4  ;;  %v1377_v14 = vadd.f32 %v1372_v11, %v1189_v37 }
 0xde6   :  { %v4153_v36 = vadd.f32 %v3847_v41, %v1376_v60  ;;  %v4155_v44 = vadd.f32 %v1539_v18, %v1377_v14 }
 0xde7   :  { %v1827_v56 = vpop.permute.xlu2 %1826  ;;  %v1643_v31 = vpop.permute.xlu1 %1642 }
 0xde8   :  { %v4158_v32 = vadd.f32 %v1827_v56, %v4076_v28 }
 0xde9   :  { %v1641_v1 = vpop.permute.xlu0 %1640 }
 0xdea   :  { %v1644_v17 = vsel %vm223_vm4, %v4052_v13, %v1641_v1  ;;  %v1645_v9 = vsel %vm223_vm4, %v1641_v1, %v1643_v31 }
 0xdeb   :  { %v1650_v25 = vadd.f32 %v1644_v17, %v4061_v48  ;;  %v1651_v8 = vadd.f32 %v1645_v9, %v4080_v5 }
 0xdef   :  { %v1991_v22 = vpop.permute.xlu2 %1990  ;;  %v1807_v41 = vpop.permute.xlu1 %1806 }
 0xdf0   :  { %v2001_v62 = vadd.f32 %v1991_v22, %v1977_v27 }
 0xdf1   :  { %v1805_v16 = vpop.permute.xlu0 %1804 }
 0xdf2   :  { %v1808_v20 = vsel %vm148_vm1, %v4073_v49, %v1805_v16  ;;  %v1809_v28 = vsel %vm148_vm1, %v1805_v16, %v1807_v41 }
 0xdf3   :  { %v1814_v50 = vadd.f32 %v1808_v20, %v1790_v10  ;;  %v1815_v63 = vadd.f32 %v1809_v28, %v1791_v6 }
 0xdf7   :  { %v1687_v0 = vpop.permute.xlu2 %1686  ;;  %v1971_v40 = vpop.permute.xlu1 %1970 }
 0xdf9   :  { %v1969_v13 = vpop.permute.xlu0 %1968 }
 0xdfa   :  { %v1972_v12 = vsel %vm802_vm13, %v4109_v57, %v1969_v13  ;;  %v1973_v48 = vsel %vm802_vm13, %v1969_v13, %v1971_v40  ;;  %v1673_v57 = vadd.f32 %v1663_v39, %v4066_v51 }
 0xdfb   :  { %v1978_v5 = vadd.f32 %v1972_v12, %v1954_v61  ;;  %v4171_v2 = vadd.f32 %v1973_v48, %v1955_v54 }
 0xdfc   :  { %v1697_v55 = vadd.f32 %v1687_v0, %v1673_v57 }
 0xdff   :  { %v1851_v27 = vpop.permute.xlu2 %1850  ;;  %v1667_v3 = vpop.permute.xlu1 %1666 }
 0xe01   :  { %v1665_v46 = vpop.permute.xlu0 %1664 }
 0xe02   :  { %v1668_v49 = vsel %vm952_vm15, %v1663_v39, %v1665_v46  ;;  %v1669_v51 = vsel %vm952_vm15, %v1665_v46, %v1667_v3 }
 0xe03   :  { %v1674_v59 = vadd.f32 %v1668_v49, %v1650_v25  ;;  %v1675_v17 = vadd.f32 %v1669_v51, %v1651_v8  ;;  %v1861_v49 = vadd.f32 %v1851_v27, %v4158_v32 }
 0xe07   :  { %v2015_v34 = vpop.permute.xlu2 %2014  ;;  %v1831_v10 = vpop.permute.xlu1 %1830 }
 0xe08   :  { %v4174_v6 = vadd.f32 %v2015_v34, %v2001_v62 }
 0xe09   :  { %v1829_v23 = vpop.permute.xlu0 %1828 }
 0xe0a   :  { %v1832_v52 = vsel %vm223_vm4, %v1827_v56, %v1829_v23  ;;  %v1833_v40 = vsel %vm223_vm4, %v1829_v23, %v1831_v10 }
 0xe0b   :  { %v1838_v29 = vadd.f32 %v1832_v52, %v1814_v50  ;;  %v1839_v12 = vadd.f32 %v1833_v40, %v1815_v63  ;;  %v4347_v40 = vld [vmem:[#allocation27_spill] sm:$0xff] }
 0xe0f   :  { %v1705_v35 = vpop.permute.xlu2 %1704  ;;  %v1995_v15 = vpop.permute.xlu1 %1994 }
 0xe10   :  { %v1713_v58 = vmul.f32 %v1705_v35, %v1697_v55 }
 0xe11   :  { %v1993_v4 = vpop.permute.xlu0 %1992 }
 0xe12   :  { %v1996_v19 = vsel %vm148_vm1, %v1991_v22, %v1993_v4  ;;  %1719 = vrot.lane.b32.xlu2 %v1713_v58, %s2711_s9 }
 0xe13   :  { %v2002_v61 = vadd.f32 %v1996_v19, %v1978_v5 }
 0xe17   :  { %v1691_v54 = vpop.permute.xlu1 %1690  ;;  %v1877_v18 = vpop.permute.xlu2 %1876 }
 0xe19   :  { %v1689_v37 = vpop.permute.xlu0 %1688 }
 0xe1a   :  { %v1693_v1 = vsel %vm173_vm2, %v1689_v37, %v1691_v54  ;;  %v1692_v9 = vsel %vm173_vm2, %v1687_v0, %v1689_v37 }
 0xe1b   :  { %v1699_v22 = vadd.f32 %v1693_v1, %v1675_v17  ;;  %v1698_v41 = vadd.f32 %v1692_v9, %v1674_v59 }
 0xe1f   :  { %v1855_v11 = vpop.permute.xlu1 %1854  ;;  %v2041_v16 = vpop.permute.xlu2 %2040 }
 0xe21   :  { %v1853_v60 = vpop.permute.xlu0 %1852 }
 0xe22   :  { %v1857_v13 = vsel %vm952_vm15, %v1853_v60, %v1855_v11  ;;  %v1856_v0 = vsel %vm952_vm15, %v1851_v27, %v1853_v60 }
 0xe23   :  { %v1863_v8 = vadd.f32 %v1857_v13, %v1839_v12  ;;  %v1862_v52 = vadd.f32 %v1856_v0, %v1838_v29  ;;  %v881_v13 = vsel %vm802_vm13, %v3560_v38, %v4347_v40 }
 0xe27   :  { %v2019_v14 = vpop.permute.xlu1 %2018  ;;  %v1895_v59 = vpop.permute.xlu2 %1894 }
 0xe29   :  { %v2017_v56 = vpop.permute.xlu0 %2016 }
 0xe2a   :  { %v2020_v31 = vsel %vm223_vm4, %v2015_v34, %v2017_v56  ;;  %v2021_v32 = vsel %vm223_vm4, %v2017_v56, %v2019_v14 }
 0xe2b   :  { %v2026_v39 = vadd.f32 %v2020_v31, %v2002_v61  ;;  %v1997_v61 = vsel %vm148_vm1, %v1993_v4, %v1995_v15  ;;  %vm2084_vm1 = vcmask 990208  }
 0xe2c   :  { %v2003_v29 = vadd.f32 %v1997_v61, %v4171_v2 }
 0xe2e   :  { %v2027_v11 = vadd.f32 %v2021_v32, %v2003_v29 }
 0xe2f   :  { %v1875_v25 = vpop.permute.xlu1 %1874  ;;  %v2067_v60 = vpop.permute.xlu2 %2066 }
 0xe30   :  { %v1880_v34 = vsel %vm173_vm2, %v1875_v25, %v1877_v18  ;;  %v1885_v23 = vadd.f32 %v1875_v25, %v1861_v49 }
 0xe31   :  { %v1707_v62 = vpop.permute.xlu0 %1706  ;;  %v1886_v57 = vadd.f32 %v1880_v34, %v1862_v52 }
 0xe32   :  { %v1709_v20 = vsel %vm1708_vm9, %v1705_v35, %v1707_v62  ;;  %v1715_v28 = vmul.f32 %v1707_v62, %v1699_v22 }
 0xe33   :  { %v1714_v50 = vmul.f32 %v1709_v20, %v1698_v41  ;;  %v4346_v20 = vld [vmem:[#allocation24_spill] sm:$0xff] }
 0xe34   :  { %1723 = vrot.lane.b32.xlu1 %v1715_v28, %s2711_s9  ;;  %v857_v28 = vsel %vm198_vm3, %v3630_v42, %v4346_v20  ;;  %vm1725_vm3 = vcmask 949248  }
 0xe35   :  { %1721 = vrot.lane.b32.xlu0 %v1714_v50, %s2711_s9 }
 0xe37   :  { %v2039_v48 = vpop.permute.xlu1 %2038 }
 0xe38   :  { %v2044_v31 = vsel %vm952_vm15, %v2039_v48, %v2041_v16  ;;  %v2049_v1 = vadd.f32 %v2039_v48, %v4174_v6  ;;  %v2110_v6 = vld [vmem:[%s4237_s4] sm:$0xff]  ;;  %s2714_s4 = smov 25  }
 0xe39   :  { %v1879_v5 = vpop.permute.xlu0 %1878  ;;  %v2050_v4 = vadd.f32 %v2044_v31, %v2026_v39  ;;  %v2185_v39 = vld [vmem:[%s4241_s8] sm:$0xff] }
 0xe3a   :  { %v1881_v3 = vsel %vm173_vm2, %v1877_v18, %v1879_v5 }
 0xe3b   :  { %v1887_v46 = vadd.f32 %v1881_v3, %v1863_v8  ;;  %v4348_v8 = vld [vmem:[#allocation18_spill] sm:$0xff] }
 0xe3c   :  { %v929_v5 = vsel %vm223_vm4, %v4338_v26, %v4348_v8  ;;  %v4349_v3 = vld [vmem:[#allocation22_spill] sm:$0xff]  ;;  %vm1913_vm4 = vcmask 924672  }
 0xe3d   :  { %v1903_v10 = vmul.f32 %v1895_v59, %v1887_v46  ;;  %v4350_v46 = vld [vmem:[#allocation26_spill] sm:$0xff] }
 0xe3e   :  { %v978_v42 = vsel %vm173_vm2, %v4342_v53, %v4350_v46 }
 0xe3f   :  { %1911 = vrot.lane.b32.xlu1 %v1903_v10, %s2712_s24  ;;  %v1893_v63 = vpop.permute.xlu1 %1892 }
 0xe40   :  { %v1897_v55 = vsel %vm1896_vm10, %v1893_v63, %v1895_v59  ;;  %v1901_v35 = vmul.f32 %v1893_v63, %v1885_v23 }
 0xe41   :  { %v1902_v58 = vmul.f32 %v1897_v55, %v1886_v57  ;;  %v2043_v19 = vpop.permute.xlu0 %2042 }
 0xe42   :  { %1907 = vrot.lane.b32.xlu2 %v1901_v35, %s2712_s24  ;;  %v2045_v54 = vsel %vm952_vm15, %v2041_v16, %v2043_v19  ;;  %v836_v16 = vmul.f32 %v3999_v7, %v4082_v30  ;;  %v954_v7 = vsel %vm952_vm15, %v4340_v24, %v4349_v3 }
 0xe43   :  { %1909 = vrot.lane.b32.xlu0 %v1902_v58, %s2712_s24  ;;  %v2051_v51 = vadd.f32 %v2045_v54, %v2027_v11 }
 0xe44   :  { %v863_v50 = vadd.f32 %v857_v28, %v836_v16 }
 0xe46   :  { %v887_v12 = vadd.f32 %v881_v13, %v863_v50 }
 0xe47   :  { %v2065_v27 = vpop.permute.xlu1 %2064 }
 0xe48   :  { %v2069_v18 = vsel %vm173_vm2, %v2065_v27, %v2067_v60  ;;  %v911_v48 = vadd.f32 %v3567_v45, %v887_v12 }
 0xe49   :  { %v2063_v37 = vpop.permute.xlu0 %2062  ;;  %v2075_v17 = vadd.f32 %v2069_v18, %v2051_v51 }
 0xe4a   :  { %v2068_v15 = vsel %vm173_vm2, %v2063_v37, %v2065_v27  ;;  %v2073_v56 = vadd.f32 %v2063_v37, %v2049_v1  ;;  %v935_v0 = vadd.f32 %v929_v5, %v911_v48  ;;  %vm2101_vm2 = vcmask 900096  }
 0xe4b   :  { %v2074_v9 = vadd.f32 %v2068_v15, %v2050_v4 }
 0xe4c   :  { %v960_v30 = vadd.f32 %v954_v7, %v935_v0 }
 0xe4e   :  { %v984_v59 = vadd.f32 %v978_v42, %v960_v30 }
 0xe4f   :  { %v2083_v14 = vpop.permute.xlu1 %2082 }
 0xe50   :  { %v2091_v2 = vmul.f32 %v2083_v14, %v2075_v17  ;;  %v1000_v38 = vmul.f32 %v4344_v47, %v984_v59 }
 0xe51   :  { %v2081_v25 = vpop.permute.xlu0 %2080 }
 0xe52   :  { %v2085_v22 = vsel %vm2084_vm1, %v2081_v25, %v2083_v14  ;;  %v2089_v41 = vmul.f32 %v2081_v25, %v2073_v56  ;;  %2099 = vrot.lane.b32.xlu1 %v2091_v2, %s2713_s25  ;;  %v1190_v52 = vadd.f32 %v3866_v43, %v1000_v38  ;;  %v2184_v25 = vld [vmem:[#allocation10] sm:$0xff] }
 0xe53   :  { %v2090_v62 = vmul.f32 %v2085_v22, %v2074_v9  ;;  %v2119_v9 = vld [vmem:[#allocation9] sm:$0xff] }
 0xe54   :  { %2095 = vrot.lane.b32.xlu2 %v2089_v41, %s2713_s25  ;;  %v1378_v26 = vadd.f32 %v3871_v21, %v1190_v52 }
 0xe55   :  { %2097 = vrot.lane.b32.xlu0 %v2090_v62, %s2713_s25 }
 0xe56   :  { %v1545_v24 = vadd.f32 %v3884_v33, %v1378_v26 }
 0xe5c   :  { %2113 = vperm.xlu2 %2459, %v2110_v6  }
 0xe64   :  { %2188 = vperm.xlu2 %2459, %v2185_v39  }
 0xe6c   :  { %v1720_v49 = vpop.permute.xlu2 %1719 }
 0xe9c   :  { %v1908_v45 = vpop.permute.xlu2 %1907 }
 0xea6   :  { %v1724_v34 = vpop.permute.xlu1 %1723 }
 0xea7   :  { %v1722_v10 = vpop.permute.xlu0 %1721  ;;  %v1733_v55 = vadd.f32 %v1724_v34, %v1545_v24 }
 0xea8   :  { %v1726_v53 = vsel %vm1725_vm3, %v1720_v49, %v1722_v10  ;;  %v1727_v35 = vsel %vm1725_vm3, %v1722_v10, %v1724_v34 }
 0xea9   :  { %v1731_v32 = vadd.f32 %v1726_v53, %v4153_v36  ;;  %v1732_v43 = vadd.f32 %v1727_v35, %v4155_v44  ;;  %v2120_v36 = vld [vmem:[%s4239_s6] sm:$0xff]  ;;  %s2715_s6 = smov [#allocation13]  }
 0xeaa   :  { %s2281_s3 = sshll.u32 %s2715_s6, 4  ;;  %s2282_s3 = int_to_ptr.vmem [resolvable:$true] %s2281_s3 }
 0xeae   :  { %v2096_v57 = vpop.permute.xlu2 %2095 }
 0xeb1   :  { %v1912_v23 = vpop.permute.xlu1 %1911 }
 0xeb2   :  { %v1921_v58 = vadd.f32 %v1912_v23, %v1733_v55 }
 0xeb5   :  { %v1910_v63 = vpop.permute.xlu0 %1909 }
 0xeb6   :  { %v1914_v19 = vsel %vm1913_vm4, %v1908_v45, %v1910_v63  ;;  %v1915_v47 = vsel %vm1913_vm4, %v1910_v63, %v1912_v23  ;;  %v2114_v21 = vpop.permute.xlu2 %2113 }
 0xeb7   :  { %v1919_v29 = vadd.f32 %v1914_v19, %v1731_v32  ;;  %v1920_v54 = vadd.f32 %v1915_v47, %v1732_v43 }
 0xebe   :  { %v2189_v22 = vpop.permute.xlu2 %2188 }
 0xec4   :  { %v2100_v61 = vpop.permute.xlu1 %2099 }
 0xec5   :  { %v2109_v27 = vadd.f32 %v2100_v61, %v1921_v58 }
 0xec7   :  { %v2118_v33 = vadd.f32 %v2114_v21, %v2109_v27  ;;  %v2098_v37 = vpop.permute.xlu0 %2097 }
 0xec8   :  { %v2102_v11 = vsel %vm2101_vm2, %v2096_v57, %v2098_v37  ;;  %v2103_v60 = vsel %vm2101_vm2, %v2098_v37, %v2100_v61 }
 0xec9   :  { %v2107_v18 = vadd.f32 %v2102_v11, %v1919_v29  ;;  %v2108_v31 = vadd.f32 %v2103_v60, %v1920_v54  ;;  %2133 = vrot.lane.b32.xlu1 %v2118_v33, %s2714_s4 }
 0xecb   :  { %v2116_v51 = vadd.f32 %v2114_v21, %v2107_v18  ;;  %v2117_v1 = vadd.f32 %v2114_v21, %v2108_v31 }
 0xecd   :  { %v2460_v17 = vpack.i.bf16 %v2117_v1, %v2116_v51 }
 0xecf   :  { %2461 = vrot.lane.b32.xlu0 %v2460_v17, %s2714_s4 }
 0xed7   :  { %2123 = vperm.xlu0 %2458, %v2120_v36  }
 0xf3b   :  { %v2134_v14 = vpop.permute.xlu1 %2133 }
 0xf41   :  { %v2462_v44 = vpop.permute.xlu0 %2461 }
 0xf42   :  { %v2464_v15 = vunpack.i.h.bf16 %v2462_v44  ;;  %v2463_v4 = vunpack.i.l.bf16 %v2462_v44 }
 0xf44   :  { %v2136_v56 = vsel %vm2135_vm11, %v2463_v4, %v2464_v15  ;;  %v2137_v2 = vsel %vm2135_vm11, %v2464_v15, %v2134_v14 }
 0xf45   :  { %2159 = vmatpush.msra.mxu0 %v2136_v56  ;;  %2179 = vmatpush.msra.mxu1 %v2137_v2 }
 0xf46   :  { %2209 = vmatpush.msra.mxu2 %v2136_v56  ;;  %2229 = vmatpush.msra.mxu3 %v2137_v2 }
 0xf47   :  { %2295 = vmatmul.msk.f32.vlgmr.msra.gmra.mxu0 %vm2140_vm12, %v2119_v9  ;;  %2296 = vmatmul.msk.f32.vlgmr.msra.gmra.mxu1 %vm2140_vm12, %v2119_v9 }
 0xf48   :  { %2297 = vmatmul.msk.f32.vlgmr.msra.gmra.mxu2 %vm2140_vm12, %v2184_v25  ;;  %2298 = vmatmul.msk.f32.vlgmr.msra.gmra.mxu3 %vm2140_vm12, %v2184_v25 }
 0xf49   :  { %v2124_v52 = vpop.permute.xlu0 %2123 }
 0xfc4   :  { %v2161_v49 = vpop.f32.mrf.mxu0  ;;  %v2181_v34 = vpop.f32.mrf.mxu1 }
 0xfc5   :  { %v2162_v23 = vadd.f32 %v2161_v49, %v2124_v52  ;;  %v2182_v63 = vadd.f32 %v2181_v34, %v2124_v52 }
 0xfcb   :  { %v2211_v41 = vpop.f32.mrf.mxu2  ;;  %v2231_v62 = vpop.f32.mrf.mxu3 }
 0xfcc   :  { %v2212_v6 = vadd.f32 %v2211_v41, %v2189_v22  ;;  %v2232_v39 = vadd.f32 %v2231_v62, %v2189_v22 }
 0xfce   :  { %v2299_v16 = vmul.f32 -1.442695, %v2212_v6  ;;  %v2300_v20 = vmul.f32 -1.442695, %v2232_v39 }
 0xfd0   :  { %2465 = vpow2.f32 %v2299_v16 }
 0xfd1   :  { %2467 = vpow2.f32 %v2300_v20 }
 0xfd6   :  { %v2466_v28 = vpop.eup %2465 }
 0xfd7   :  { %v2468_v50 = vpop.eup %2467  ;;  %v2240_v40 = vadd.f32 1.0, %v2466_v28 }
 0xfd8   :  { %v2241_v13 = vadd.f32 1.0, %v2468_v50 }
 0xfd9   :  { %2469 = vrcp.f32 %v2240_v40  ;;  %v2253_v7 = vand.u32 2147483648, %v2240_v40  ;;  %v2251_v46 = vand.u32 2147483647, %v2240_v40  ;;  %vm2247_vm15 = vweird.f32 %v2240_v40 }
 0xfda   :  { %2471 = vrcp.f32 %v2241_v13  ;;  %v2268_v42 = vand.u32 2147483648, %v2241_v13  ;;  %v2266_v38 = vand.u32 2147483647, %v2241_v13  ;;  %vm2262_vm5 = vweird.f32 %v2241_v13 }
 0xfdb   :  { %v2254_v10 = vor.u32 1.1754944e-38, %v2253_v7  ;;  %vm2252_vm6 = vcmp.eq.f32.partialorder %v2251_v46, 8.507059e+37 }
 0xfdc   :  { %v2269_v24 = vor.u32 1.1754944e-38, %v2268_v42  ;;  %vm2267_vm8 = vcmp.eq.f32.partialorder %v2266_v38, 8.507059e+37 }
 0xfdf   :  { %v2470_v12 = vpop.eup %2469 }
 0xfe0   :  { %v2472_v48 = vpop.eup %2471  ;;  %v2243_v8 = vmul.f32 %v2470_v12, %v2240_v40  ;;  %vm2248_vm13 = vweird.f32 %v2470_v12 }
 0xfe1   :  { %v2258_v5 = vmul.f32 %v2472_v48, %v2241_v13  ;;  %vm2263_vm14 = vweird.f32 %v2472_v48  ;;  %vm2249_vm0 = vmor %vm2247_vm15, %vm2248_vm13 }
 0xfe2   :  { %v2244_v0 = vsub.f32 1.0, %v2243_v8  ;;  %vm2264_vm7 = vmor %vm2262_vm5, %vm2263_vm14 }
 0xfe3   :  { %v2259_v3 = vsub.f32 1.0, %v2258_v5 }
 0xfe4   :  { %v2245_v30 = vmul.f32 %v2470_v12, %v2244_v0 }
 0xfe5   :  { %v2260_v59 = vmul.f32 %v2472_v48, %v2259_v3 }
 0xfe6   :  { %v2246_v45 = vadd.f32 %v2470_v12, %v2245_v30 }
 0xfe7   :  { %v2261_v26 = vadd.f32 %v2472_v48, %v2260_v59 }
 0xfe8   :  { %v2250_v57 = vsel %vm2249_vm0, %v2470_v12, %v2246_v45 }
 0xfe9   :  { %v2255_v55 = vsel %vm2252_vm6, %v2254_v10, %v2250_v57  ;;  %v2265_v53 = vsel %vm2264_vm7, %v2472_v48, %v2261_v26 }
 0xfea   :  { %v2270_v35 = vsel %vm2267_vm8, %v2269_v24, %v2265_v53  ;;  %v2272_v58 = vmul.f32 %v2255_v55, %v2162_v23 }
 0xfeb   :  { %v2273_v19 = vmul.f32 %v2270_v35, %v2182_v63 }
 0xfec   :  { %2274 = vst [vmem:[#allocation13] sm:$0xff] %v2272_v58 }
 0xfed   :  { %2275 = vst [vmem:[#allocation13 + $0x8] sm:$0xff] %v2273_v19 }
 0xfee   :  { %2286 = dma.vmem_to_hbm [thread:$0]  %s2282_s3, 256, %s2284_s13, [#allocation6]  }
 0xfef   :  { %2631 = dma.done.wait [#allocation6], 256  }
 0xff0   :  { %2632 = vsyncadd [#allocation6], 4294967040 }
 0xff1   :  { %2291 = vsyncpa [#allocation5], 1 }
 0xff2   :  { %2292 = vsyncpa [#allocation8], 1 }
 0xff3   :  { %2293 = vsyncpa [#allocation11], 1 }
 0xff4   :  { %2294 = vsyncpa [#allocation6], 1 }

</bundles_post_ra>
